<compile_context>
chip_gen: v7x
topology: tpu7x:2x2x1
jax: 0.10.0
libtpu: 0.0.40
codegen_flags: <defaults>
</compile_context>

<pallas_src>
import functools

import jax
import jax.numpy as jnp
from jax.experimental import pallas as pl
from jax.experimental.pallas import tpu as pltpu


LANE = 128      # lane tile (last dim)
SUBLANE = 8     # f32 sublane tile (second-to-last dim)


def _round_up(n, m):
    return ((n + m - 1) // m) * m


def _pad2(x, rows, cols):
    return jnp.pad(x, ((0, rows - x.shape[0]), (0, cols - x.shape[1])))


# ----------------------------------------------------------------------------
# Fused Pallas kernel: one invocation per decoder step
# ----------------------------------------------------------------------------

def _gnmt_step_kernel(
        tok_ref,                      # SMEM (Bp,) int32
        feat_ref, attn_ref, hid_ref,  # VMEM activations / state (f32)
        emb_hbm,                      # HBM (ANY) embedding table (f32)
        w_map_ref, b_map_ref,
        w_ai_ref, b_ai_ref,
        w_ah_ref, b_ah_ref,
        w_ao_ref, b_ao_ref,
        w_out_ref, b_out_ref,
        gru0_wx_ref, gru_wx_ref, gru_wh_ref, gru_bi_ref, gru_bh_ref,
        logp_ref, newh_ref,           # outputs
        emb_buf, emb_sem,             # scratch: gather buffer + DMA sems
        *, hp, vocab, batch_pad):
    """Fused GNMT.forward decoder step.  Weights are bf16, math is f32."""
    f32 = jnp.float32

    def mm(x, w):
        # bf16 x bf16 MXU matmul with f32 accumulation.
        return jnp.dot(x.astype(w.dtype), w, preferred_element_type=f32)

    # ---- embedding row gather: table stays in HBM, DMA only Bp rows ---------
    for b in range(batch_pad):
        pltpu.make_async_copy(emb_hbm.at[pl.ds(tok_ref[b], 1)],
                              emb_buf.at[pl.ds(b, 1)],
                              emb_sem.at[b]).start()
    for b in range(batch_pad):
        pltpu.make_async_copy(emb_hbm.at[pl.ds(tok_ref[b], 1)],
                              emb_buf.at[pl.ds(b, 1)],
                              emb_sem.at[b]).wait()
    x_emb = jnp.maximum(emb_buf[...], 0.0)                       # relu(embed)

    # ---- attention context: relu(map(feature)); 3 chained relu-linears ------
    def linear_relu(x, w, b):
        return jnp.maximum(mm(x, w) + b, 0.0)

    feat = linear_relu(feat_ref[...], w_map_ref[...], b_map_ref[...])
    attn = linear_relu(feat + attn_ref[...], w_ai_ref[...], b_ai_ref[...])
    attn = linear_relu(attn, w_ah_ref[...], b_ah_ref[...])
    attn = linear_relu(attn, w_ao_ref[...], b_ao_ref[...])

    # ---- 8 chained GRU cells: split x / h matmuls (no concat) ----------------
    # Gate columns (each hp wide, 128-aligned): [ reset | update | new ].
    def gru(layer, x_in, wx):
        h_in = hid_ref[layer] + attn                             # hiddens[l]+attn
        gi = mm(x_in, wx) + gru_bi_ref[layer]                    # (Bp, 3*hp)
        gh = mm(h_in, gru_wh_ref[layer]) + gru_bh_ref[layer]     # (Bp, 3*hp)
        r = jax.nn.sigmoid(gi[:, 0 * hp:1 * hp] + gh[:, 0 * hp:1 * hp])
        z = jax.nn.sigmoid(gi[:, 1 * hp:2 * hp] + gh[:, 1 * hp:2 * hp])
        n = jnp.tanh(gi[:, 2 * hp:3 * hp] + r * gh[:, 2 * hp:3 * hp])
        h_new = (1.0 - z) * n + z * h_in
        newh_ref[layer] = h_new                                  # direct slab write
        return h_new

    x1 = gru(0, x_emb,    gru0_wx_ref[...])     # new attention
    x2 = gru(1, x1,       gru_wx_ref[0])
    x3 = gru(2, x2,       gru_wx_ref[1])
    x4 = gru(3, x2 + x3,  gru_wx_ref[2])
    x5 = gru(4, x3 + x4,  gru_wx_ref[3])
    x6 = gru(5, x4 + x5,  gru_wx_ref[4])
    x7 = gru(6, x5 + x6,  gru_wx_ref[5])
    x8 = gru(7, x6 + x7,  gru_wx_ref[6])

    # ---- output projection + masked log-softmax ------------------------------
    logits = mm(x8, w_out_ref[...]) + b_out_ref[...]             # (Bp, Vp) f32
    col = jax.lax.broadcasted_iota(jnp.int32, logits.shape, 1)
    logits = jnp.where(col < vocab, logits, jnp.float32(-1e30))
    m = jnp.max(logits, axis=1, keepdims=True)
    lse = jnp.log(jnp.sum(jnp.exp(logits - m), axis=1, keepdims=True)) + m
    logp_ref[...] = logits - lse


# ----------------------------------------------------------------------------
# Parameter construction (deterministic, synthetic, PyTorch-shaped)
# ----------------------------------------------------------------------------

def init_gnmt_params(key, feature_size, hidden_size, output_size, embed_size):
    ks = jax.random.split(key, 48)          # 43 keys actually consumed
    it = iter(range(len(ks)))

    def nrm(shape, scale=0.1):
        return (scale * jax.random.normal(ks[next(it)], shape)).astype(jnp.float32)

    params = {"embedding": nrm((output_size, embed_size))}

    def linear(in_d, out_d):
        return nrm((in_d, out_d)), nrm((1, out_d))   # transposed weight + bias

    params["map"] = linear(feature_size, hidden_size)
    params["attn_input"] = linear(hidden_size, hidden_size)
    params["attn_hidden"] = linear(hidden_size, hidden_size)
    params["attn_output"] = linear(hidden_size, hidden_size)
    params["out"] = linear(hidden_size, output_size)

    def gru(in_d, h):
        return (nrm((in_d, 3 * h)),    # weight_ih^T, gate cols [r|z|n]
                nrm((h, 3 * h)),       # weight_hh^T
                nrm((1, 3 * h)),       # bias_ih
                nrm((1, 3 * h)))       # bias_hh

    grus = [gru(embed_size, hidden_size)]
    for _ in range(7):
        grus.append(gru(hidden_size, hidden_size))
    params["grus"] = grus
    return params


# ----------------------------------------------------------------------------
# Pack / pad weights for the fused kernel (done once)
# ----------------------------------------------------------------------------

def prepare_params(params, weight_dtype=jnp.bfloat16):
    emb = params["embedding"]
    vocab, embed = emb.shape
    w_map, b_map = params["map"]
    feat_dim, hidden = w_map.shape

    hp = _round_up(hidden, LANE)
    ep = _round_up(embed, LANE)
    fp = _round_up(feat_dim, LANE)
    vp = _round_up(vocab, LANE)
    vr = _round_up(vocab, SUBLANE)     # table rows (HBM only, row-gathered)

    prep = {
        # Embedding stays f32: only B rows are DMA'd per step, so bf16 buys
        # nothing and f32 keeps the single-row DMA layout trivial.
        "emb": _pad2(emb, vr, ep).astype(jnp.float32),
        "w_map": _pad2(w_map, fp, hp).astype(weight_dtype),
        "b_map": _pad2(b_map, 1, hp).astype(jnp.float32),
    }
    for name in ("attn_input", "attn_hidden", "attn_output"):
        w, b = params[name]
        prep["w_" + name] = _pad2(w, hp, hp).astype(weight_dtype)
        prep["b_" + name] = _pad2(b, 1, hp).astype(jnp.float32)
    w_out, b_out = params["out"]
    prep["w_out"] = _pad2(w_out, hp, vp).astype(weight_dtype)
    prep["b_out"] = _pad2(b_out, 1, vp).astype(jnp.float32)

    def pack_gates(w, rows_p):
        # w: (in, 3h) in PyTorch gate order [r|z|n]; pad each gate block to hp
        # lanes so gate slices inside the kernel are 128-aligned views.
        in_d, three_h = w.shape
        h = three_h // 3
        out = jnp.zeros((rows_p, 3 * hp), w.dtype)
        for k in range(3):
            out = out.at[:in_d, k * hp:k * hp + h].set(w[:, k * h:(k + 1) * h])
        return out

    wx_list, wh_list, bi_list, bh_list = [], [], [], []
    for (wih, whh, bih, bhh) in params["grus"]:
        in_p = _round_up(wih.shape[0], LANE)
        wx_list.append(pack_gates(wih, in_p))
        wh_list.append(pack_gates(whh, hp))
        bi_list.append(pack_gates(bih, 1))
        bh_list.append(pack_gates(bhh, 1))

    prep["gru0_wx"] = wx_list[0].astype(weight_dtype)                 # (ep, 3*hp)
    prep["gru_wx"] = jnp.stack(wx_list[1:], axis=0).astype(weight_dtype)  # (7,hp,3hp)
    prep["gru_wh"] = jnp.stack(wh_list, axis=0).astype(weight_dtype)      # (8,hp,3hp)
    prep["gru_bi"] = jnp.stack(bi_list, axis=0).astype(jnp.float32)       # (8,1,3hp)
    prep["gru_bh"] = jnp.stack(bh_list, axis=0).astype(jnp.float32)       # (8,1,3hp)
    return prep


# ----------------------------------------------------------------------------
# Padded per-step wrapper (single pallas_call) + pad/slice helpers
# ----------------------------------------------------------------------------

def pad_inputs(prep, feature, tokens, attention, hiddens):
    """Pad once (outside the decode loop) to TPU tile sizes."""
    fp, hp = prep["w_map"].shape
    batch = int(tokens.shape[0])
    hidden = attention.shape[1]
    bp = _round_up(max(batch, 1), SUBLANE)
    tok_p = jnp.zeros((bp,), jnp.int32).at[:batch].set(tokens.astype(jnp.int32))
    feat_p = _pad2(feature.astype(jnp.float32), bp, fp)
    attn_p = _pad2(attention.astype(jnp.float32), bp, hp)
    hid_p = jnp.pad(hiddens.astype(jnp.float32),
                    ((0, 0), (0, bp - batch), (0, hp - hidden)))
    return tok_p, feat_p, attn_p, hid_p


@functools.partial(jax.jit, static_argnames=("vocab",))
def gnmt_step_padded(prep, tok_p, feat_p, attn_p, hid_p, *, vocab):
    """One decoder step on padded tensors -> padded (logp, attn, hiddens)."""
    bp = tok_p.shape[0]
    hp = prep["w_map"].shape[1]
    ep = prep["gru0_wx"].shape[0]
    vp = prep["w_out"].shape[1]

    # Resident working set (weights except emb + activations) -> VMEM budget.
    weight_bytes = sum(int(v.size) * v.dtype.itemsize
                       for k, v in prep.items() if k != "emb")
    act_bytes = 4 * bp * (vp + 9 * hp + ep + 6 * hp)
    vmem_limit = int(min(64 * 1024 * 1024,
                         max(2 * (weight_bytes + act_bytes) + (2 << 20), 4 << 20)))

    vmem = pl.BlockSpec(memory_space=pltpu.MemorySpace.VMEM)
    smem = pl.BlockSpec(memory_space=pltpu.MemorySpace.SMEM)
    any_ = pl.BlockSpec(memory_space=pl.ANY)

    kernel = functools.partial(_gnmt_step_kernel, hp=hp, vocab=vocab,
                               batch_pad=bp)
    logp_p, newh_p = pl.pallas_call(
        kernel,
        out_shape=(jax.ShapeDtypeStruct((bp, vp), jnp.float32),
                   jax.ShapeDtypeStruct((8, bp, hp), jnp.float32)),
        in_specs=[smem,                      # tokens
                  vmem, vmem, vmem,          # feature, attention, hiddens
                  any_]                      # embedding table stays in HBM
                 + [vmem] * 15,              # weights / biases
        out_specs=(vmem, vmem),
        scratch_shapes=[pltpu.VMEM((bp, ep), jnp.float32),   # gathered rows
                        pltpu.SemaphoreType.DMA((bp,))],
        input_output_aliases={3: 1},         # hiddens in -> new hiddens out
        compiler_params=pltpu.CompilerParams(vmem_limit_bytes=vmem_limit),
    )(tok_p, feat_p, attn_p, hid_p, prep["emb"],
      prep["w_map"], prep["b_map"],
      prep["w_attn_input"], prep["b_attn_input"],
      prep["w_attn_hidden"], prep["b_attn_hidden"],
      prep["w_attn_output"], prep["b_attn_output"],
      prep["w_out"], prep["b_out"],
      prep["gru0_wx"], prep["gru_wx"], prep["gru_wh"],
      prep["gru_bi"], prep["gru_bh"])

    return logp_p, newh_p[0], newh_p


def gnmt_forward(prep, feature, tokens, attention, hiddens, vocab):
    """Convenience: pad -> fused step -> slice (a decode loop should instead
    keep everything padded and only slice at the end of the sequence)."""
    batch, hidden = attention.shape
    tok_p, feat_p, attn_p, hid_p = pad_inputs(prep, feature, tokens,
                                              attention, hiddens)
    logp_p, attn_new_p, newh_p = gnmt_step_padded(prep, tok_p, feat_p, attn_p,
                                                  hid_p, vocab=vocab)
    return (logp_p[:batch, :vocab],
            attn_new_p[:batch, :hidden],
            newh_p[:, :batch, :hidden])


# ----------------------------------------------------------------------------
# Pure-JAX reference (unpadded) for correctness checking
# ----------------------------------------------------------------------------

def _mm_ref(x, w, bf16):
    if bf16:
        return jnp.dot(x.astype(jnp.bfloat16), w.astype(jnp.bfloat16),
                       preferred_element_type=jnp.float32)
    return jnp.dot(x, w, preferred_element_type=jnp.float32)


def _gru_ref(x, h, wih, whh, bih, bhh, bf16):
    hs = whh.shape[0]
    gi = _mm_ref(x, wih, bf16) + bih
    gh = _mm_ref(h, whh, bf16) + bhh
    r = jax.nn.sigmoid(gi[:, :hs] + gh[:, :hs])
    z = jax.nn.sigmoid(gi[:, hs:2 * hs] + gh[:, hs:2 * hs])
    n = jnp.tanh(gi[:, 2 * hs:] + r * gh[:, 2 * hs:])
    return (1.0 - z) * n + z * h


def gnmt_forward_ref(params, feature, tokens, attention, hiddens,
                     bf16_matmul=False):
    bf = bf16_matmul
    x = jnp.maximum(params["embedding"][tokens], 0.0)
    w, b = params["map"]
    feat = jnp.maximum(_mm_ref(feature, w, bf) + b, 0.0)
    w, b = params["attn_input"]
    attn = jnp.maximum(_mm_ref(feat + attention, w, bf) + b, 0.0)
    w, b = params["attn_hidden"]
    attn = jnp.maximum(_mm_ref(attn, w, bf) + b, 0.0)
    w, b = params["attn_output"]
    attn = jnp.maximum(_mm_ref(attn, w, bf) + b, 0.0)
    g = params["grus"]
    x1 = _gru_ref(x, hiddens[0] + attn, *g[0], bf)
    x2 = _gru_ref(x1, hiddens[1] + attn, *g[1], bf)
    x3 = _gru_ref(x2, hiddens[2] + attn, *g[2], bf)
    x4 = _gru_ref(x2 + x3, hiddens[3] + attn, *g[3], bf)
    x5 = _gru_ref(x3 + x4, hiddens[4] + attn, *g[4], bf)
    x6 = _gru_ref(x4 + x5, hiddens[5] + attn, *g[5], bf)
    x7 = _gru_ref(x5 + x6, hiddens[6] + attn, *g[6], bf)
    x8 = _gru_ref(x6 + x7, hiddens[7] + attn, *g[7], bf)
    w, b = params["out"]
    logp = jax.nn.log_softmax(_mm_ref(x8, w, bf) + b, axis=1)
    return logp, x1, jnp.stack([x1, x2, x3, x4, x5, x6, x7, x8], axis=0)


# ----------------------------------------------------------------------------
# Demo
# ----------------------------------------------------------------------------

if __name__ == "__main__":
    feature_size = 16
    hidden_size = 32
    output_size = 64
    embed_size = 32
    batch = 2

    key = jax.random.PRNGKey(0)
    k_param, k_feat, k_tok, k_attn = jax.random.split(key, 4)

    params = init_gnmt_params(k_param, feature_size, hidden_size,
                              output_size, embed_size)
    prep = prepare_params(params)

    feature = jax.random.normal(k_feat, (batch, feature_size), dtype=jnp.float32)
    tokens = jax.random.randint(k_tok, (batch,), 0, output_size, dtype=jnp.int32)
    attention = jax.random.normal(k_attn, (batch, hidden_size), dtype=jnp.float32)
    hiddens = jnp.zeros((8, batch, hidden_size), dtype=jnp.float32)  # initHidden

    log_probs, new_attention, new_hiddens = gnmt_forward(
        prep, feature, tokens, attention, hiddens, output_size)
    jax.block_until_ready((log_probs, new_attention, new_hiddens))

    assert log_probs.shape == (batch, output_size)
    assert new_attention.shape == (batch, hidden_size)
    assert new_hiddens.shape == (8, batch, hidden_size)
    # log-softmax rows should sum to ~1 in prob space
    assert jnp.allclose(jnp.sum(jnp.exp(log_probs), axis=1), 1.0, atol=1e-3)

    # Tight check vs a reference using the same numerics (bf16 matmul operands,
    # f32 accumulation).
    ref_lp_q, ref_attn_q, ref_hid_q = gnmt_forward_ref(
        params, feature, tokens, attention, hiddens, bf16_matmul=True)
    assert jnp.allclose(log_probs, ref_lp_q, atol=1e-3, rtol=1e-3)
    assert jnp.allclose(new_attention, ref_attn_q, atol=1e-3, rtol=1e-3)
    assert jnp.allclose(new_hiddens, ref_hid_q, atol=1e-3, rtol=1e-3)

    # Looser check vs the exact f32 PyTorch-semantics reference (bf16 weight
    # quantization is the only approximation).
    ref_lp, ref_attn, ref_hid = gnmt_forward_ref(
        params, feature, tokens, attention, hiddens, bf16_matmul=False)
    assert jnp.allclose(log_probs, ref_lp, atol=3e-2, rtol=3e-2)
    assert jnp.allclose(new_attention, ref_attn, atol=3e-2, rtol=3e-2)
    assert jnp.allclose(new_hiddens, ref_hid, atol=3e-2, rtol=3e-2)

    print("KERNEL_OK")
</pallas_src>

<mosaic_0001>
module attributes {stable_mosaic.version = 11 : i64} {
  func.func @_gnmt_step_kernel(%arg0: memref<8xi32, #tpu.memory_space<smem>>, %arg1: memref<8x128xf32, #tpu.memory_space<vmem>>, %arg2: memref<8x128xf32, #tpu.memory_space<vmem>>, %arg3: memref<8x8x128xf32, #tpu.memory_space<vmem>>, %arg4: memref<64x128xf32, #tpu.memory_space<any>>, %arg5: memref<128x128xbf16, #tpu.memory_space<vmem>>, %arg6: memref<1x128xf32, #tpu.memory_space<vmem>>, %arg7: memref<128x128xbf16, #tpu.memory_space<vmem>>, %arg8: memref<1x128xf32, #tpu.memory_space<vmem>>, %arg9: memref<128x128xbf16, #tpu.memory_space<vmem>>, %arg10: memref<1x128xf32, #tpu.memory_space<vmem>>, %arg11: memref<128x128xbf16, #tpu.memory_space<vmem>>, %arg12: memref<1x128xf32, #tpu.memory_space<vmem>>, %arg13: memref<128x128xbf16, #tpu.memory_space<vmem>>, %arg14: memref<1x128xf32, #tpu.memory_space<vmem>>, %arg15: memref<128x384xbf16, #tpu.memory_space<vmem>>, %arg16: memref<7x128x384xbf16, #tpu.memory_space<vmem>>, %arg17: memref<8x128x384xbf16, #tpu.memory_space<vmem>>, %arg18: memref<8x1x384xf32, #tpu.memory_space<vmem>>, %arg19: memref<8x1x384xf32, #tpu.memory_space<vmem>>, %arg20: memref<8x128xf32, #tpu.memory_space<vmem>>, %arg21: memref<8x8x128xf32, #tpu.memory_space<vmem>>, %arg22: memref<8x128xf32, #tpu.memory_space<vmem>>, %arg23: memref<8x!tpu.dma_semaphore, #tpu.memory_space<semaphore_mem>>) attributes {dimension_semantics = [], scalar_prefetch = 0 : i64, scratch_operands = 2 : i64, tpu.core_type = #tpu.core_type<tc>} {
    %c0 = arith.constant 0 : index
    %0 = memref.load %arg0[%c0] : memref<8xi32, #tpu.memory_space<smem>>
    %c0_i32 = arith.constant 0 : i32
    %c0_i32_0 = arith.constant 0 : i32
    %1 = tpu.memref_slice %arg4[%0, %c0_i32_0] : memref<64x128xf32, #tpu.memory_space<any>> -> memref<1x128xf32, #tpu.memory_space<any>>
    %c0_i32_1 = arith.constant 0 : i32
    %c0_i32_2 = arith.constant 0 : i32
    %2 = tpu.memref_slice %arg22[%c0_i32_1, %c0_i32_2] : memref<8x128xf32, #tpu.memory_space<vmem>> -> memref<1x128xf32, #tpu.memory_space<vmem>>
    %3 = tpu.memref_slice %arg23[%c0_i32] : memref<8x!tpu.dma_semaphore, #tpu.memory_space<semaphore_mem>> -> memref<1x!tpu.dma_semaphore, #tpu.memory_space<semaphore_mem>>
    %4 = tpu.memref_squeeze %3 : memref<1x!tpu.dma_semaphore, #tpu.memory_space<semaphore_mem>> -> memref<!tpu.dma_semaphore, #tpu.memory_space<semaphore_mem>>
    tpu.enqueue_dma source(%1 : memref<1x128xf32, #tpu.memory_space<any>>) target(%2 : memref<1x128xf32, #tpu.memory_space<vmem>>) target_semaphore(%4 : memref<!tpu.dma_semaphore, #tpu.memory_space<semaphore_mem>>)
    %c1 = arith.constant 1 : index
    %5 = memref.load %arg0[%c1] : memref<8xi32, #tpu.memory_space<smem>>
    %c1_i32 = arith.constant 1 : i32
    %c0_i32_3 = arith.constant 0 : i32
    %6 = tpu.memref_slice %arg4[%5, %c0_i32_3] : memref<64x128xf32, #tpu.memory_space<any>> -> memref<1x128xf32, #tpu.memory_space<any>>
    %c1_i32_4 = arith.constant 1 : i32
    %c0_i32_5 = arith.constant 0 : i32
    %7 = tpu.memref_slice %arg22[%c1_i32_4, %c0_i32_5] : memref<8x128xf32, #tpu.memory_space<vmem>> -> memref<1x128xf32, #tpu.memory_space<vmem>>
    %8 = tpu.memref_slice %arg23[%c1_i32] : memref<8x!tpu.dma_semaphore, #tpu.memory_space<semaphore_mem>> -> memref<1x!tpu.dma_semaphore, #tpu.memory_space<semaphore_mem>>
    %9 = tpu.memref_squeeze %8 : memref<1x!tpu.dma_semaphore, #tpu.memory_space<semaphore_mem>> -> memref<!tpu.dma_semaphore, #tpu.memory_space<semaphore_mem>>
    tpu.enqueue_dma source(%6 : memref<1x128xf32, #tpu.memory_space<any>>) target(%7 : memref<1x128xf32, #tpu.memory_space<vmem>>) target_semaphore(%9 : memref<!tpu.dma_semaphore, #tpu.memory_space<semaphore_mem>>)
    %c2 = arith.constant 2 : index
    %10 = memref.load %arg0[%c2] : memref<8xi32, #tpu.memory_space<smem>>
    %c2_i32 = arith.constant 2 : i32
    %c0_i32_6 = arith.constant 0 : i32
    %11 = tpu.memref_slice %arg4[%10, %c0_i32_6] : memref<64x128xf32, #tpu.memory_space<any>> -> memref<1x128xf32, #tpu.memory_space<any>>
    %c2_i32_7 = arith.constant 2 : i32
    %c0_i32_8 = arith.constant 0 : i32
    %12 = tpu.memref_slice %arg22[%c2_i32_7, %c0_i32_8] : memref<8x128xf32, #tpu.memory_space<vmem>> -> memref<1x128xf32, #tpu.memory_space<vmem>>
    %13 = tpu.memref_slice %arg23[%c2_i32] : memref<8x!tpu.dma_semaphore, #tpu.memory_space<semaphore_mem>> -> memref<1x!tpu.dma_semaphore, #tpu.memory_space<semaphore_mem>>
    %14 = tpu.memref_squeeze %13 : memref<1x!tpu.dma_semaphore, #tpu.memory_space<semaphore_mem>> -> memref<!tpu.dma_semaphore, #tpu.memory_space<semaphore_mem>>
    tpu.enqueue_dma source(%11 : memref<1x128xf32, #tpu.memory_space<any>>) target(%12 : memref<1x128xf32, #tpu.memory_space<vmem>>) target_semaphore(%14 : memref<!tpu.dma_semaphore, #tpu.memory_space<semaphore_mem>>)
    %c3 = arith.constant 3 : index
    %15 = memref.load %arg0[%c3] : memref<8xi32, #tpu.memory_space<smem>>
    %c3_i32 = arith.constant 3 : i32
    %c0_i32_9 = arith.constant 0 : i32
    %16 = tpu.memref_slice %arg4[%15, %c0_i32_9] : memref<64x128xf32, #tpu.memory_space<any>> -> memref<1x128xf32, #tpu.memory_space<any>>
    %c3_i32_10 = arith.constant 3 : i32
    %c0_i32_11 = arith.constant 0 : i32
    %17 = tpu.memref_slice %arg22[%c3_i32_10, %c0_i32_11] : memref<8x128xf32, #tpu.memory_space<vmem>> -> memref<1x128xf32, #tpu.memory_space<vmem>>
    %18 = tpu.memref_slice %arg23[%c3_i32] : memref<8x!tpu.dma_semaphore, #tpu.memory_space<semaphore_mem>> -> memref<1x!tpu.dma_semaphore, #tpu.memory_space<semaphore_mem>>
    %19 = tpu.memref_squeeze %18 : memref<1x!tpu.dma_semaphore, #tpu.memory_space<semaphore_mem>> -> memref<!tpu.dma_semaphore, #tpu.memory_space<semaphore_mem>>
    tpu.enqueue_dma source(%16 : memref<1x128xf32, #tpu.memory_space<any>>) target(%17 : memref<1x128xf32, #tpu.memory_space<vmem>>) target_semaphore(%19 : memref<!tpu.dma_semaphore, #tpu.memory_space<semaphore_mem>>)
    %c4 = arith.constant 4 : index
    %20 = memref.load %arg0[%c4] : memref<8xi32, #tpu.memory_space<smem>>
    %c4_i32 = arith.constant 4 : i32
    %c0_i32_12 = arith.constant 0 : i32
    %21 = tpu.memref_slice %arg4[%20, %c0_i32_12] : memref<64x128xf32, #tpu.memory_space<any>> -> memref<1x128xf32, #tpu.memory_space<any>>
    %c4_i32_13 = arith.constant 4 : i32
    %c0_i32_14 = arith.constant 0 : i32
    %22 = tpu.memref_slice %arg22[%c4_i32_13, %c0_i32_14] : memref<8x128xf32, #tpu.memory_space<vmem>> -> memref<1x128xf32, #tpu.memory_space<vmem>>
    %23 = tpu.memref_slice %arg23[%c4_i32] : memref<8x!tpu.dma_semaphore, #tpu.memory_space<semaphore_mem>> -> memref<1x!tpu.dma_semaphore, #tpu.memory_space<semaphore_mem>>
    %24 = tpu.memref_squeeze %23 : memref<1x!tpu.dma_semaphore, #tpu.memory_space<semaphore_mem>> -> memref<!tpu.dma_semaphore, #tpu.memory_space<semaphore_mem>>
    tpu.enqueue_dma source(%21 : memref<1x128xf32, #tpu.memory_space<any>>) target(%22 : memref<1x128xf32, #tpu.memory_space<vmem>>) target_semaphore(%24 : memref<!tpu.dma_semaphore, #tpu.memory_space<semaphore_mem>>)
    %c5 = arith.constant 5 : index
    %25 = memref.load %arg0[%c5] : memref<8xi32, #tpu.memory_space<smem>>
    %c5_i32 = arith.constant 5 : i32
    %c0_i32_15 = arith.constant 0 : i32
    %26 = tpu.memref_slice %arg4[%25, %c0_i32_15] : memref<64x128xf32, #tpu.memory_space<any>> -> memref<1x128xf32, #tpu.memory_space<any>>
    %c5_i32_16 = arith.constant 5 : i32
    %c0_i32_17 = arith.constant 0 : i32
    %27 = tpu.memref_slice %arg22[%c5_i32_16, %c0_i32_17] : memref<8x128xf32, #tpu.memory_space<vmem>> -> memref<1x128xf32, #tpu.memory_space<vmem>>
    %28 = tpu.memref_slice %arg23[%c5_i32] : memref<8x!tpu.dma_semaphore, #tpu.memory_space<semaphore_mem>> -> memref<1x!tpu.dma_semaphore, #tpu.memory_space<semaphore_mem>>
    %29 = tpu.memref_squeeze %28 : memref<1x!tpu.dma_semaphore, #tpu.memory_space<semaphore_mem>> -> memref<!tpu.dma_semaphore, #tpu.memory_space<semaphore_mem>>
    tpu.enqueue_dma source(%26 : memref<1x128xf32, #tpu.memory_space<any>>) target(%27 : memref<1x128xf32, #tpu.memory_space<vmem>>) target_semaphore(%29 : memref<!tpu.dma_semaphore, #tpu.memory_space<semaphore_mem>>)
    %c6 = arith.constant 6 : index
    %30 = memref.load %arg0[%c6] : memref<8xi32, #tpu.memory_space<smem>>
    %c6_i32 = arith.constant 6 : i32
    %c0_i32_18 = arith.constant 0 : i32
    %31 = tpu.memref_slice %arg4[%30, %c0_i32_18] : memref<64x128xf32, #tpu.memory_space<any>> -> memref<1x128xf32, #tpu.memory_space<any>>
    %c6_i32_19 = arith.constant 6 : i32
    %c0_i32_20 = arith.constant 0 : i32
    %32 = tpu.memref_slice %arg22[%c6_i32_19, %c0_i32_20] : memref<8x128xf32, #tpu.memory_space<vmem>> -> memref<1x128xf32, #tpu.memory_space<vmem>>
    %33 = tpu.memref_slice %arg23[%c6_i32] : memref<8x!tpu.dma_semaphore, #tpu.memory_space<semaphore_mem>> -> memref<1x!tpu.dma_semaphore, #tpu.memory_space<semaphore_mem>>
    %34 = tpu.memref_squeeze %33 : memref<1x!tpu.dma_semaphore, #tpu.memory_space<semaphore_mem>> -> memref<!tpu.dma_semaphore, #tpu.memory_space<semaphore_mem>>
    tpu.enqueue_dma source(%31 : memref<1x128xf32, #tpu.memory_space<any>>) target(%32 : memref<1x128xf32, #tpu.memory_space<vmem>>) target_semaphore(%34 : memref<!tpu.dma_semaphore, #tpu.memory_space<semaphore_mem>>)
    %c7 = arith.constant 7 : index
    %35 = memref.load %arg0[%c7] : memref<8xi32, #tpu.memory_space<smem>>
    %c7_i32 = arith.constant 7 : i32
    %c0_i32_21 = arith.constant 0 : i32
    %36 = tpu.memref_slice %arg4[%35, %c0_i32_21] : memref<64x128xf32, #tpu.memory_space<any>> -> memref<1x128xf32, #tpu.memory_space<any>>
    %c7_i32_22 = arith.constant 7 : i32
    %c0_i32_23 = arith.constant 0 : i32
    %37 = tpu.memref_slice %arg22[%c7_i32_22, %c0_i32_23] : memref<8x128xf32, #tpu.memory_space<vmem>> -> memref<1x128xf32, #tpu.memory_space<vmem>>
    %38 = tpu.memref_slice %arg23[%c7_i32] : memref<8x!tpu.dma_semaphore, #tpu.memory_space<semaphore_mem>> -> memref<1x!tpu.dma_semaphore, #tpu.memory_space<semaphore_mem>>
    %39 = tpu.memref_squeeze %38 : memref<1x!tpu.dma_semaphore, #tpu.memory_space<semaphore_mem>> -> memref<!tpu.dma_semaphore, #tpu.memory_space<semaphore_mem>>
    tpu.enqueue_dma source(%36 : memref<1x128xf32, #tpu.memory_space<any>>) target(%37 : memref<1x128xf32, #tpu.memory_space<vmem>>) target_semaphore(%39 : memref<!tpu.dma_semaphore, #tpu.memory_space<semaphore_mem>>)
    %c0_24 = arith.constant 0 : index
    %40 = memref.load %arg0[%c0_24] : memref<8xi32, #tpu.memory_space<smem>>
    %c0_i32_25 = arith.constant 0 : i32
    %c0_i32_26 = arith.constant 0 : i32
    %41 = tpu.memref_slice %arg4[%40, %c0_i32_26] : memref<64x128xf32, #tpu.memory_space<any>> -> memref<1x128xf32, #tpu.memory_space<any>>
    %c0_i32_27 = arith.constant 0 : i32
    %c0_i32_28 = arith.constant 0 : i32
    %42 = tpu.memref_slice %arg22[%c0_i32_27, %c0_i32_28] : memref<8x128xf32, #tpu.memory_space<vmem>> -> memref<1x128xf32, #tpu.memory_space<vmem>>
    %43 = tpu.memref_slice %arg23[%c0_i32_25] : memref<8x!tpu.dma_semaphore, #tpu.memory_space<semaphore_mem>> -> memref<1x!tpu.dma_semaphore, #tpu.memory_space<semaphore_mem>>
    %44 = tpu.memref_squeeze %43 : memref<1x!tpu.dma_semaphore, #tpu.memory_space<semaphore_mem>> -> memref<!tpu.dma_semaphore, #tpu.memory_space<semaphore_mem>>
    tpu.wait_dma2 semaphore(%44 : memref<!tpu.dma_semaphore, #tpu.memory_space<semaphore_mem>>) src(%41 : memref<1x128xf32, #tpu.memory_space<any>>) dst(%42 : memref<1x128xf32, #tpu.memory_space<vmem>>)
    %c1_29 = arith.constant 1 : index
    %45 = memref.load %arg0[%c1_29] : memref<8xi32, #tpu.memory_space<smem>>
    %c1_i32_30 = arith.constant 1 : i32
    %c0_i32_31 = arith.constant 0 : i32
    %46 = tpu.memref_slice %arg4[%45, %c0_i32_31] : memref<64x128xf32, #tpu.memory_space<any>> -> memref<1x128xf32, #tpu.memory_space<any>>
    %c1_i32_32 = arith.constant 1 : i32
    %c0_i32_33 = arith.constant 0 : i32
    %47 = tpu.memref_slice %arg22[%c1_i32_32, %c0_i32_33] : memref<8x128xf32, #tpu.memory_space<vmem>> -> memref<1x128xf32, #tpu.memory_space<vmem>>
    %48 = tpu.memref_slice %arg23[%c1_i32_30] : memref<8x!tpu.dma_semaphore, #tpu.memory_space<semaphore_mem>> -> memref<1x!tpu.dma_semaphore, #tpu.memory_space<semaphore_mem>>
    %49 = tpu.memref_squeeze %48 : memref<1x!tpu.dma_semaphore, #tpu.memory_space<semaphore_mem>> -> memref<!tpu.dma_semaphore, #tpu.memory_space<semaphore_mem>>
    tpu.wait_dma2 semaphore(%49 : memref<!tpu.dma_semaphore, #tpu.memory_space<semaphore_mem>>) src(%46 : memref<1x128xf32, #tpu.memory_space<any>>) dst(%47 : memref<1x128xf32, #tpu.memory_space<vmem>>)
    %c2_34 = arith.constant 2 : index
    %50 = memref.load %arg0[%c2_34] : memref<8xi32, #tpu.memory_space<smem>>
    %c2_i32_35 = arith.constant 2 : i32
    %c0_i32_36 = arith.constant 0 : i32
    %51 = tpu.memref_slice %arg4[%50, %c0_i32_36] : memref<64x128xf32, #tpu.memory_space<any>> -> memref<1x128xf32, #tpu.memory_space<any>>
    %c2_i32_37 = arith.constant 2 : i32
    %c0_i32_38 = arith.constant 0 : i32
    %52 = tpu.memref_slice %arg22[%c2_i32_37, %c0_i32_38] : memref<8x128xf32, #tpu.memory_space<vmem>> -> memref<1x128xf32, #tpu.memory_space<vmem>>
    %53 = tpu.memref_slice %arg23[%c2_i32_35] : memref<8x!tpu.dma_semaphore, #tpu.memory_space<semaphore_mem>> -> memref<1x!tpu.dma_semaphore, #tpu.memory_space<semaphore_mem>>
    %54 = tpu.memref_squeeze %53 : memref<1x!tpu.dma_semaphore, #tpu.memory_space<semaphore_mem>> -> memref<!tpu.dma_semaphore, #tpu.memory_space<semaphore_mem>>
    tpu.wait_dma2 semaphore(%54 : memref<!tpu.dma_semaphore, #tpu.memory_space<semaphore_mem>>) src(%51 : memref<1x128xf32, #tpu.memory_space<any>>) dst(%52 : memref<1x128xf32, #tpu.memory_space<vmem>>)
    %c3_39 = arith.constant 3 : index
    %55 = memref.load %arg0[%c3_39] : memref<8xi32, #tpu.memory_space<smem>>
    %c3_i32_40 = arith.constant 3 : i32
    %c0_i32_41 = arith.constant 0 : i32
    %56 = tpu.memref_slice %arg4[%55, %c0_i32_41] : memref<64x128xf32, #tpu.memory_space<any>> -> memref<1x128xf32, #tpu.memory_space<any>>
    %c3_i32_42 = arith.constant 3 : i32
    %c0_i32_43 = arith.constant 0 : i32
    %57 = tpu.memref_slice %arg22[%c3_i32_42, %c0_i32_43] : memref<8x128xf32, #tpu.memory_space<vmem>> -> memref<1x128xf32, #tpu.memory_space<vmem>>
    %58 = tpu.memref_slice %arg23[%c3_i32_40] : memref<8x!tpu.dma_semaphore, #tpu.memory_space<semaphore_mem>> -> memref<1x!tpu.dma_semaphore, #tpu.memory_space<semaphore_mem>>
    %59 = tpu.memref_squeeze %58 : memref<1x!tpu.dma_semaphore, #tpu.memory_space<semaphore_mem>> -> memref<!tpu.dma_semaphore, #tpu.memory_space<semaphore_mem>>
    tpu.wait_dma2 semaphore(%59 : memref<!tpu.dma_semaphore, #tpu.memory_space<semaphore_mem>>) src(%56 : memref<1x128xf32, #tpu.memory_space<any>>) dst(%57 : memref<1x128xf32, #tpu.memory_space<vmem>>)
    %c4_44 = arith.constant 4 : index
    %60 = memref.load %arg0[%c4_44] : memref<8xi32, #tpu.memory_space<smem>>
    %c4_i32_45 = arith.constant 4 : i32
    %c0_i32_46 = arith.constant 0 : i32
    %61 = tpu.memref_slice %arg4[%60, %c0_i32_46] : memref<64x128xf32, #tpu.memory_space<any>> -> memref<1x128xf32, #tpu.memory_space<any>>
    %c4_i32_47 = arith.constant 4 : i32
    %c0_i32_48 = arith.constant 0 : i32
    %62 = tpu.memref_slice %arg22[%c4_i32_47, %c0_i32_48] : memref<8x128xf32, #tpu.memory_space<vmem>> -> memref<1x128xf32, #tpu.memory_space<vmem>>
    %63 = tpu.memref_slice %arg23[%c4_i32_45] : memref<8x!tpu.dma_semaphore, #tpu.memory_space<semaphore_mem>> -> memref<1x!tpu.dma_semaphore, #tpu.memory_space<semaphore_mem>>
    %64 = tpu.memref_squeeze %63 : memref<1x!tpu.dma_semaphore, #tpu.memory_space<semaphore_mem>> -> memref<!tpu.dma_semaphore, #tpu.memory_space<semaphore_mem>>
    tpu.wait_dma2 semaphore(%64 : memref<!tpu.dma_semaphore, #tpu.memory_space<semaphore_mem>>) src(%61 : memref<1x128xf32, #tpu.memory_space<any>>) dst(%62 : memref<1x128xf32, #tpu.memory_space<vmem>>)
    %c5_49 = arith.constant 5 : index
    %65 = memref.load %arg0[%c5_49] : memref<8xi32, #tpu.memory_space<smem>>
    %c5_i32_50 = arith.constant 5 : i32
    %c0_i32_51 = arith.constant 0 : i32
    %66 = tpu.memref_slice %arg4[%65, %c0_i32_51] : memref<64x128xf32, #tpu.memory_space<any>> -> memref<1x128xf32, #tpu.memory_space<any>>
    %c5_i32_52 = arith.constant 5 : i32
    %c0_i32_53 = arith.constant 0 : i32
    %67 = tpu.memref_slice %arg22[%c5_i32_52, %c0_i32_53] : memref<8x128xf32, #tpu.memory_space<vmem>> -> memref<1x128xf32, #tpu.memory_space<vmem>>
    %68 = tpu.memref_slice %arg23[%c5_i32_50] : memref<8x!tpu.dma_semaphore, #tpu.memory_space<semaphore_mem>> -> memref<1x!tpu.dma_semaphore, #tpu.memory_space<semaphore_mem>>
    %69 = tpu.memref_squeeze %68 : memref<1x!tpu.dma_semaphore, #tpu.memory_space<semaphore_mem>> -> memref<!tpu.dma_semaphore, #tpu.memory_space<semaphore_mem>>
    tpu.wait_dma2 semaphore(%69 : memref<!tpu.dma_semaphore, #tpu.memory_space<semaphore_mem>>) src(%66 : memref<1x128xf32, #tpu.memory_space<any>>) dst(%67 : memref<1x128xf32, #tpu.memory_space<vmem>>)
    %c6_54 = arith.constant 6 : index
    %70 = memref.load %arg0[%c6_54] : memref<8xi32, #tpu.memory_space<smem>>
    %c6_i32_55 = arith.constant 6 : i32
    %c0_i32_56 = arith.constant 0 : i32
    %71 = tpu.memref_slice %arg4[%70, %c0_i32_56] : memref<64x128xf32, #tpu.memory_space<any>> -> memref<1x128xf32, #tpu.memory_space<any>>
    %c6_i32_57 = arith.constant 6 : i32
    %c0_i32_58 = arith.constant 0 : i32
    %72 = tpu.memref_slice %arg22[%c6_i32_57, %c0_i32_58] : memref<8x128xf32, #tpu.memory_space<vmem>> -> memref<1x128xf32, #tpu.memory_space<vmem>>
    %73 = tpu.memref_slice %arg23[%c6_i32_55] : memref<8x!tpu.dma_semaphore, #tpu.memory_space<semaphore_mem>> -> memref<1x!tpu.dma_semaphore, #tpu.memory_space<semaphore_mem>>
    %74 = tpu.memref_squeeze %73 : memref<1x!tpu.dma_semaphore, #tpu.memory_space<semaphore_mem>> -> memref<!tpu.dma_semaphore, #tpu.memory_space<semaphore_mem>>
    tpu.wait_dma2 semaphore(%74 : memref<!tpu.dma_semaphore, #tpu.memory_space<semaphore_mem>>) src(%71 : memref<1x128xf32, #tpu.memory_space<any>>) dst(%72 : memref<1x128xf32, #tpu.memory_space<vmem>>)
    %c7_59 = arith.constant 7 : index
    %75 = memref.load %arg0[%c7_59] : memref<8xi32, #tpu.memory_space<smem>>
    %c7_i32_60 = arith.constant 7 : i32
    %c0_i32_61 = arith.constant 0 : i32
    %76 = tpu.memref_slice %arg4[%75, %c0_i32_61] : memref<64x128xf32, #tpu.memory_space<any>> -> memref<1x128xf32, #tpu.memory_space<any>>
    %c7_i32_62 = arith.constant 7 : i32
    %c0_i32_63 = arith.constant 0 : i32
    %77 = tpu.memref_slice %arg22[%c7_i32_62, %c0_i32_63] : memref<8x128xf32, #tpu.memory_space<vmem>> -> memref<1x128xf32, #tpu.memory_space<vmem>>
    %78 = tpu.memref_slice %arg23[%c7_i32_60] : memref<8x!tpu.dma_semaphore, #tpu.memory_space<semaphore_mem>> -> memref<1x!tpu.dma_semaphore, #tpu.memory_space<semaphore_mem>>
    %79 = tpu.memref_squeeze %78 : memref<1x!tpu.dma_semaphore, #tpu.memory_space<semaphore_mem>> -> memref<!tpu.dma_semaphore, #tpu.memory_space<semaphore_mem>>
    tpu.wait_dma2 semaphore(%79 : memref<!tpu.dma_semaphore, #tpu.memory_space<semaphore_mem>>) src(%76 : memref<1x128xf32, #tpu.memory_space<any>>) dst(%77 : memref<1x128xf32, #tpu.memory_space<vmem>>)
    %c0_64 = arith.constant 0 : index
    %c0_65 = arith.constant 0 : index
    %80 = vector.load %arg22[%c0_64, %c0_65] : memref<8x128xf32, #tpu.memory_space<vmem>>, vector<8x128xf32>
    %cst = arith.constant 0.000000e+00 : f32
    %81 = vector.broadcast %cst : f32 to vector<8x128xf32>
    %82 = arith.maximumf %80, %81 : vector<8x128xf32>
    %c0_66 = arith.constant 0 : index
    %c0_67 = arith.constant 0 : index
    %83 = vector.load %arg1[%c0_66, %c0_67] : memref<8x128xf32, #tpu.memory_space<vmem>>, vector<8x128xf32>
    %c0_68 = arith.constant 0 : index
    %c0_69 = arith.constant 0 : index
    %84 = vector.load %arg5[%c0_68, %c0_69] : memref<128x128xbf16, #tpu.memory_space<vmem>>, vector<128x128xbf16>
    %c0_70 = arith.constant 0 : index
    %c0_71 = arith.constant 0 : index
    %85 = vector.load %arg6[%c0_70, %c0_71] : memref<1x128xf32, #tpu.memory_space<vmem>>, vector<1x128xf32>
    %86 = arith.truncf %83 : vector<8x128xf32> to vector<8x128xbf16>
    %cst_72 = arith.constant dense<0.000000e+00> : vector<8x128xf32>
    %87 = tpu.matmul %86, %84, %cst_72 {dimension_numbers = #tpu.dot_dimension_numbers<[1], [0], [0], [1], [0, 0, 1, 1], [], []>} : vector<8x128xbf16>, vector<128x128xbf16>, vector<8x128xf32> -> vector<8x128xf32>
    %88 = vector.broadcast %85 : vector<1x128xf32> to vector<8x128xf32>
    %89 = arith.addf %87, %88 : vector<8x128xf32>
    %cst_73 = arith.constant 0.000000e+00 : f32
    %90 = vector.broadcast %cst_73 : f32 to vector<8x128xf32>
    %91 = arith.maximumf %89, %90 : vector<8x128xf32>
    %c0_74 = arith.constant 0 : index
    %c0_75 = arith.constant 0 : index
    %92 = vector.load %arg2[%c0_74, %c0_75] : memref<8x128xf32, #tpu.memory_space<vmem>>, vector<8x128xf32>
    %93 = arith.addf %91, %92 : vector<8x128xf32>
    %c0_76 = arith.constant 0 : index
    %c0_77 = arith.constant 0 : index
    %94 = vector.load %arg7[%c0_76, %c0_77] : memref<128x128xbf16, #tpu.memory_space<vmem>>, vector<128x128xbf16>
    %c0_78 = arith.constant 0 : index
    %c0_79 = arith.constant 0 : index
    %95 = vector.load %arg8[%c0_78, %c0_79] : memref<1x128xf32, #tpu.memory_space<vmem>>, vector<1x128xf32>
    %96 = arith.truncf %93 : vector<8x128xf32> to vector<8x128xbf16>
    %cst_80 = arith.constant dense<0.000000e+00> : vector<8x128xf32>
    %97 = tpu.matmul %96, %94, %cst_80 {dimension_numbers = #tpu.dot_dimension_numbers<[1], [0], [0], [1], [0, 0, 1, 1], [], []>} : vector<8x128xbf16>, vector<128x128xbf16>, vector<8x128xf32> -> vector<8x128xf32>
    %98 = vector.broadcast %95 : vector<1x128xf32> to vector<8x128xf32>
    %99 = arith.addf %97, %98 : vector<8x128xf32>
    %cst_81 = arith.constant 0.000000e+00 : f32
    %100 = vector.broadcast %cst_81 : f32 to vector<8x128xf32>
    %101 = arith.maximumf %99, %100 : vector<8x128xf32>
    %c0_82 = arith.constant 0 : index
    %c0_83 = arith.constant 0 : index
    %102 = vector.load %arg9[%c0_82, %c0_83] : memref<128x128xbf16, #tpu.memory_space<vmem>>, vector<128x128xbf16>
    %c0_84 = arith.constant 0 : index
    %c0_85 = arith.constant 0 : index
    %103 = vector.load %arg10[%c0_84, %c0_85] : memref<1x128xf32, #tpu.memory_space<vmem>>, vector<1x128xf32>
    %104 = arith.truncf %101 : vector<8x128xf32> to vector<8x128xbf16>
    %cst_86 = arith.constant dense<0.000000e+00> : vector<8x128xf32>
    %105 = tpu.matmul %104, %102, %cst_86 {dimension_numbers = #tpu.dot_dimension_numbers<[1], [0], [0], [1], [0, 0, 1, 1], [], []>} : vector<8x128xbf16>, vector<128x128xbf16>, vector<8x128xf32> -> vector<8x128xf32>
    %106 = vector.broadcast %103 : vector<1x128xf32> to vector<8x128xf32>
    %107 = arith.addf %105, %106 : vector<8x128xf32>
    %cst_87 = arith.constant 0.000000e+00 : f32
    %108 = vector.broadcast %cst_87 : f32 to vector<8x128xf32>
    %109 = arith.maximumf %107, %108 : vector<8x128xf32>
    %c0_88 = arith.constant 0 : index
    %c0_89 = arith.constant 0 : index
    %110 = vector.load %arg11[%c0_88, %c0_89] : memref<128x128xbf16, #tpu.memory_space<vmem>>, vector<128x128xbf16>
    %c0_90 = arith.constant 0 : index
    %c0_91 = arith.constant 0 : index
    %111 = vector.load %arg12[%c0_90, %c0_91] : memref<1x128xf32, #tpu.memory_space<vmem>>, vector<1x128xf32>
    %112 = arith.truncf %109 : vector<8x128xf32> to vector<8x128xbf16>
    %cst_92 = arith.constant dense<0.000000e+00> : vector<8x128xf32>
    %113 = tpu.matmul %112, %110, %cst_92 {dimension_numbers = #tpu.dot_dimension_numbers<[1], [0], [0], [1], [0, 0, 1, 1], [], []>} : vector<8x128xbf16>, vector<128x128xbf16>, vector<8x128xf32> -> vector<8x128xf32>
    %114 = vector.broadcast %111 : vector<1x128xf32> to vector<8x128xf32>
    %115 = arith.addf %113, %114 : vector<8x128xf32>
    %cst_93 = arith.constant 0.000000e+00 : f32
    %116 = vector.broadcast %cst_93 : f32 to vector<8x128xf32>
    %117 = arith.maximumf %115, %116 : vector<8x128xf32>
    %c0_94 = arith.constant 0 : index
    %c0_95 = arith.constant 0 : index
    %118 = vector.load %arg15[%c0_94, %c0_95] : memref<128x384xbf16, #tpu.memory_space<vmem>>, vector<128x384xbf16>
    %c0_96 = arith.constant 0 : index
    %c0_97 = arith.constant 0 : index
    %c0_98 = arith.constant 0 : index
    %119 = vector.load %arg3[%c0_96, %c0_97, %c0_98] : memref<8x8x128xf32, #tpu.memory_space<vmem>>, vector<1x8x128xf32>
    %120 = vector.shape_cast %119 : vector<1x8x128xf32> to vector<8x128xf32>
    %121 = arith.addf %120, %117 : vector<8x128xf32>
    %122 = arith.truncf %82 : vector<8x128xf32> to vector<8x128xbf16>
    %cst_99 = arith.constant dense<0.000000e+00> : vector<8x384xf32>
    %123 = tpu.matmul %122, %118, %cst_99 {dimension_numbers = #tpu.dot_dimension_numbers<[1], [0], [0], [1], [0, 0, 1, 1], [], []>} : vector<8x128xbf16>, vector<128x384xbf16>, vector<8x384xf32> -> vector<8x384xf32>
    %c0_100 = arith.constant 0 : index
    %c0_101 = arith.constant 0 : index
    %c0_102 = arith.constant 0 : index
    %124 = vector.load %arg18[%c0_100, %c0_101, %c0_102] : memref<8x1x384xf32, #tpu.memory_space<vmem>>, vector<1x1x384xf32>
    %125 = vector.shape_cast %124 : vector<1x1x384xf32> to vector<1x384xf32>
    %126 = vector.broadcast %125 : vector<1x384xf32> to vector<8x384xf32>
    %127 = arith.addf %123, %126 : vector<8x384xf32>
    %c0_103 = arith.constant 0 : index
    %c0_104 = arith.constant 0 : index
    %c0_105 = arith.constant 0 : index
    %128 = vector.load %arg17[%c0_103, %c0_104, %c0_105] : memref<8x128x384xbf16, #tpu.memory_space<vmem>>, vector<1x128x384xbf16>
    %129 = vector.shape_cast %128 : vector<1x128x384xbf16> to vector<128x384xbf16>
    %130 = arith.truncf %121 : vector<8x128xf32> to vector<8x128xbf16>
    %cst_106 = arith.constant dense<0.000000e+00> : vector<8x384xf32>
    %131 = tpu.matmul %130, %129, %cst_106 {dimension_numbers = #tpu.dot_dimension_numbers<[1], [0], [0], [1], [0, 0, 1, 1], [], []>} : vector<8x128xbf16>, vector<128x384xbf16>, vector<8x384xf32> -> vector<8x384xf32>
    %c0_107 = arith.constant 0 : index
    %c0_108 = arith.constant 0 : index
    %c0_109 = arith.constant 0 : index
    %132 = vector.load %arg19[%c0_107, %c0_108, %c0_109] : memref<8x1x384xf32, #tpu.memory_space<vmem>>, vector<1x1x384xf32>
    %133 = vector.shape_cast %132 : vector<1x1x384xf32> to vector<1x384xf32>
    %134 = vector.broadcast %133 : vector<1x384xf32> to vector<8x384xf32>
    %135 = arith.addf %131, %134 : vector<8x384xf32>
    %136 = vector.extract_strided_slice %127 {offsets = [0, 0], sizes = [8, 128], strides = [1, 1]} : vector<8x384xf32> to vector<8x128xf32>
    %137 = vector.extract_strided_slice %135 {offsets = [0, 0], sizes = [8, 128], strides = [1, 1]} : vector<8x384xf32> to vector<8x128xf32>
    %138 = arith.addf %136, %137 : vector<8x128xf32>
    %139 = arith.negf %138 : vector<8x128xf32>
    %140 = math.exp %139 : vector<8x128xf32>
    %cst_110 = arith.constant 1.000000e+00 : f32
    %141 = vector.broadcast %cst_110 : f32 to vector<8x128xf32>
    %142 = arith.addf %141, %140 : vector<8x128xf32>
    %143 = arith.divf %141, %142 : vector<8x128xf32>
    %144 = vector.extract_strided_slice %127 {offsets = [0, 128], sizes = [8, 128], strides = [1, 1]} : vector<8x384xf32> to vector<8x128xf32>
    %145 = vector.extract_strided_slice %135 {offsets = [0, 128], sizes = [8, 128], strides = [1, 1]} : vector<8x384xf32> to vector<8x128xf32>
    %146 = arith.addf %144, %145 : vector<8x128xf32>
    %147 = arith.negf %146 : vector<8x128xf32>
    %148 = math.exp %147 : vector<8x128xf32>
    %cst_111 = arith.constant 1.000000e+00 : f32
    %149 = vector.broadcast %cst_111 : f32 to vector<8x128xf32>
    %150 = arith.addf %149, %148 : vector<8x128xf32>
    %151 = arith.divf %149, %150 : vector<8x128xf32>
    %152 = vector.extract_strided_slice %127 {offsets = [0, 256], sizes = [8, 128], strides = [1, 1]} : vector<8x384xf32> to vector<8x128xf32>
    %153 = vector.extract_strided_slice %135 {offsets = [0, 256], sizes = [8, 128], strides = [1, 1]} : vector<8x384xf32> to vector<8x128xf32>
    %154 = arith.mulf %143, %153 : vector<8x128xf32>
    %155 = arith.addf %152, %154 : vector<8x128xf32>
    %156 = math.tanh %155 : vector<8x128xf32>
    %cst_112 = arith.constant 1.000000e+00 : f32
    %157 = vector.broadcast %cst_112 : f32 to vector<8x128xf32>
    %158 = arith.subf %157, %151 : vector<8x128xf32>
    %159 = arith.mulf %158, %156 : vector<8x128xf32>
    %160 = arith.mulf %151, %121 : vector<8x128xf32>
    %161 = arith.addf %159, %160 : vector<8x128xf32>
    %c0_113 = arith.constant 0 : index
    %c0_114 = arith.constant 0 : index
    %c0_115 = arith.constant 0 : index
    %162 = vector.load %arg21[%c0_113, %c0_114, %c0_115] : memref<8x8x128xf32, #tpu.memory_space<vmem>>, vector<1x8x128xf32>
    %163 = vector.shape_cast %162 : vector<1x8x128xf32> to vector<8x128xf32>
    %164 = vector.shape_cast %161 : vector<8x128xf32> to vector<1x8x128xf32>
    tpu.vector_store %arg21[%c0_113, %c0_114, %c0_115], %164 {strides = array<i32>} : memref<8x8x128xf32, #tpu.memory_space<vmem>>, vector<1x8x128xf32>,
    %c0_116 = arith.constant 0 : index
    %c0_117 = arith.constant 0 : index
    %c0_118 = arith.constant 0 : index
    %165 = vector.load %arg16[%c0_116, %c0_117, %c0_118] : memref<7x128x384xbf16, #tpu.memory_space<vmem>>, vector<1x128x384xbf16>
    %166 = vector.shape_cast %165 : vector<1x128x384xbf16> to vector<128x384xbf16>
    %c1_119 = arith.constant 1 : index
    %c0_120 = arith.constant 0 : index
    %c0_121 = arith.constant 0 : index
    %167 = vector.load %arg3[%c1_119, %c0_120, %c0_121] : memref<8x8x128xf32, #tpu.memory_space<vmem>>, vector<1x8x128xf32>
    %168 = vector.shape_cast %167 : vector<1x8x128xf32> to vector<8x128xf32>
    %169 = arith.addf %168, %117 : vector<8x128xf32>
    %170 = arith.truncf %161 : vector<8x128xf32> to vector<8x128xbf16>
    %cst_122 = arith.constant dense<0.000000e+00> : vector<8x384xf32>
    %171 = tpu.matmul %170, %166, %cst_122 {dimension_numbers = #tpu.dot_dimension_numbers<[1], [0], [0], [1], [0, 0, 1, 1], [], []>} : vector<8x128xbf16>, vector<128x384xbf16>, vector<8x384xf32> -> vector<8x384xf32>
    %c1_123 = arith.constant 1 : index
    %c0_124 = arith.constant 0 : index
    %c0_125 = arith.constant 0 : index
    %172 = vector.load %arg18[%c1_123, %c0_124, %c0_125] : memref<8x1x384xf32, #tpu.memory_space<vmem>>, vector<1x1x384xf32>
    %173 = vector.shape_cast %172 : vector<1x1x384xf32> to vector<1x384xf32>
    %174 = vector.broadcast %173 : vector<1x384xf32> to vector<8x384xf32>
    %175 = arith.addf %171, %174 : vector<8x384xf32>
    %c1_126 = arith.constant 1 : index
    %c0_127 = arith.constant 0 : index
    %c0_128 = arith.constant 0 : index
    %176 = vector.load %arg17[%c1_126, %c0_127, %c0_128] : memref<8x128x384xbf16, #tpu.memory_space<vmem>>, vector<1x128x384xbf16>
    %177 = vector.shape_cast %176 : vector<1x128x384xbf16> to vector<128x384xbf16>
    %178 = arith.truncf %169 : vector<8x128xf32> to vector<8x128xbf16>
    %cst_129 = arith.constant dense<0.000000e+00> : vector<8x384xf32>
    %179 = tpu.matmul %178, %177, %cst_129 {dimension_numbers = #tpu.dot_dimension_numbers<[1], [0], [0], [1], [0, 0, 1, 1], [], []>} : vector<8x128xbf16>, vector<128x384xbf16>, vector<8x384xf32> -> vector<8x384xf32>
    %c1_130 = arith.constant 1 : index
    %c0_131 = arith.constant 0 : index
    %c0_132 = arith.constant 0 : index
    %180 = vector.load %arg19[%c1_130, %c0_131, %c0_132] : memref<8x1x384xf32, #tpu.memory_space<vmem>>, vector<1x1x384xf32>
    %181 = vector.shape_cast %180 : vector<1x1x384xf32> to vector<1x384xf32>
    %182 = vector.broadcast %181 : vector<1x384xf32> to vector<8x384xf32>
    %183 = arith.addf %179, %182 : vector<8x384xf32>
    %184 = vector.extract_strided_slice %175 {offsets = [0, 0], sizes = [8, 128], strides = [1, 1]} : vector<8x384xf32> to vector<8x128xf32>
    %185 = vector.extract_strided_slice %183 {offsets = [0, 0], sizes = [8, 128], strides = [1, 1]} : vector<8x384xf32> to vector<8x128xf32>
    %186 = arith.addf %184, %185 : vector<8x128xf32>
    %187 = arith.negf %186 : vector<8x128xf32>
    %188 = math.exp %187 : vector<8x128xf32>
    %cst_133 = arith.constant 1.000000e+00 : f32
    %189 = vector.broadcast %cst_133 : f32 to vector<8x128xf32>
    %190 = arith.addf %189, %188 : vector<8x128xf32>
    %191 = arith.divf %189, %190 : vector<8x128xf32>
    %192 = vector.extract_strided_slice %175 {offsets = [0, 128], sizes = [8, 128], strides = [1, 1]} : vector<8x384xf32> to vector<8x128xf32>
    %193 = vector.extract_strided_slice %183 {offsets = [0, 128], sizes = [8, 128], strides = [1, 1]} : vector<8x384xf32> to vector<8x128xf32>
    %194 = arith.addf %192, %193 : vector<8x128xf32>
    %195 = arith.negf %194 : vector<8x128xf32>
    %196 = math.exp %195 : vector<8x128xf32>
    %cst_134 = arith.constant 1.000000e+00 : f32
    %197 = vector.broadcast %cst_134 : f32 to vector<8x128xf32>
    %198 = arith.addf %197, %196 : vector<8x128xf32>
    %199 = arith.divf %197, %198 : vector<8x128xf32>
    %200 = vector.extract_strided_slice %175 {offsets = [0, 256], sizes = [8, 128], strides = [1, 1]} : vector<8x384xf32> to vector<8x128xf32>
    %201 = vector.extract_strided_slice %183 {offsets = [0, 256], sizes = [8, 128], strides = [1, 1]} : vector<8x384xf32> to vector<8x128xf32>
    %202 = arith.mulf %191, %201 : vector<8x128xf32>
    %203 = arith.addf %200, %202 : vector<8x128xf32>
    %204 = math.tanh %203 : vector<8x128xf32>
    %cst_135 = arith.constant 1.000000e+00 : f32
    %205 = vector.broadcast %cst_135 : f32 to vector<8x128xf32>
    %206 = arith.subf %205, %199 : vector<8x128xf32>
    %207 = arith.mulf %206, %204 : vector<8x128xf32>
    %208 = arith.mulf %199, %169 : vector<8x128xf32>
    %209 = arith.addf %207, %208 : vector<8x128xf32>
    %c1_136 = arith.constant 1 : index
    %c0_137 = arith.constant 0 : index
    %c0_138 = arith.constant 0 : index
    %210 = vector.load %arg21[%c1_136, %c0_137, %c0_138] : memref<8x8x128xf32, #tpu.memory_space<vmem>>, vector<1x8x128xf32>
    %211 = vector.shape_cast %210 : vector<1x8x128xf32> to vector<8x128xf32>
    %212 = vector.shape_cast %209 : vector<8x128xf32> to vector<1x8x128xf32>
    tpu.vector_store %arg21[%c1_136, %c0_137, %c0_138], %212 {strides = array<i32>} : memref<8x8x128xf32, #tpu.memory_space<vmem>>, vector<1x8x128xf32>,
    %c1_139 = arith.constant 1 : index
    %c0_140 = arith.constant 0 : index
    %c0_141 = arith.constant 0 : index
    %213 = vector.load %arg16[%c1_139, %c0_140, %c0_141] : memref<7x128x384xbf16, #tpu.memory_space<vmem>>, vector<1x128x384xbf16>
    %214 = vector.shape_cast %213 : vector<1x128x384xbf16> to vector<128x384xbf16>
    %c2_142 = arith.constant 2 : index
    %c0_143 = arith.constant 0 : index
    %c0_144 = arith.constant 0 : index
    %215 = vector.load %arg3[%c2_142, %c0_143, %c0_144] : memref<8x8x128xf32, #tpu.memory_space<vmem>>, vector<1x8x128xf32>
    %216 = vector.shape_cast %215 : vector<1x8x128xf32> to vector<8x128xf32>
    %217 = arith.addf %216, %117 : vector<8x128xf32>
    %218 = arith.truncf %209 : vector<8x128xf32> to vector<8x128xbf16>
    %cst_145 = arith.constant dense<0.000000e+00> : vector<8x384xf32>
    %219 = tpu.matmul %218, %214, %cst_145 {dimension_numbers = #tpu.dot_dimension_numbers<[1], [0], [0], [1], [0, 0, 1, 1], [], []>} : vector<8x128xbf16>, vector<128x384xbf16>, vector<8x384xf32> -> vector<8x384xf32>
    %c2_146 = arith.constant 2 : index
    %c0_147 = arith.constant 0 : index
    %c0_148 = arith.constant 0 : index
    %220 = vector.load %arg18[%c2_146, %c0_147, %c0_148] : memref<8x1x384xf32, #tpu.memory_space<vmem>>, vector<1x1x384xf32>
    %221 = vector.shape_cast %220 : vector<1x1x384xf32> to vector<1x384xf32>
    %222 = vector.broadcast %221 : vector<1x384xf32> to vector<8x384xf32>
    %223 = arith.addf %219, %222 : vector<8x384xf32>
    %c2_149 = arith.constant 2 : index
    %c0_150 = arith.constant 0 : index
    %c0_151 = arith.constant 0 : index
    %224 = vector.load %arg17[%c2_149, %c0_150, %c0_151] : memref<8x128x384xbf16, #tpu.memory_space<vmem>>, vector<1x128x384xbf16>
    %225 = vector.shape_cast %224 : vector<1x128x384xbf16> to vector<128x384xbf16>
    %226 = arith.truncf %217 : vector<8x128xf32> to vector<8x128xbf16>
    %cst_152 = arith.constant dense<0.000000e+00> : vector<8x384xf32>
    %227 = tpu.matmul %226, %225, %cst_152 {dimension_numbers = #tpu.dot_dimension_numbers<[1], [0], [0], [1], [0, 0, 1, 1], [], []>} : vector<8x128xbf16>, vector<128x384xbf16>, vector<8x384xf32> -> vector<8x384xf32>
    %c2_153 = arith.constant 2 : index
    %c0_154 = arith.constant 0 : index
    %c0_155 = arith.constant 0 : index
    %228 = vector.load %arg19[%c2_153, %c0_154, %c0_155] : memref<8x1x384xf32, #tpu.memory_space<vmem>>, vector<1x1x384xf32>
    %229 = vector.shape_cast %228 : vector<1x1x384xf32> to vector<1x384xf32>
    %230 = vector.broadcast %229 : vector<1x384xf32> to vector<8x384xf32>
    %231 = arith.addf %227, %230 : vector<8x384xf32>
    %232 = vector.extract_strided_slice %223 {offsets = [0, 0], sizes = [8, 128], strides = [1, 1]} : vector<8x384xf32> to vector<8x128xf32>
    %233 = vector.extract_strided_slice %231 {offsets = [0, 0], sizes = [8, 128], strides = [1, 1]} : vector<8x384xf32> to vector<8x128xf32>
    %234 = arith.addf %232, %233 : vector<8x128xf32>
    %235 = arith.negf %234 : vector<8x128xf32>
    %236 = math.exp %235 : vector<8x128xf32>
    %cst_156 = arith.constant 1.000000e+00 : f32
    %237 = vector.broadcast %cst_156 : f32 to vector<8x128xf32>
    %238 = arith.addf %237, %236 : vector<8x128xf32>
    %239 = arith.divf %237, %238 : vector<8x128xf32>
    %240 = vector.extract_strided_slice %223 {offsets = [0, 128], sizes = [8, 128], strides = [1, 1]} : vector<8x384xf32> to vector<8x128xf32>
    %241 = vector.extract_strided_slice %231 {offsets = [0, 128], sizes = [8, 128], strides = [1, 1]} : vector<8x384xf32> to vector<8x128xf32>
    %242 = arith.addf %240, %241 : vector<8x128xf32>
    %243 = arith.negf %242 : vector<8x128xf32>
    %244 = math.exp %243 : vector<8x128xf32>
    %cst_157 = arith.constant 1.000000e+00 : f32
    %245 = vector.broadcast %cst_157 : f32 to vector<8x128xf32>
    %246 = arith.addf %245, %244 : vector<8x128xf32>
    %247 = arith.divf %245, %246 : vector<8x128xf32>
    %248 = vector.extract_strided_slice %223 {offsets = [0, 256], sizes = [8, 128], strides = [1, 1]} : vector<8x384xf32> to vector<8x128xf32>
    %249 = vector.extract_strided_slice %231 {offsets = [0, 256], sizes = [8, 128], strides = [1, 1]} : vector<8x384xf32> to vector<8x128xf32>
    %250 = arith.mulf %239, %249 : vector<8x128xf32>
    %251 = arith.addf %248, %250 : vector<8x128xf32>
    %252 = math.tanh %251 : vector<8x128xf32>
    %cst_158 = arith.constant 1.000000e+00 : f32
    %253 = vector.broadcast %cst_158 : f32 to vector<8x128xf32>
    %254 = arith.subf %253, %247 : vector<8x128xf32>
    %255 = arith.mulf %254, %252 : vector<8x128xf32>
    %256 = arith.mulf %247, %217 : vector<8x128xf32>
    %257 = arith.addf %255, %256 : vector<8x128xf32>
    %c2_159 = arith.constant 2 : index
    %c0_160 = arith.constant 0 : index
    %c0_161 = arith.constant 0 : index
    %258 = vector.load %arg21[%c2_159, %c0_160, %c0_161] : memref<8x8x128xf32, #tpu.memory_space<vmem>>, vector<1x8x128xf32>
    %259 = vector.shape_cast %258 : vector<1x8x128xf32> to vector<8x128xf32>
    %260 = vector.shape_cast %257 : vector<8x128xf32> to vector<1x8x128xf32>
    tpu.vector_store %arg21[%c2_159, %c0_160, %c0_161], %260 {strides = array<i32>} : memref<8x8x128xf32, #tpu.memory_space<vmem>>, vector<1x8x128xf32>,
    %261 = arith.addf %209, %257 : vector<8x128xf32>
    %c2_162 = arith.constant 2 : index
    %c0_163 = arith.constant 0 : index
    %c0_164 = arith.constant 0 : index
    %262 = vector.load %arg16[%c2_162, %c0_163, %c0_164] : memref<7x128x384xbf16, #tpu.memory_space<vmem>>, vector<1x128x384xbf16>
    %263 = vector.shape_cast %262 : vector<1x128x384xbf16> to vector<128x384xbf16>
    %c3_165 = arith.constant 3 : index
    %c0_166 = arith.constant 0 : index
    %c0_167 = arith.constant 0 : index
    %264 = vector.load %arg3[%c3_165, %c0_166, %c0_167] : memref<8x8x128xf32, #tpu.memory_space<vmem>>, vector<1x8x128xf32>
    %265 = vector.shape_cast %264 : vector<1x8x128xf32> to vector<8x128xf32>
    %266 = arith.addf %265, %117 : vector<8x128xf32>
    %267 = arith.truncf %261 : vector<8x128xf32> to vector<8x128xbf16>
    %cst_168 = arith.constant dense<0.000000e+00> : vector<8x384xf32>
    %268 = tpu.matmul %267, %263, %cst_168 {dimension_numbers = #tpu.dot_dimension_numbers<[1], [0], [0], [1], [0, 0, 1, 1], [], []>} : vector<8x128xbf16>, vector<128x384xbf16>, vector<8x384xf32> -> vector<8x384xf32>
    %c3_169 = arith.constant 3 : index
    %c0_170 = arith.constant 0 : index
    %c0_171 = arith.constant 0 : index
    %269 = vector.load %arg18[%c3_169, %c0_170, %c0_171] : memref<8x1x384xf32, #tpu.memory_space<vmem>>, vector<1x1x384xf32>
    %270 = vector.shape_cast %269 : vector<1x1x384xf32> to vector<1x384xf32>
    %271 = vector.broadcast %270 : vector<1x384xf32> to vector<8x384xf32>
    %272 = arith.addf %268, %271 : vector<8x384xf32>
    %c3_172 = arith.constant 3 : index
    %c0_173 = arith.constant 0 : index
    %c0_174 = arith.constant 0 : index
    %273 = vector.load %arg17[%c3_172, %c0_173, %c0_174] : memref<8x128x384xbf16, #tpu.memory_space<vmem>>, vector<1x128x384xbf16>
    %274 = vector.shape_cast %273 : vector<1x128x384xbf16> to vector<128x384xbf16>
    %275 = arith.truncf %266 : vector<8x128xf32> to vector<8x128xbf16>
    %cst_175 = arith.constant dense<0.000000e+00> : vector<8x384xf32>
    %276 = tpu.matmul %275, %274, %cst_175 {dimension_numbers = #tpu.dot_dimension_numbers<[1], [0], [0], [1], [0, 0, 1, 1], [], []>} : vector<8x128xbf16>, vector<128x384xbf16>, vector<8x384xf32> -> vector<8x384xf32>
    %c3_176 = arith.constant 3 : index
    %c0_177 = arith.constant 0 : index
    %c0_178 = arith.constant 0 : index
    %277 = vector.load %arg19[%c3_176, %c0_177, %c0_178] : memref<8x1x384xf32, #tpu.memory_space<vmem>>, vector<1x1x384xf32>
    %278 = vector.shape_cast %277 : vector<1x1x384xf32> to vector<1x384xf32>
    %279 = vector.broadcast %278 : vector<1x384xf32> to vector<8x384xf32>
    %280 = arith.addf %276, %279 : vector<8x384xf32>
    %281 = vector.extract_strided_slice %272 {offsets = [0, 0], sizes = [8, 128], strides = [1, 1]} : vector<8x384xf32> to vector<8x128xf32>
    %282 = vector.extract_strided_slice %280 {offsets = [0, 0], sizes = [8, 128], strides = [1, 1]} : vector<8x384xf32> to vector<8x128xf32>
    %283 = arith.addf %281, %282 : vector<8x128xf32>
    %284 = arith.negf %283 : vector<8x128xf32>
    %285 = math.exp %284 : vector<8x128xf32>
    %cst_179 = arith.constant 1.000000e+00 : f32
    %286 = vector.broadcast %cst_179 : f32 to vector<8x128xf32>
    %287 = arith.addf %286, %285 : vector<8x128xf32>
    %288 = arith.divf %286, %287 : vector<8x128xf32>
    %289 = vector.extract_strided_slice %272 {offsets = [0, 128], sizes = [8, 128], strides = [1, 1]} : vector<8x384xf32> to vector<8x128xf32>
    %290 = vector.extract_strided_slice %280 {offsets = [0, 128], sizes = [8, 128], strides = [1, 1]} : vector<8x384xf32> to vector<8x128xf32>
    %291 = arith.addf %289, %290 : vector<8x128xf32>
    %292 = arith.negf %291 : vector<8x128xf32>
    %293 = math.exp %292 : vector<8x128xf32>
    %cst_180 = arith.constant 1.000000e+00 : f32
    %294 = vector.broadcast %cst_180 : f32 to vector<8x128xf32>
    %295 = arith.addf %294, %293 : vector<8x128xf32>
    %296 = arith.divf %294, %295 : vector<8x128xf32>
    %297 = vector.extract_strided_slice %272 {offsets = [0, 256], sizes = [8, 128], strides = [1, 1]} : vector<8x384xf32> to vector<8x128xf32>
    %298 = vector.extract_strided_slice %280 {offsets = [0, 256], sizes = [8, 128], strides = [1, 1]} : vector<8x384xf32> to vector<8x128xf32>
    %299 = arith.mulf %288, %298 : vector<8x128xf32>
    %300 = arith.addf %297, %299 : vector<8x128xf32>
    %301 = math.tanh %300 : vector<8x128xf32>
    %cst_181 = arith.constant 1.000000e+00 : f32
    %302 = vector.broadcast %cst_181 : f32 to vector<8x128xf32>
    %303 = arith.subf %302, %296 : vector<8x128xf32>
    %304 = arith.mulf %303, %301 : vector<8x128xf32>
    %305 = arith.mulf %296, %266 : vector<8x128xf32>
    %306 = arith.addf %304, %305 : vector<8x128xf32>
    %c3_182 = arith.constant 3 : index
    %c0_183 = arith.constant 0 : index
    %c0_184 = arith.constant 0 : index
    %307 = vector.load %arg21[%c3_182, %c0_183, %c0_184] : memref<8x8x128xf32, #tpu.memory_space<vmem>>, vector<1x8x128xf32>
    %308 = vector.shape_cast %307 : vector<1x8x128xf32> to vector<8x128xf32>
    %309 = vector.shape_cast %306 : vector<8x128xf32> to vector<1x8x128xf32>
    tpu.vector_store %arg21[%c3_182, %c0_183, %c0_184], %309 {strides = array<i32>} : memref<8x8x128xf32, #tpu.memory_space<vmem>>, vector<1x8x128xf32>,
    %310 = arith.addf %257, %306 : vector<8x128xf32>
    %c3_185 = arith.constant 3 : index
    %c0_186 = arith.constant 0 : index
    %c0_187 = arith.constant 0 : index
    %311 = vector.load %arg16[%c3_185, %c0_186, %c0_187] : memref<7x128x384xbf16, #tpu.memory_space<vmem>>, vector<1x128x384xbf16>
    %312 = vector.shape_cast %311 : vector<1x128x384xbf16> to vector<128x384xbf16>
    %c4_188 = arith.constant 4 : index
    %c0_189 = arith.constant 0 : index
    %c0_190 = arith.constant 0 : index
    %313 = vector.load %arg3[%c4_188, %c0_189, %c0_190] : memref<8x8x128xf32, #tpu.memory_space<vmem>>, vector<1x8x128xf32>
    %314 = vector.shape_cast %313 : vector<1x8x128xf32> to vector<8x128xf32>
    %315 = arith.addf %314, %117 : vector<8x128xf32>
    %316 = arith.truncf %310 : vector<8x128xf32> to vector<8x128xbf16>
    %cst_191 = arith.constant dense<0.000000e+00> : vector<8x384xf32>
    %317 = tpu.matmul %316, %312, %cst_191 {dimension_numbers = #tpu.dot_dimension_numbers<[1], [0], [0], [1], [0, 0, 1, 1], [], []>} : vector<8x128xbf16>, vector<128x384xbf16>, vector<8x384xf32> -> vector<8x384xf32>
    %c4_192 = arith.constant 4 : index
    %c0_193 = arith.constant 0 : index
    %c0_194 = arith.constant 0 : index
    %318 = vector.load %arg18[%c4_192, %c0_193, %c0_194] : memref<8x1x384xf32, #tpu.memory_space<vmem>>, vector<1x1x384xf32>
    %319 = vector.shape_cast %318 : vector<1x1x384xf32> to vector<1x384xf32>
    %320 = vector.broadcast %319 : vector<1x384xf32> to vector<8x384xf32>
    %321 = arith.addf %317, %320 : vector<8x384xf32>
    %c4_195 = arith.constant 4 : index
    %c0_196 = arith.constant 0 : index
    %c0_197 = arith.constant 0 : index
    %322 = vector.load %arg17[%c4_195, %c0_196, %c0_197] : memref<8x128x384xbf16, #tpu.memory_space<vmem>>, vector<1x128x384xbf16>
    %323 = vector.shape_cast %322 : vector<1x128x384xbf16> to vector<128x384xbf16>
    %324 = arith.truncf %315 : vector<8x128xf32> to vector<8x128xbf16>
    %cst_198 = arith.constant dense<0.000000e+00> : vector<8x384xf32>
    %325 = tpu.matmul %324, %323, %cst_198 {dimension_numbers = #tpu.dot_dimension_numbers<[1], [0], [0], [1], [0, 0, 1, 1], [], []>} : vector<8x128xbf16>, vector<128x384xbf16>, vector<8x384xf32> -> vector<8x384xf32>
    %c4_199 = arith.constant 4 : index
    %c0_200 = arith.constant 0 : index
    %c0_201 = arith.constant 0 : index
    %326 = vector.load %arg19[%c4_199, %c0_200, %c0_201] : memref<8x1x384xf32, #tpu.memory_space<vmem>>, vector<1x1x384xf32>
    %327 = vector.shape_cast %326 : vector<1x1x384xf32> to vector<1x384xf32>
    %328 = vector.broadcast %327 : vector<1x384xf32> to vector<8x384xf32>
    %329 = arith.addf %325, %328 : vector<8x384xf32>
    %330 = vector.extract_strided_slice %321 {offsets = [0, 0], sizes = [8, 128], strides = [1, 1]} : vector<8x384xf32> to vector<8x128xf32>
    %331 = vector.extract_strided_slice %329 {offsets = [0, 0], sizes = [8, 128], strides = [1, 1]} : vector<8x384xf32> to vector<8x128xf32>
    %332 = arith.addf %330, %331 : vector<8x128xf32>
    %333 = arith.negf %332 : vector<8x128xf32>
    %334 = math.exp %333 : vector<8x128xf32>
    %cst_202 = arith.constant 1.000000e+00 : f32
    %335 = vector.broadcast %cst_202 : f32 to vector<8x128xf32>
    %336 = arith.addf %335, %334 : vector<8x128xf32>
    %337 = arith.divf %335, %336 : vector<8x128xf32>
    %338 = vector.extract_strided_slice %321 {offsets = [0, 128], sizes = [8, 128], strides = [1, 1]} : vector<8x384xf32> to vector<8x128xf32>
    %339 = vector.extract_strided_slice %329 {offsets = [0, 128], sizes = [8, 128], strides = [1, 1]} : vector<8x384xf32> to vector<8x128xf32>
    %340 = arith.addf %338, %339 : vector<8x128xf32>
    %341 = arith.negf %340 : vector<8x128xf32>
    %342 = math.exp %341 : vector<8x128xf32>
    %cst_203 = arith.constant 1.000000e+00 : f32
    %343 = vector.broadcast %cst_203 : f32 to vector<8x128xf32>
    %344 = arith.addf %343, %342 : vector<8x128xf32>
    %345 = arith.divf %343, %344 : vector<8x128xf32>
    %346 = vector.extract_strided_slice %321 {offsets = [0, 256], sizes = [8, 128], strides = [1, 1]} : vector<8x384xf32> to vector<8x128xf32>
    %347 = vector.extract_strided_slice %329 {offsets = [0, 256], sizes = [8, 128], strides = [1, 1]} : vector<8x384xf32> to vector<8x128xf32>
    %348 = arith.mulf %337, %347 : vector<8x128xf32>
    %349 = arith.addf %346, %348 : vector<8x128xf32>
    %350 = math.tanh %349 : vector<8x128xf32>
    %cst_204 = arith.constant 1.000000e+00 : f32
    %351 = vector.broadcast %cst_204 : f32 to vector<8x128xf32>
    %352 = arith.subf %351, %345 : vector<8x128xf32>
    %353 = arith.mulf %352, %350 : vector<8x128xf32>
    %354 = arith.mulf %345, %315 : vector<8x128xf32>
    %355 = arith.addf %353, %354 : vector<8x128xf32>
    %c4_205 = arith.constant 4 : index
    %c0_206 = arith.constant 0 : index
    %c0_207 = arith.constant 0 : index
    %356 = vector.load %arg21[%c4_205, %c0_206, %c0_207] : memref<8x8x128xf32, #tpu.memory_space<vmem>>, vector<1x8x128xf32>
    %357 = vector.shape_cast %356 : vector<1x8x128xf32> to vector<8x128xf32>
    %358 = vector.shape_cast %355 : vector<8x128xf32> to vector<1x8x128xf32>
    tpu.vector_store %arg21[%c4_205, %c0_206, %c0_207], %358 {strides = array<i32>} : memref<8x8x128xf32, #tpu.memory_space<vmem>>, vector<1x8x128xf32>,
    %359 = arith.addf %306, %355 : vector<8x128xf32>
    %c4_208 = arith.constant 4 : index
    %c0_209 = arith.constant 0 : index
    %c0_210 = arith.constant 0 : index
    %360 = vector.load %arg16[%c4_208, %c0_209, %c0_210] : memref<7x128x384xbf16, #tpu.memory_space<vmem>>, vector<1x128x384xbf16>
    %361 = vector.shape_cast %360 : vector<1x128x384xbf16> to vector<128x384xbf16>
    %c5_211 = arith.constant 5 : index
    %c0_212 = arith.constant 0 : index
    %c0_213 = arith.constant 0 : index
    %362 = vector.load %arg3[%c5_211, %c0_212, %c0_213] : memref<8x8x128xf32, #tpu.memory_space<vmem>>, vector<1x8x128xf32>
    %363 = vector.shape_cast %362 : vector<1x8x128xf32> to vector<8x128xf32>
    %364 = arith.addf %363, %117 : vector<8x128xf32>
    %365 = arith.truncf %359 : vector<8x128xf32> to vector<8x128xbf16>
    %cst_214 = arith.constant dense<0.000000e+00> : vector<8x384xf32>
    %366 = tpu.matmul %365, %361, %cst_214 {dimension_numbers = #tpu.dot_dimension_numbers<[1], [0], [0], [1], [0, 0, 1, 1], [], []>} : vector<8x128xbf16>, vector<128x384xbf16>, vector<8x384xf32> -> vector<8x384xf32>
    %c5_215 = arith.constant 5 : index
    %c0_216 = arith.constant 0 : index
    %c0_217 = arith.constant 0 : index
    %367 = vector.load %arg18[%c5_215, %c0_216, %c0_217] : memref<8x1x384xf32, #tpu.memory_space<vmem>>, vector<1x1x384xf32>
    %368 = vector.shape_cast %367 : vector<1x1x384xf32> to vector<1x384xf32>
    %369 = vector.broadcast %368 : vector<1x384xf32> to vector<8x384xf32>
    %370 = arith.addf %366, %369 : vector<8x384xf32>
    %c5_218 = arith.constant 5 : index
    %c0_219 = arith.constant 0 : index
    %c0_220 = arith.constant 0 : index
    %371 = vector.load %arg17[%c5_218, %c0_219, %c0_220] : memref<8x128x384xbf16, #tpu.memory_space<vmem>>, vector<1x128x384xbf16>
    %372 = vector.shape_cast %371 : vector<1x128x384xbf16> to vector<128x384xbf16>
    %373 = arith.truncf %364 : vector<8x128xf32> to vector<8x128xbf16>
    %cst_221 = arith.constant dense<0.000000e+00> : vector<8x384xf32>
    %374 = tpu.matmul %373, %372, %cst_221 {dimension_numbers = #tpu.dot_dimension_numbers<[1], [0], [0], [1], [0, 0, 1, 1], [], []>} : vector<8x128xbf16>, vector<128x384xbf16>, vector<8x384xf32> -> vector<8x384xf32>
    %c5_222 = arith.constant 5 : index
    %c0_223 = arith.constant 0 : index
    %c0_224 = arith.constant 0 : index
    %375 = vector.load %arg19[%c5_222, %c0_223, %c0_224] : memref<8x1x384xf32, #tpu.memory_space<vmem>>, vector<1x1x384xf32>
    %376 = vector.shape_cast %375 : vector<1x1x384xf32> to vector<1x384xf32>
    %377 = vector.broadcast %376 : vector<1x384xf32> to vector<8x384xf32>
    %378 = arith.addf %374, %377 : vector<8x384xf32>
    %379 = vector.extract_strided_slice %370 {offsets = [0, 0], sizes = [8, 128], strides = [1, 1]} : vector<8x384xf32> to vector<8x128xf32>
    %380 = vector.extract_strided_slice %378 {offsets = [0, 0], sizes = [8, 128], strides = [1, 1]} : vector<8x384xf32> to vector<8x128xf32>
    %381 = arith.addf %379, %380 : vector<8x128xf32>
    %382 = arith.negf %381 : vector<8x128xf32>
    %383 = math.exp %382 : vector<8x128xf32>
    %cst_225 = arith.constant 1.000000e+00 : f32
    %384 = vector.broadcast %cst_225 : f32 to vector<8x128xf32>
    %385 = arith.addf %384, %383 : vector<8x128xf32>
    %386 = arith.divf %384, %385 : vector<8x128xf32>
    %387 = vector.extract_strided_slice %370 {offsets = [0, 128], sizes = [8, 128], strides = [1, 1]} : vector<8x384xf32> to vector<8x128xf32>
    %388 = vector.extract_strided_slice %378 {offsets = [0, 128], sizes = [8, 128], strides = [1, 1]} : vector<8x384xf32> to vector<8x128xf32>
    %389 = arith.addf %387, %388 : vector<8x128xf32>
    %390 = arith.negf %389 : vector<8x128xf32>
    %391 = math.exp %390 : vector<8x128xf32>
    %cst_226 = arith.constant 1.000000e+00 : f32
    %392 = vector.broadcast %cst_226 : f32 to vector<8x128xf32>
    %393 = arith.addf %392, %391 : vector<8x128xf32>
    %394 = arith.divf %392, %393 : vector<8x128xf32>
    %395 = vector.extract_strided_slice %370 {offsets = [0, 256], sizes = [8, 128], strides = [1, 1]} : vector<8x384xf32> to vector<8x128xf32>
    %396 = vector.extract_strided_slice %378 {offsets = [0, 256], sizes = [8, 128], strides = [1, 1]} : vector<8x384xf32> to vector<8x128xf32>
    %397 = arith.mulf %386, %396 : vector<8x128xf32>
    %398 = arith.addf %395, %397 : vector<8x128xf32>
    %399 = math.tanh %398 : vector<8x128xf32>
    %cst_227 = arith.constant 1.000000e+00 : f32
    %400 = vector.broadcast %cst_227 : f32 to vector<8x128xf32>
    %401 = arith.subf %400, %394 : vector<8x128xf32>
    %402 = arith.mulf %401, %399 : vector<8x128xf32>
    %403 = arith.mulf %394, %364 : vector<8x128xf32>
    %404 = arith.addf %402, %403 : vector<8x128xf32>
    %c5_228 = arith.constant 5 : index
    %c0_229 = arith.constant 0 : index
    %c0_230 = arith.constant 0 : index
    %405 = vector.load %arg21[%c5_228, %c0_229, %c0_230] : memref<8x8x128xf32, #tpu.memory_space<vmem>>, vector<1x8x128xf32>
    %406 = vector.shape_cast %405 : vector<1x8x128xf32> to vector<8x128xf32>
    %407 = vector.shape_cast %404 : vector<8x128xf32> to vector<1x8x128xf32>
    tpu.vector_store %arg21[%c5_228, %c0_229, %c0_230], %407 {strides = array<i32>} : memref<8x8x128xf32, #tpu.memory_space<vmem>>, vector<1x8x128xf32>,
    %408 = arith.addf %355, %404 : vector<8x128xf32>
    %c5_231 = arith.constant 5 : index
    %c0_232 = arith.constant 0 : index
    %c0_233 = arith.constant 0 : index
    %409 = vector.load %arg16[%c5_231, %c0_232, %c0_233] : memref<7x128x384xbf16, #tpu.memory_space<vmem>>, vector<1x128x384xbf16>
    %410 = vector.shape_cast %409 : vector<1x128x384xbf16> to vector<128x384xbf16>
    %c6_234 = arith.constant 6 : index
    %c0_235 = arith.constant 0 : index
    %c0_236 = arith.constant 0 : index
    %411 = vector.load %arg3[%c6_234, %c0_235, %c0_236] : memref<8x8x128xf32, #tpu.memory_space<vmem>>, vector<1x8x128xf32>
    %412 = vector.shape_cast %411 : vector<1x8x128xf32> to vector<8x128xf32>
    %413 = arith.addf %412, %117 : vector<8x128xf32>
    %414 = arith.truncf %408 : vector<8x128xf32> to vector<8x128xbf16>
    %cst_237 = arith.constant dense<0.000000e+00> : vector<8x384xf32>
    %415 = tpu.matmul %414, %410, %cst_237 {dimension_numbers = #tpu.dot_dimension_numbers<[1], [0], [0], [1], [0, 0, 1, 1], [], []>} : vector<8x128xbf16>, vector<128x384xbf16>, vector<8x384xf32> -> vector<8x384xf32>
    %c6_238 = arith.constant 6 : index
    %c0_239 = arith.constant 0 : index
    %c0_240 = arith.constant 0 : index
    %416 = vector.load %arg18[%c6_238, %c0_239, %c0_240] : memref<8x1x384xf32, #tpu.memory_space<vmem>>, vector<1x1x384xf32>
    %417 = vector.shape_cast %416 : vector<1x1x384xf32> to vector<1x384xf32>
    %418 = vector.broadcast %417 : vector<1x384xf32> to vector<8x384xf32>
    %419 = arith.addf %415, %418 : vector<8x384xf32>
    %c6_241 = arith.constant 6 : index
    %c0_242 = arith.constant 0 : index
    %c0_243 = arith.constant 0 : index
    %420 = vector.load %arg17[%c6_241, %c0_242, %c0_243] : memref<8x128x384xbf16, #tpu.memory_space<vmem>>, vector<1x128x384xbf16>
    %421 = vector.shape_cast %420 : vector<1x128x384xbf16> to vector<128x384xbf16>
    %422 = arith.truncf %413 : vector<8x128xf32> to vector<8x128xbf16>
    %cst_244 = arith.constant dense<0.000000e+00> : vector<8x384xf32>
    %423 = tpu.matmul %422, %421, %cst_244 {dimension_numbers = #tpu.dot_dimension_numbers<[1], [0], [0], [1], [0, 0, 1, 1], [], []>} : vector<8x128xbf16>, vector<128x384xbf16>, vector<8x384xf32> -> vector<8x384xf32>
    %c6_245 = arith.constant 6 : index
    %c0_246 = arith.constant 0 : index
    %c0_247 = arith.constant 0 : index
    %424 = vector.load %arg19[%c6_245, %c0_246, %c0_247] : memref<8x1x384xf32, #tpu.memory_space<vmem>>, vector<1x1x384xf32>
    %425 = vector.shape_cast %424 : vector<1x1x384xf32> to vector<1x384xf32>
    %426 = vector.broadcast %425 : vector<1x384xf32> to vector<8x384xf32>
    %427 = arith.addf %423, %426 : vector<8x384xf32>
    %428 = vector.extract_strided_slice %419 {offsets = [0, 0], sizes = [8, 128], strides = [1, 1]} : vector<8x384xf32> to vector<8x128xf32>
    %429 = vector.extract_strided_slice %427 {offsets = [0, 0], sizes = [8, 128], strides = [1, 1]} : vector<8x384xf32> to vector<8x128xf32>
    %430 = arith.addf %428, %429 : vector<8x128xf32>
    %431 = arith.negf %430 : vector<8x128xf32>
    %432 = math.exp %431 : vector<8x128xf32>
    %cst_248 = arith.constant 1.000000e+00 : f32
    %433 = vector.broadcast %cst_248 : f32 to vector<8x128xf32>
    %434 = arith.addf %433, %432 : vector<8x128xf32>
    %435 = arith.divf %433, %434 : vector<8x128xf32>
    %436 = vector.extract_strided_slice %419 {offsets = [0, 128], sizes = [8, 128], strides = [1, 1]} : vector<8x384xf32> to vector<8x128xf32>
    %437 = vector.extract_strided_slice %427 {offsets = [0, 128], sizes = [8, 128], strides = [1, 1]} : vector<8x384xf32> to vector<8x128xf32>
    %438 = arith.addf %436, %437 : vector<8x128xf32>
    %439 = arith.negf %438 : vector<8x128xf32>
    %440 = math.exp %439 : vector<8x128xf32>
    %cst_249 = arith.constant 1.000000e+00 : f32
    %441 = vector.broadcast %cst_249 : f32 to vector<8x128xf32>
    %442 = arith.addf %441, %440 : vector<8x128xf32>
    %443 = arith.divf %441, %442 : vector<8x128xf32>
    %444 = vector.extract_strided_slice %419 {offsets = [0, 256], sizes = [8, 128], strides = [1, 1]} : vector<8x384xf32> to vector<8x128xf32>
    %445 = vector.extract_strided_slice %427 {offsets = [0, 256], sizes = [8, 128], strides = [1, 1]} : vector<8x384xf32> to vector<8x128xf32>
    %446 = arith.mulf %435, %445 : vector<8x128xf32>
    %447 = arith.addf %444, %446 : vector<8x128xf32>
    %448 = math.tanh %447 : vector<8x128xf32>
    %cst_250 = arith.constant 1.000000e+00 : f32
    %449 = vector.broadcast %cst_250 : f32 to vector<8x128xf32>
    %450 = arith.subf %449, %443 : vector<8x128xf32>
    %451 = arith.mulf %450, %448 : vector<8x128xf32>
    %452 = arith.mulf %443, %413 : vector<8x128xf32>
    %453 = arith.addf %451, %452 : vector<8x128xf32>
    %c6_251 = arith.constant 6 : index
    %c0_252 = arith.constant 0 : index
    %c0_253 = arith.constant 0 : index
    %454 = vector.load %arg21[%c6_251, %c0_252, %c0_253] : memref<8x8x128xf32, #tpu.memory_space<vmem>>, vector<1x8x128xf32>
    %455 = vector.shape_cast %454 : vector<1x8x128xf32> to vector<8x128xf32>
    %456 = vector.shape_cast %453 : vector<8x128xf32> to vector<1x8x128xf32>
    tpu.vector_store %arg21[%c6_251, %c0_252, %c0_253], %456 {strides = array<i32>} : memref<8x8x128xf32, #tpu.memory_space<vmem>>, vector<1x8x128xf32>,
    %457 = arith.addf %404, %453 : vector<8x128xf32>
    %c6_254 = arith.constant 6 : index
    %c0_255 = arith.constant 0 : index
    %c0_256 = arith.constant 0 : index
    %458 = vector.load %arg16[%c6_254, %c0_255, %c0_256] : memref<7x128x384xbf16, #tpu.memory_space<vmem>>, vector<1x128x384xbf16>
    %459 = vector.shape_cast %458 : vector<1x128x384xbf16> to vector<128x384xbf16>
    %c7_257 = arith.constant 7 : index
    %c0_258 = arith.constant 0 : index
    %c0_259 = arith.constant 0 : index
    %460 = vector.load %arg3[%c7_257, %c0_258, %c0_259] : memref<8x8x128xf32, #tpu.memory_space<vmem>>, vector<1x8x128xf32>
    %461 = vector.shape_cast %460 : vector<1x8x128xf32> to vector<8x128xf32>
    %462 = arith.addf %461, %117 : vector<8x128xf32>
    %463 = arith.truncf %457 : vector<8x128xf32> to vector<8x128xbf16>
    %cst_260 = arith.constant dense<0.000000e+00> : vector<8x384xf32>
    %464 = tpu.matmul %463, %459, %cst_260 {dimension_numbers = #tpu.dot_dimension_numbers<[1], [0], [0], [1], [0, 0, 1, 1], [], []>} : vector<8x128xbf16>, vector<128x384xbf16>, vector<8x384xf32> -> vector<8x384xf32>
    %c7_261 = arith.constant 7 : index
    %c0_262 = arith.constant 0 : index
    %c0_263 = arith.constant 0 : index
    %465 = vector.load %arg18[%c7_261, %c0_262, %c0_263] : memref<8x1x384xf32, #tpu.memory_space<vmem>>, vector<1x1x384xf32>
    %466 = vector.shape_cast %465 : vector<1x1x384xf32> to vector<1x384xf32>
    %467 = vector.broadcast %466 : vector<1x384xf32> to vector<8x384xf32>
    %468 = arith.addf %464, %467 : vector<8x384xf32>
    %c7_264 = arith.constant 7 : index
    %c0_265 = arith.constant 0 : index
    %c0_266 = arith.constant 0 : index
    %469 = vector.load %arg17[%c7_264, %c0_265, %c0_266] : memref<8x128x384xbf16, #tpu.memory_space<vmem>>, vector<1x128x384xbf16>
    %470 = vector.shape_cast %469 : vector<1x128x384xbf16> to vector<128x384xbf16>
    %471 = arith.truncf %462 : vector<8x128xf32> to vector<8x128xbf16>
    %cst_267 = arith.constant dense<0.000000e+00> : vector<8x384xf32>
    %472 = tpu.matmul %471, %470, %cst_267 {dimension_numbers = #tpu.dot_dimension_numbers<[1], [0], [0], [1], [0, 0, 1, 1], [], []>} : vector<8x128xbf16>, vector<128x384xbf16>, vector<8x384xf32> -> vector<8x384xf32>
    %c7_268 = arith.constant 7 : index
    %c0_269 = arith.constant 0 : index
    %c0_270 = arith.constant 0 : index
    %473 = vector.load %arg19[%c7_268, %c0_269, %c0_270] : memref<8x1x384xf32, #tpu.memory_space<vmem>>, vector<1x1x384xf32>
    %474 = vector.shape_cast %473 : vector<1x1x384xf32> to vector<1x384xf32>
    %475 = vector.broadcast %474 : vector<1x384xf32> to vector<8x384xf32>
    %476 = arith.addf %472, %475 : vector<8x384xf32>
    %477 = vector.extract_strided_slice %468 {offsets = [0, 0], sizes = [8, 128], strides = [1, 1]} : vector<8x384xf32> to vector<8x128xf32>
    %478 = vector.extract_strided_slice %476 {offsets = [0, 0], sizes = [8, 128], strides = [1, 1]} : vector<8x384xf32> to vector<8x128xf32>
    %479 = arith.addf %477, %478 : vector<8x128xf32>
    %480 = arith.negf %479 : vector<8x128xf32>
    %481 = math.exp %480 : vector<8x128xf32>
    %cst_271 = arith.constant 1.000000e+00 : f32
    %482 = vector.broadcast %cst_271 : f32 to vector<8x128xf32>
    %483 = arith.addf %482, %481 : vector<8x128xf32>
    %484 = arith.divf %482, %483 : vector<8x128xf32>
    %485 = vector.extract_strided_slice %468 {offsets = [0, 128], sizes = [8, 128], strides = [1, 1]} : vector<8x384xf32> to vector<8x128xf32>
    %486 = vector.extract_strided_slice %476 {offsets = [0, 128], sizes = [8, 128], strides = [1, 1]} : vector<8x384xf32> to vector<8x128xf32>
    %487 = arith.addf %485, %486 : vector<8x128xf32>
    %488 = arith.negf %487 : vector<8x128xf32>
    %489 = math.exp %488 : vector<8x128xf32>
    %cst_272 = arith.constant 1.000000e+00 : f32
    %490 = vector.broadcast %cst_272 : f32 to vector<8x128xf32>
    %491 = arith.addf %490, %489 : vector<8x128xf32>
    %492 = arith.divf %490, %491 : vector<8x128xf32>
    %493 = vector.extract_strided_slice %468 {offsets = [0, 256], sizes = [8, 128], strides = [1, 1]} : vector<8x384xf32> to vector<8x128xf32>
    %494 = vector.extract_strided_slice %476 {offsets = [0, 256], sizes = [8, 128], strides = [1, 1]} : vector<8x384xf32> to vector<8x128xf32>
    %495 = arith.mulf %484, %494 : vector<8x128xf32>
    %496 = arith.addf %493, %495 : vector<8x128xf32>
    %497 = math.tanh %496 : vector<8x128xf32>
    %cst_273 = arith.constant 1.000000e+00 : f32
    %498 = vector.broadcast %cst_273 : f32 to vector<8x128xf32>
    %499 = arith.subf %498, %492 : vector<8x128xf32>
    %500 = arith.mulf %499, %497 : vector<8x128xf32>
    %501 = arith.mulf %492, %462 : vector<8x128xf32>
    %502 = arith.addf %500, %501 : vector<8x128xf32>
    %c7_274 = arith.constant 7 : index
    %c0_275 = arith.constant 0 : index
    %c0_276 = arith.constant 0 : index
    %503 = vector.load %arg21[%c7_274, %c0_275, %c0_276] : memref<8x8x128xf32, #tpu.memory_space<vmem>>, vector<1x8x128xf32>
    %504 = vector.shape_cast %503 : vector<1x8x128xf32> to vector<8x128xf32>
    %505 = vector.shape_cast %502 : vector<8x128xf32> to vector<1x8x128xf32>
    tpu.vector_store %arg21[%c7_274, %c0_275, %c0_276], %505 {strides = array<i32>} : memref<8x8x128xf32, #tpu.memory_space<vmem>>, vector<1x8x128xf32>,
    %c0_277 = arith.constant 0 : index
    %c0_278 = arith.constant 0 : index
    %506 = vector.load %arg13[%c0_277, %c0_278] : memref<128x128xbf16, #tpu.memory_space<vmem>>, vector<128x128xbf16>
    %507 = arith.truncf %502 : vector<8x128xf32> to vector<8x128xbf16>
    %cst_279 = arith.constant dense<0.000000e+00> : vector<8x128xf32>
    %508 = tpu.matmul %507, %506, %cst_279 {dimension_numbers = #tpu.dot_dimension_numbers<[1], [0], [0], [1], [0, 0, 1, 1], [], []>} : vector<8x128xbf16>, vector<128x128xbf16>, vector<8x128xf32> -> vector<8x128xf32>
    %c0_280 = arith.constant 0 : index
    %c0_281 = arith.constant 0 : index
    %509 = vector.load %arg14[%c0_280, %c0_281] : memref<1x128xf32, #tpu.memory_space<vmem>>, vector<1x128xf32>
    %510 = vector.broadcast %509 : vector<1x128xf32> to vector<8x128xf32>
    %511 = arith.addf %508, %510 : vector<8x128xf32>
    %512 = tpu.iota {dimensions = array<i32: 1>} : vector<8x128xi32>
    %c64_i32 = arith.constant 64 : i32
    %513 = vector.broadcast %c64_i32 : i32 to vector<8x128xi32>
    %514 = arith.cmpi slt, %512, %513 : vector<8x128xi32>
    %cst_282 = arith.constant -1.000000e+30 : f32
    %515 = vector.broadcast %cst_282 : f32 to vector<8x128xf32>
    %516 = arith.select %514, %511, %515 : vector<8x128xi1>, vector<8x128xf32>
    %cst_283 = arith.constant dense<0xFF800000> : vector<8xf32>
    %517 = vector.multi_reduction <maximumf>, %516, %cst_283 [1] : vector<8x128xf32> to vector<8xf32>
    %518 = vector.shape_cast %517 : vector<8xf32> to vector<8x1xf32>
    %519 = vector.broadcast %518 : vector<8x1xf32> to vector<8x128xf32>
    %520 = arith.subf %516, %519 : vector<8x128xf32>
    %521 = math.exp %520 : vector<8x128xf32>
    %cst_284 = arith.constant dense<0.000000e+00> : vector<8xf32>
    %522 = vector.multi_reduction <add>, %521, %cst_284 [1] : vector<8x128xf32> to vector<8xf32>
    %523 = vector.shape_cast %522 : vector<8xf32> to vector<8x1xf32>
    %524 = math.log %523 : vector<8x1xf32>
    %525 = arith.addf %524, %518 : vector<8x1xf32>
    %526 = vector.broadcast %525 : vector<8x1xf32> to vector<8x128xf32>
    %527 = arith.subf %516, %526 : vector<8x128xf32>
    %c0_285 = arith.constant 0 : index
    %c0_286 = arith.constant 0 : index
    %528 = vector.load %arg20[%c0_285, %c0_286] : memref<8x128xf32, #tpu.memory_space<vmem>>, vector<8x128xf32>
    tpu.vector_store %arg20[%c0_285, %c0_286], %527 {strides = array<i32>} : memref<8x128xf32, #tpu.memory_space<vmem>>, vector<8x128xf32>,
    return
  }
}

</mosaic_0001>

<bundles_post_ra>
// kernel: gnmt_step_padded.1
= control target key start
LH: loop header
LB: loop body
LE: loop exit
PB: predicated region body
PF: predicated region fallthrough
CT: control target
= control target key end

     0   :  { %s8690_s0 = inlined_call_operand.vmem [shape: s32[8], index: 0, kind: input, shape index: {}]   ;;  %s8691_s1 = inlined_call_operand.hbm [shape: f32[8,128], index: 1, kind: input, shape index: {}]   ;;  %s8692_s2 = inlined_call_operand.hbm [shape: f32[8,128], index: 2, kind: input, shape index: {}]   ;;  %s8693_s3 = inlined_call_operand.vmem [shape: f32[8,8,128], index: 3, kind: input, shape index: {}, may-alias: {3,21}]   ;;  %s8694_s4 = inlined_call_operand.vmem [shape: f32[64,128], index: 4, kind: input, shape index: {}]   ;;  %s8695_s5 = inlined_call_operand.hbm [shape: bf16[128,128], index: 5, kind: input, shape index: {}]   ;;  %s8696_s6 = inlined_call_operand.vmem [shape: f32[1,128], index: 6, kind: input, shape index: {}]   ;;  %s8697_s7 = inlined_call_operand.hbm [shape: bf16[128,128], index: 7, kind: input, shape index: {}]   ;;  %s8698_s8 = inlined_call_operand.vmem [shape: f32[1,128], index: 8, kind: input, shape index: {}]   ;;  %s8699_s9 = inlined_call_operand.hbm [shape: bf16[128,128], index: 9, kind: input, shape index: {}]   ;;  %s8700_s10 = inlined_call_operand.vmem [shape: f32[1,128], index: 10, kind: input, shape index: {}]   ;;  %s8701_s11 = inlined_call_operand.hbm [shape: bf16[128,128], index: 11, kind: input, shape index: {}]   ;;  %s8702_s12 = inlined_call_operand.vmem [shape: f32[1,128], index: 12, kind: input, shape index: {}]   ;;  %s8703_s13 = inlined_call_operand.hbm [shape: bf16[128,128], index: 13, kind: input, shape index: {}]   ;;  %s8704_s14 = inlined_call_operand.vmem [shape: f32[1,128], index: 14, kind: input, shape index: {}]   ;;  %s8705_s15 = inlined_call_operand.hbm [shape: bf16[128,384], index: 15, kind: input, shape index: {}]   ;;  %s8706_s16 = inlined_call_operand.hbm [shape: bf16[7,128,384], index: 16, kind: input, shape index: {}]   ;;  %s8707_s17 = inlined_call_operand.hbm [shape: bf16[8,128,384], index: 17, kind: input, shape index: {}]   ;;  %s8708_s18 = inlined_call_operand.vmem [shape: f32[8,1,384], index: 18, kind: input, shape index: {}]   ;;  %s8709_s19 = inlined_call_operand.hbm [shape: f32[8,1,384], index: 19, kind: input, shape index: {}]   ;;  %s8710_s20 = inlined_call_operand.hbm [shape: f32[8,128], index: 20, kind: output, shape index: {0}]   ;;  %s8711_s21 = inlined_call_operand.vmem [shape: f32[8,8,128], index: 21, kind: output, shape index: {1}, may-alias: {3,21}]  }
   0x1   :  { %8722 = sst [smem:[#allocation49_spill]] %s8690_s0 }
   0x2   :  { %8723 = sst [smem:[#allocation50_spill]] %s8691_s1 }
   0x3   :  { %8724 = sst [smem:[#allocation51_spill]] %s8692_s2 }
   0x4   :  { %8725 = sst [smem:[#allocation52_spill]] %s8693_s3 }
   0x5   :  { %8726 = sst [smem:[#allocation53_spill]] %s8694_s4 }
   0x6   :  { %8727 = sst [smem:[#allocation54_spill]] %s8695_s5 }
   0x7   :  { %8728 = sst [smem:[#allocation55_spill]] %s8710_s20 }
   0x8   :  { %27 = vsyncpa [#allocation7], 0 }
   0x9   :  { %28 = vsyncpa [#allocation5], 0 }
   0xa   :  { %29 = vsyncpa [#allocation10], 0 }
   0xb   :  { %30 = vsyncpa [#allocation13], 0 }
   0xc   :  { %31 = vsyncpa [#allocation16], 0 }
   0xd   :  { %32 = vsyncpa [#allocation19], 0 }
   0xe   :  { %33 = vsyncpa [#allocation22], 0 }
   0xf   :  { %34 = vsyncpa [#allocation6], 0  ;;  %s7894_s2 = smov [#allocation9]   ;;  %s8729_s3 = sld [smem:[#allocation51_spill]] }
  0x10   :  { %s61_s25 = sshll.u32 %s7894_s2, 4  ;;  %s62_s25 = int_to_ptr.vmem [resolvable:$true] %s61_s25 }
  0x15   :  { %s7586_s28 = scalar_lea.hbm %s8729_s3, 128 }
  0x16   :  { %p7587_p0 = scmp.ne.s32.totalorder %s8729_s3, %s7586_s28  ;;  %p7590_p1 = scmp.lt.u32.totalorder %s7586_s28, %s8729_s3 }
  0x18   :  { %p7592_p2 = pnand %p7590_p1, %p7587_p0 }
  0x1a   :  { %7595 = shalt.err (!%p7592_p2)
}
  0x1b   :  { %s7596_s5 = scalar_lea.vmem %s62_s25, 128  ;;  %p7601_p4 = scmp.lt.s32.totalorder %s62_s25, %s62_s25 }
  0x1c   :  { %p7597_p3 = scmp.ne.s32.totalorder %s62_s25, %s7596_s5  ;;  %p7602_p5 = scmp.lt.s32.totalorder %s7596_s5, %s7596_s5 }
  0x1e   :  { %p7603_p6 = por %p7602_p5, %p7601_p4 }
  0x20   :  { %p7604_p7 = pnand %p7603_p6, %p7597_p3 }
  0x22   :  { %7607 = shalt.err (!%p7604_p7)
}
  0x23   :  { %64 = dma.hbm_to_vmem [thread:$0]  %s8729_s3, 128, %s62_s25, [#allocation10]  }
  0x24   :  { %s7895_s1 = smov [#allocation12]   ;;  %s7896_s2 = smov [#allocation15]  }
  0x25   :  { %s86_s24 = sshll.u32 %s7895_s1, 4  ;;  %s114_s26 = sshll.u32 %s7896_s2, 4  ;;  %s87_s24 = int_to_ptr.vmem [resolvable:$true] %s86_s24  ;;  %s115_s26 = int_to_ptr.vmem [resolvable:$true] %s114_s26 }
  0x26   :  { %s7608_s29 = scalar_lea.hbm %s8697_s7, 1024 }
  0x27   :  { %p7609_p8 = scmp.ne.s32.totalorder %s8697_s7, %s7608_s29  ;;  %p7612_p9 = scmp.lt.u32.totalorder %s7608_s29, %s8697_s7 }
  0x29   :  { %p7614_p10 = pnand %p7612_p9, %p7609_p8 }
  0x2b   :  { %7617 = shalt.err (!%p7614_p10)
}
  0x2c   :  { %s7618_s25 = scalar_lea.vmem %s87_s24, 1024  ;;  %p7623_p12 = scmp.lt.s32.totalorder %s87_s24, %s87_s24 }
  0x2d   :  { %p7619_p11 = scmp.ne.s32.totalorder %s87_s24, %s7618_s25  ;;  %p7624_p13 = scmp.lt.s32.totalorder %s7618_s25, %s7618_s25 }
  0x2f   :  { %p7625_p0 = por %p7624_p13, %p7623_p12 }
  0x31   :  { %p7626_p1 = pnand %p7625_p0, %p7619_p11 }
  0x33   :  { %7629 = shalt.err (!%p7626_p1)
}
  0x34   :  { %s8717_s3 = smov 64   ;;  %s8719_s22 = smov 4  }
  0x35   :  { %92 = dma.hbm_to_vmem [thread:$0]  %s8697_s7, 1024, %s87_s24, [#allocation13], %s8717_s3, %s8717_s3, %s8719_s22  }
  0x36   :  { %s7630_s28 = scalar_lea.hbm %s8701_s11, 1024 }
  0x37   :  { %p7631_p2 = scmp.ne.s32.totalorder %s8701_s11, %s7630_s28  ;;  %p7634_p3 = scmp.lt.u32.totalorder %s7630_s28, %s8701_s11 }
  0x39   :  { %p7636_p4 = pnand %p7634_p3, %p7631_p2 }
  0x3b   :  { %7639 = shalt.err (!%p7636_p4)
}
  0x3c   :  { %s7640_s5 = scalar_lea.vmem %s115_s26, 1024  ;;  %p7645_p6 = scmp.lt.s32.totalorder %s115_s26, %s115_s26 }
  0x3d   :  { %p7641_p5 = scmp.ne.s32.totalorder %s115_s26, %s7640_s5  ;;  %p7646_p7 = scmp.lt.s32.totalorder %s7640_s5, %s7640_s5 }
  0x3f   :  { %p7647_p8 = por %p7646_p7, %p7645_p6 }
  0x41   :  { %p7648_p9 = pnand %p7647_p8, %p7641_p5 }
  0x43   :  { %7651 = shalt.err (!%p7648_p9)
}
  0x44   :  { %120 = dma.hbm_to_vmem [thread:$0]  %s8701_s11, 1024, %s115_s26, [#allocation16], %s8717_s3, %s8717_s3, %s8719_s22  }
  0x45   :  { %s7899_s25 = smov [#allocation18]   ;;  %s7652_s27 = scalar_lea.hbm %s8705_s15, 3072 }
  0x46   :  { %s142_s23 = sshll.u32 %s7899_s25, 4  ;;  %p7653_p10 = scmp.ne.s32.totalorder %s8705_s15, %s7652_s27  ;;  %s143_s23 = int_to_ptr.vmem [resolvable:$true] %s142_s23 }
  0x47   :  { %p7656_p11 = scmp.lt.u32.totalorder %s7652_s27, %s8705_s15 }
  0x49   :  { %p7658_p12 = pnand %p7656_p11, %p7653_p10 }
  0x4b   :  { %7661 = shalt.err (!%p7658_p12)
}
  0x4c   :  { %s7662_s30 = scalar_lea.vmem %s143_s23, 3072  ;;  %p7667_p0 = scmp.lt.s32.totalorder %s143_s23, %s143_s23 }
  0x4d   :  { %p7663_p13 = scmp.ne.s32.totalorder %s143_s23, %s7662_s30  ;;  %p7668_p1 = scmp.lt.s32.totalorder %s7662_s30, %s7662_s30 }
  0x4f   :  { %p7669_p2 = por %p7668_p1, %p7667_p0 }
  0x51   :  { %p7670_p3 = pnand %p7669_p2, %p7663_p13 }
  0x53   :  { %7673 = shalt.err (!%p7670_p3)
}
  0x54   :  { %s7900_s11 = smov 192   ;;  %s7901_s26 = smov 12  }
  0x55   :  { %148 = dma.hbm_to_vmem [thread:$0]  %s8705_s15, 3072, %s143_s23, [#allocation19], %s7900_s11, %s7900_s11, %s7901_s26  }
  0x56   :  { %s8730_s1 = sld [smem:[#allocation49_spill]]  ;;  %s7902_s27 = smov [#allocation21]  }
  0x57   :  { %s166_s28 = sshll.u32 %s7902_s27, 4  ;;  %s7674_s4 = scalar_lea.hbm %s8707_s17, 24576  ;;  %s167_s28 = int_to_ptr.vmem [resolvable:$true] %s166_s28 }
  0x58   :  { %p7675_p4 = scmp.ne.s32.totalorder %s8707_s17, %s7674_s4  ;;  %p7678_p5 = scmp.lt.u32.totalorder %s7674_s4, %s8707_s17 }
  0x5a   :  { %p7680_p6 = pnand %p7678_p5, %p7675_p4 }
  0x5c   :  { %s41_s2 = sshll.u32 %s8730_s1, 4  ;;  %s42_s2 = int_to_ptr.vmem [resolvable:$true] %s41_s2 }
  0x5d   :  { %7683 = shalt.err (!%p7680_p6)
}
  0x5e   :  { %s7684_s15 = scalar_lea.vmem %s167_s28, 24576  ;;  %p7689_p8 = scmp.lt.s32.totalorder %s167_s28, %s167_s28 }
  0x5f   :  { %p7685_p7 = scmp.ne.s32.totalorder %s167_s28, %s7684_s15  ;;  %p7690_p9 = scmp.lt.s32.totalorder %s7684_s15, %s7684_s15 }
  0x61   :  { %p7691_p10 = por %p7690_p9, %p7689_p8 }
  0x63   :  { %p7692_p11 = pnand %p7691_p10, %p7685_p7 }
  0x65   :  { %7695 = shalt.err (!%p7692_p11)
}
  0x66   :  { %172 = dma.hbm_to_vmem [thread:$0]  %s8707_s17, 24576, %s167_s28, [#allocation22], %s7900_s11, %s7900_s11, %s7901_s26  }
  0x67   :  { %s7696_s3 = scalar_lea.vmem %s42_s2, 16  ;;  %p7701_p13 = scmp.lt.s32.totalorder %s42_s2, %s42_s2 }
  0x68   :  { %p7697_p12 = scmp.ne.s32.totalorder %s42_s2, %s7696_s3  ;;  %p7702_p0 = scmp.lt.s32.totalorder %s7696_s3, %s7696_s3 }
  0x6a   :  { %p7703_p1 = por %p7702_p0, %p7701_p13 }
  0x6c   :  { %p7704_p2 = pnand %p7703_p1, %p7697_p12 }
  0x6e   :  { %7707 = shalt.err (!%p7704_p2)
}
  0x6f   :  { %s7903_s20 = smov [#allocation4]   ;;  %s7904_s22 = smov [#allocation8]  }
  0x70   :  { %44 = dma.vmem_to_smem %s42_s2, 16, %s7903_s20, [#allocation7]  }
  0x71   :  { %s51_s7 = sshll.u32 %s7904_s22, 4  ;;  %s7905_s24 = smov [#allocation11]   ;;  %s52_s7 = int_to_ptr.vmem [resolvable:$true] %s51_s7 }
  0x72   :  { %s72_s25 = sshll.u32 %s7905_s24, 4  ;;  %s8731_s29 = sld [smem:[#allocation50_spill]]  ;;  %s8101_s25 = int_to_ptr.vmem [resolvable:$true] %s72_s25 }
  0x78   :  { %s7708_s17 = scalar_lea.hbm %s8731_s29, 128 }
  0x79   :  { %p7709_p3 = scmp.ne.s32.totalorder %s8731_s29, %s7708_s17  ;;  %p7712_p4 = scmp.lt.u32.totalorder %s7708_s17, %s8731_s29 }
  0x7b   :  { %p7714_p5 = pnand %p7712_p4, %p7709_p3 }
  0x7d   :  { %7717 = shalt.err (!%p7714_p5)
}
  0x7e   :  { %s7718_s2 = scalar_lea.vmem %s52_s7, 128  ;;  %p7723_p7 = scmp.lt.s32.totalorder %s52_s7, %s52_s7 }
  0x7f   :  { %p7719_p6 = scmp.ne.s32.totalorder %s52_s7, %s7718_s2  ;;  %p7724_p8 = scmp.lt.s32.totalorder %s7718_s2, %s7718_s2 }
  0x81   :  { %p7725_p9 = por %p7724_p8, %p7723_p7 }
  0x83   :  { %p7726_p10 = pnand %p7725_p9, %p7719_p6 }
  0x85   :  { %7729 = shalt.err (!%p7726_p10)
}
  0x86   :  { %54 = dma.hbm_to_vmem [thread:$0]  %s8731_s29, 128, %s52_s7, [#allocation5]  }
  0x87   :  { %s8732_s20 = sld [smem:[#allocation54_spill]] }
  0x8d   :  { %s7730_s22 = scalar_lea.hbm %s8732_s20, 1024 }
  0x8e   :  { %p7731_p11 = scmp.ne.s32.totalorder %s8732_s20, %s7730_s22  ;;  %p7734_p12 = scmp.lt.u32.totalorder %s7730_s22, %s8732_s20 }
  0x90   :  { %p7736_p13 = pnand %p7734_p12, %p7731_p11 }
  0x92   :  { %7739 = shalt.err (!%p7736_p13)
}
  0x93   :  { %s7740_s28 = scalar_lea.vmem %s8101_s25, 1024  ;;  %p7745_p1 = scmp.lt.s32.totalorder %s8101_s25, %s8101_s25 }
  0x94   :  { %p7741_p0 = scmp.ne.s32.totalorder %s8101_s25, %s7740_s28  ;;  %p7746_p2 = scmp.lt.s32.totalorder %s7740_s28, %s7740_s28 }
  0x96   :  { %p7747_p3 = por %p7746_p2, %p7745_p1 }
  0x98   :  { %p7748_p4 = pnand %p7747_p3, %p7741_p0 }
  0x9a   :  { %7751 = shalt.err (!%p7748_p4)
}
  0x9b   :  { %s8733_s7 = smov 4   ;;  %s8734_s29 = smov 64  }
  0x9c   :  { %78 = dma.hbm_to_vmem [thread:$0]  %s8732_s20, 1024, %s8101_s25, [#allocation10], %s8734_s29, %s8734_s29, %s8733_s7  }
  0x9d   :  { %s7906_s30 = smov [#allocation14]   ;;  %s7907_s15 = smov [#allocation17]  }
  0x9e   :  { %s100_s2 = sshll.u32 %s7906_s30, 4  ;;  %s128_s23 = sshll.u32 %s7907_s15, 4  ;;  %s101_s2 = int_to_ptr.vmem [resolvable:$true] %s100_s2  ;;  %s8135_s23 = int_to_ptr.vmem [resolvable:$true] %s128_s23 }
  0x9f   :  { %s7752_s22 = scalar_lea.hbm %s8699_s9, 1024 }
  0xa0   :  { %p7753_p5 = scmp.ne.s32.totalorder %s8699_s9, %s7752_s22  ;;  %p7756_p6 = scmp.lt.u32.totalorder %s7752_s22, %s8699_s9 }
  0xa2   :  { %p7758_p7 = pnand %p7756_p6, %p7753_p5 }
  0xa4   :  { %7761 = shalt.err (!%p7758_p7)
}
  0xa5   :  { %s7762_s25 = scalar_lea.vmem %s101_s2, 1024  ;;  %p7767_p9 = scmp.lt.s32.totalorder %s101_s2, %s101_s2 }
  0xa6   :  { %p7763_p8 = scmp.ne.s32.totalorder %s101_s2, %s7762_s25  ;;  %p7768_p10 = scmp.lt.s32.totalorder %s7762_s25, %s7762_s25 }
  0xa8   :  { %p7769_p11 = por %p7768_p10, %p7767_p9 }
  0xaa   :  { %p7770_p12 = pnand %p7769_p11, %p7763_p8 }
  0xac   :  { %7773 = shalt.err (!%p7770_p12)
}
  0xad   :  { %106 = dma.hbm_to_vmem [thread:$0]  %s8699_s9, 1024, %s101_s2, [#allocation13], %s8734_s29, %s8734_s29, %s8733_s7  }
  0xae   :  { %s7774_s30 = scalar_lea.hbm %s8703_s13, 1024 }
  0xaf   :  { %p7775_p13 = scmp.ne.s32.totalorder %s8703_s13, %s7774_s30  ;;  %p7778_p0 = scmp.lt.u32.totalorder %s7774_s30, %s8703_s13 }
  0xb1   :  { %p7780_p1 = pnand %p7778_p0, %p7775_p13 }
  0xb3   :  { %7783 = shalt.err (!%p7780_p1)
}
  0xb4   :  { %s7784_s24 = scalar_lea.vmem %s8135_s23, 1024  ;;  %p7789_p3 = scmp.lt.s32.totalorder %s8135_s23, %s8135_s23 }
  0xb5   :  { %p7785_p2 = scmp.ne.s32.totalorder %s8135_s23, %s7784_s24  ;;  %p7790_p4 = scmp.lt.s32.totalorder %s7784_s24, %s7784_s24 }
  0xb7   :  { %p7791_p5 = por %p7790_p4, %p7789_p3 }
  0xb9   :  { %p7792_p6 = pnand %p7791_p5, %p7785_p2 }
  0xbb   :  { %7795 = shalt.err (!%p7792_p6)
}
  0xbc   :  { %134 = dma.hbm_to_vmem [thread:$0]  %s8703_s13, 1024, %s8135_s23, [#allocation16], %s8734_s29, %s8734_s29, %s8733_s7  }
  0xbd   :  { %s7908_s1 = smov [#allocation20]   ;;  %s7909_s17 = smov [#allocation23]  }
  0xbe   :  { %s154_s27 = sshll.u32 %s7908_s1, 4  ;;  %s180_s25 = sshll.u32 %s7909_s17, 4  ;;  %s155_s27 = int_to_ptr.vmem [resolvable:$true] %s154_s27  ;;  %s8172_s25 = int_to_ptr.vmem [resolvable:$true] %s180_s25 }
  0xbf   :  { %s7796_s0 = scalar_lea.hbm %s8706_s16, 21504 }
  0xc0   :  { %p7797_p7 = scmp.ne.s32.totalorder %s8706_s16, %s7796_s0  ;;  %p7800_p8 = scmp.lt.u32.totalorder %s7796_s0, %s8706_s16 }
  0xc2   :  { %p7802_p9 = pnand %p7800_p8, %p7797_p7 }
  0xc4   :  { %7805 = shalt.err (!%p7802_p9)
}
  0xc5   :  { %s7806_s13 = scalar_lea.vmem %s155_s27, 21504  ;;  %p7811_p11 = scmp.lt.s32.totalorder %s155_s27, %s155_s27 }
  0xc6   :  { %p7807_p10 = scmp.ne.s32.totalorder %s155_s27, %s7806_s13  ;;  %p7812_p12 = scmp.lt.s32.totalorder %s7806_s13, %s7806_s13 }
  0xc8   :  { %p7813_p13 = por %p7812_p12, %p7811_p11 }
  0xca   :  { %p7814_p0 = pnand %p7813_p13, %p7807_p10 }
  0xcc   :  { %7817 = shalt.err (!%p7814_p0)
}
  0xcd   :  { %160 = dma.hbm_to_vmem [thread:$0]  %s8706_s16, 21504, %s155_s27, [#allocation19], %s7900_s11, %s7900_s11, %s7901_s26  }
  0xce   :  { %s7818_s22 = scalar_lea.hbm %s8709_s19, 384 }
  0xcf   :  { %p7819_p1 = scmp.ne.s32.totalorder %s8709_s19, %s7818_s22  ;;  %p7822_p2 = scmp.lt.u32.totalorder %s7818_s22, %s8709_s19 }
  0xd1   :  { %p7824_p3 = pnand %p7822_p2, %p7819_p1 }
  0xd3   :  { %7827 = shalt.err (!%p7824_p3)
}
  0xd4   :  { %s7828_s17 = scalar_lea.vmem %s8172_s25, 384  ;;  %p7833_p5 = scmp.lt.s32.totalorder %s8172_s25, %s8172_s25 }
  0xd5   :  { %p7829_p4 = scmp.ne.s32.totalorder %s8172_s25, %s7828_s17  ;;  %p7834_p6 = scmp.lt.s32.totalorder %s7828_s17, %s7828_s17 }
  0xd7   :  { %p7835_p7 = por %p7834_p6, %p7833_p5 }
  0xd9   :  { %p7836_p8 = pnand %p7835_p7, %p7829_p4 }
  0xdb   :  { %7839 = shalt.err (!%p7836_p8)
}
  0xdc   :  { %s7910_s16 = smov 48   ;;  %s7911_s11 = smov 3  }
  0xdd   :  { %186 = dma.hbm_to_vmem [thread:$0]  %s8709_s19, 384, %s8172_s25, [#allocation22], %s7910_s16, %s7910_s16, %s7911_s11  }
  0xde   :  { %7862 = dma.done.wait [#allocation7], 16  }
  0xdf   :  { %7863 = vsyncadd [#allocation7], 4294967280 }
  0xe0   :  { %7864 = dma.done.wait [#allocation5], 128  }
  0xe1   :  { %7865 = vsyncadd [#allocation5], 4294967168 }
  0xe2   :  { %7866 = dma.done.wait [#allocation10], 1152  }
  0xe3   :  { %7867 = vsyncadd [#allocation10], 4294966144 }
  0xe4   :  { %7868 = dma.done.wait [#allocation13], 2048  }
  0xe5   :  { %7869 = vsyncadd [#allocation13], 4294965248 }
  0xe6   :  { %7870 = dma.done.wait [#allocation16], 2048  }
  0xe7   :  { %7871 = vsyncadd [#allocation16], 4294965248 }
  0xe8   :  { %7872 = dma.done.wait [#allocation19], 24576  }
  0xe9   :  { %7873 = vsyncadd [#allocation19], 4294942720 }
  0xea   :  { %7874 = dma.done.wait [#allocation22], 24960  }
  0xeb   :  { %7875 = vsyncadd [#allocation22], 4294942336 }
  0xec   :  { %223 = sfence }
  0xed   :  { %s225_s20 = sld [smem:[#allocation4]]  ;;  %s8735_s4 = sld [smem:[#allocation53_spill]] }
  0xf3   :  { %s226_s19 = scalar_lea.vmem %s8735_s4, %s225_s20 }
  0xf4   :  { %v244_v0 = vld [vmem:[%s226_s19] sm:$0x1] }
  0xf5   :  { %245 = vst [vmem:[#allocation2] sm:$0x1] %v244_v0 }
  0xf6   :  { %270 = vsyncadd [#allocation3], 16  ;;  %s5774_s25 = sld [smem:[#allocation4 + $0x1]] }
  0xfc   :  { %s272_s5 = scalar_lea.vmem %s8735_s4, %s5774_s25 }
  0xfd   :  { %v292_v1 = vld [vmem:[%s272_s5] sm:$0x1] }
  0xfe   :  { %293 = vst [vmem:[#allocation2 + $0x1] sm:$0x1] %v292_v1 }
  0xff   :  { %318 = vsyncadd [#allocation3 + $0x1], 16  ;;  %s5775_s13 = sld [smem:[#allocation4 + $0x2]] }
 0x105   :  { %s320_s23 = scalar_lea.vmem %s8735_s4, %s5775_s13 }
 0x106   :  { %v340_v2 = vld [vmem:[%s320_s23] sm:$0x1] }
 0x107   :  { %341 = vst [vmem:[#allocation2 + $0x2] sm:$0x1] %v340_v2 }
 0x108   :  { %366 = vsyncadd [#allocation3 + $0x2], 16  ;;  %s5776_s3 = sld [smem:[#allocation4 + $0x3]] }
 0x10e   :  { %s368_s9 = scalar_lea.vmem %s8735_s4, %s5776_s3 }
 0x10f   :  { %v388_v3 = vld [vmem:[%s368_s9] sm:$0x1] }
 0x110   :  { %389 = vst [vmem:[#allocation2 + $0x3] sm:$0x1] %v388_v3 }
 0x111   :  { %414 = vsyncadd [#allocation3 + $0x3], 16  ;;  %s5777_s2 = sld [smem:[#allocation4 + $0x4]] }
 0x117   :  { %s416_s16 = scalar_lea.vmem %s8735_s4, %s5777_s2 }
 0x118   :  { %v436_v4 = vld [vmem:[%s416_s16] sm:$0x1] }
 0x119   :  { %437 = vst [vmem:[#allocation2 + $0x4] sm:$0x1] %v436_v4 }
 0x11a   :  { %462 = vsyncadd [#allocation3 + $0x4], 16  ;;  %s5778_s11 = sld [smem:[#allocation4 + $0x5]] }
 0x120   :  { %s464_s20 = scalar_lea.vmem %s8735_s4, %s5778_s11 }
 0x121   :  { %v484_v5 = vld [vmem:[%s464_s20] sm:$0x1] }
 0x122   :  { %485 = vst [vmem:[#allocation2 + $0x5] sm:$0x1] %v484_v5 }
 0x123   :  { %510 = vsyncadd [#allocation3 + $0x5], 16  ;;  %s5779_s28 = sld [smem:[#allocation4 + $0x6]] }
 0x129   :  { %s512_s25 = scalar_lea.vmem %s8735_s4, %s5779_s28 }
 0x12a   :  { %v532_v6 = vld [vmem:[%s512_s25] sm:$0x1] }
 0x12b   :  { %533 = vst [vmem:[#allocation2 + $0x6] sm:$0x1] %v532_v6 }
 0x12c   :  { %558 = vsyncadd [#allocation3 + $0x6], 16  ;;  %s5780_s30 = sld [smem:[#allocation4 + $0x7]] }
 0x132   :  { %s560_s13 = scalar_lea.vmem %s8735_s4, %s5780_s30 }
 0x133   :  { %v580_v7 = vld [vmem:[%s560_s13] sm:$0x1] }
 0x134   :  { %581 = vst [vmem:[#allocation2 + $0x7] sm:$0x1] %v580_v7 }
 0x135   :  { %606 = vsyncadd [#allocation3 + $0x7], 16 }
 0x136   :  { %7876 = dma.done.wait [#allocation3], 16 }
 0x137   :  { %7877 = vsyncadd [#allocation3], 4294967280 }
 0x138   :  { %7878 = dma.done.wait [#allocation3 + $0x1], 16 }
 0x139   :  { %7879 = vsyncadd [#allocation3 + $0x1], 4294967280 }
 0x13a   :  { %7880 = dma.done.wait [#allocation3 + $0x2], 16 }
 0x13b   :  { %7881 = vsyncadd [#allocation3 + $0x2], 4294967280 }
 0x13c   :  { %7882 = dma.done.wait [#allocation3 + $0x3], 16 }
 0x13d   :  { %7883 = vsyncadd [#allocation3 + $0x3], 4294967280 }
 0x13e   :  { %7884 = dma.done.wait [#allocation3 + $0x4], 16 }
 0x13f   :  { %7885 = vsyncadd [#allocation3 + $0x4], 4294967280 }
 0x140   :  { %7886 = dma.done.wait [#allocation3 + $0x5], 16 }
 0x141   :  { %7887 = vsyncadd [#allocation3 + $0x5], 4294967280 }
 0x142   :  { %7888 = dma.done.wait [#allocation3 + $0x6], 16 }
 0x143   :  { %7889 = vsyncadd [#allocation3 + $0x6], 4294967280 }
 0x144   :  { %7890 = dma.done.wait [#allocation3 + $0x7], 16 }
 0x145   :  { %7891 = vsyncadd [#allocation3 + $0x7], 4294967280  ;;  %v7912_v8 = vmov 0.0   ;;  %vm7913_vm0 = vmmov 0   ;;  %v6950_v9 = vld [vmem:[#allocation11] sm:$0xff]   ;;  %v6951_v10 = vld [vmem:[#allocation11 + $0x8] sm:$0xff]  }
 0x146   :  { %6444 = vmatprep.subr.bf16.mxu0 %v7912_v8  ;;  %6460 = vmatprep.mubr.msk.bf16.mxu0 %vm7913_vm0, %v7912_v8  ;;  %v6952_v11 = vld [vmem:[#allocation11 + $0x10] sm:$0xff]   ;;  %v6958_v12 = vld [vmem:[#allocation12] sm:$0xff]   ;;  %v6953_v13 = vld [vmem:[#allocation11 + $0x18] sm:$0xff]   ;;  %s8736_s9 = sld [smem:[#allocation52_spill]] }
 0x147   :  { %6464 = vmatprep.subr.bf16.mxu1 %v7912_v8  ;;  %6480 = vmatprep.mubr.msk.bf16.mxu1 %vm7913_vm0, %v7912_v8  ;;  %v6959_v14 = vld [vmem:[#allocation12 + $0x8] sm:$0xff]   ;;  %v6954_v15 = vld [vmem:[#allocation11 + $0x20] sm:$0xff]   ;;  %v6960_v16 = vld [vmem:[#allocation12 + $0x10] sm:$0xff]  }
 0x148   :  { %6445 = vmatpush3.bf16.msra.mxu0 %v6950_v9  ;;  %6465 = vmatpush3.bf16.msra.mxu1 %v6958_v12  ;;  %v6955_v17 = vld [vmem:[#allocation11 + $0x28] sm:$0xff]   ;;  %v6961_v18 = vld [vmem:[#allocation12 + $0x18] sm:$0xff]   ;;  %v6956_v19 = vld [vmem:[#allocation11 + $0x30] sm:$0xff]  }
 0x149   :  { %6446 = vmatprep.subr.bf16.mxu0 %v7912_v8  ;;  %6466 = vmatprep.subr.bf16.mxu1 %v7912_v8  ;;  %v6962_v20 = vld [vmem:[#allocation12 + $0x20] sm:$0xff]   ;;  %v6957_v21 = vld [vmem:[#allocation11 + $0x38] sm:$0xff]   ;;  %v634_v22 = vld [vmem:[#allocation8] sm:$0xff] }
 0x14a   :  { %v6963_v23 = vld [vmem:[#allocation12 + $0x28] sm:$0xff]   ;;  %v652_v24 = vpack.c.bf16 %v634_v22, %v634_v22  ;;  %v6964_v25 = vld [vmem:[#allocation12 + $0x30] sm:$0xff]   ;;  %v6965_v26 = vld [vmem:[#allocation12 + $0x38] sm:$0xff]  }
 0x14b   :  { %v6966_v27 = vld [vmem:[#allocation14] sm:$0xff]   ;;  %v6967_v28 = vld [vmem:[#allocation14 + $0x8] sm:$0xff]   ;;  %v6968_v29 = vld [vmem:[#allocation14 + $0x10] sm:$0xff]  }
 0x14c   :  { %6447 = vmatpush3.bf16.msra.mxu0 %v6951_v10  ;;  %6467 = vmatpush3.bf16.msra.mxu1 %v6959_v14  ;;  %v6969_v30 = vld [vmem:[#allocation14 + $0x18] sm:$0xff]   ;;  %v6970_v31 = vld [vmem:[#allocation14 + $0x20] sm:$0xff]   ;;  %v6971_v32 = vld [vmem:[#allocation14 + $0x28] sm:$0xff]  }
 0x14d   :  { %6448 = vmatprep.subr.bf16.mxu0 %v7912_v8  ;;  %6468 = vmatprep.subr.bf16.mxu1 %v7912_v8  ;;  %v5781_v33 = vld [vmem:[%s8696_s6] ss:$0 sm:$0xff]  ;;  %v748_v37 = vld [vmem:[#allocation9] sm:$0xff]  ;;  %v6972_v43 = vld [vmem:[#allocation14 + $0x30] sm:$0xff]  }
 0x14e   :  { %v6973_v44 = vld [vmem:[#allocation14 + $0x38] sm:$0xff]   ;;  %v6974_v45 = vld [vmem:[#allocation15] sm:$0xff]   ;;  %v6975_v46 = vld [vmem:[#allocation15 + $0x8] sm:$0xff]  }
 0x14f   :  { %v6976_v47 = vld [vmem:[#allocation15 + $0x10] sm:$0xff]   ;;  %v6977_v48 = vld [vmem:[#allocation15 + $0x18] sm:$0xff]   ;;  %v6978_v49 = vld [vmem:[#allocation15 + $0x20] sm:$0xff]  }
 0x150   :  { %6449 = vmatpush3.bf16.msra.mxu0 %v6952_v11  ;;  %6469 = vmatpush3.bf16.msra.mxu1 %v6960_v16  ;;  %v6979_v50 = vld [vmem:[#allocation15 + $0x28] sm:$0xff]   ;;  %v6980_v59 = vld [vmem:[#allocation15 + $0x30] sm:$0xff]   ;;  %v6981_v60 = vld [vmem:[#allocation15 + $0x38] sm:$0xff]  }
 0x151   :  { %6450 = vmatprep.subr.bf16.mxu0 %v7912_v8  ;;  %6470 = vmatprep.subr.bf16.mxu1 %v7912_v8  ;;  %v5790_v51 = vld [vmem:[%s8698_s8] ss:$0 sm:$0xff]  ;;  %v6982_v61 = vld [vmem:[#allocation18] ss:$12 sps:$4 sm:$0xff]   ;;  %v6984_v62 = vld [vmem:[#allocation18 + $0x4] ss:$12 sps:$4 sm:$0xff]  }
 0x152   :  { %v6988_v63 = vld [vmem:[#allocation18 + $0x1c] ss:$12 sps:$4 sm:$0xff]   ;;  %v6986_v0 = vld [vmem:[#allocation18 + $0x18] ss:$12 sps:$4 sm:$0xff]   ;;  %v6992_v1 = vld [vmem:[#allocation18 + $0x34] ss:$12 sps:$4 sm:$0xff]  }
 0x153   :  { %v6990_v2 = vld [vmem:[#allocation18 + $0x30] ss:$12 sps:$4 sm:$0xff]   ;;  %v6996_v3 = vld [vmem:[#allocation18 + $0x4c] ss:$12 sps:$4 sm:$0xff]   ;;  %v6994_v4 = vld [vmem:[#allocation18 + $0x48] ss:$12 sps:$4 sm:$0xff]  }
 0x154   :  { %6451 = vmatpush3.bf16.msra.mxu0 %v6953_v13  ;;  %6471 = vmatpush3.bf16.msra.mxu1 %v6961_v18  ;;  %v7000_v5 = vld [vmem:[#allocation18 + $0x64] ss:$12 sps:$4 sm:$0xff]   ;;  %v6998_v6 = vld [vmem:[#allocation18 + $0x60] ss:$12 sps:$4 sm:$0xff]   ;;  %v7004_v7 = vld [vmem:[#allocation18 + $0x7c] ss:$12 sps:$4 sm:$0xff]  }
 0x155   :  { %6452 = vmatprep.subr.bf16.mxu0 %v7912_v8  ;;  %6472 = vmatprep.subr.bf16.mxu1 %v7912_v8  ;;  %v7002_v9 = vld [vmem:[#allocation18 + $0x78] ss:$12 sps:$4 sm:$0xff]   ;;  %v7008_v10 = vld [vmem:[#allocation18 + $0x94] ss:$12 sps:$4 sm:$0xff]   ;;  %v7006_v11 = vld [vmem:[#allocation18 + $0x90] ss:$12 sps:$4 sm:$0xff]  }
 0x156   :  { %v7012_v12 = vld [vmem:[#allocation18 + $0xac] ss:$12 sps:$4 sm:$0xff]   ;;  %v7010_v13 = vld [vmem:[#allocation18 + $0xa8] ss:$12 sps:$4 sm:$0xff]   ;;  %v7016_v14 = vld [vmem:[#allocation21 + $0x4] ss:$12 sps:$4 sm:$0xff]  }
 0x157   :  { %v632_v16 = vld [vmem:[#allocation2] sm:$0xff]  ;;  %v7024_v22 = vld [vmem:[#allocation21 + $0x34] ss:$12 sps:$4 sm:$0xff]  }
 0x158   :  { %6453 = vmatpush3.bf16.msra.mxu0 %v6954_v15  ;;  %6473 = vmatpush3.bf16.msra.mxu1 %v6962_v20  ;;  %v7914_v15 = vmov 0   ;;  %v7014_v18 = vld [vmem:[#allocation21] ss:$12 sps:$4 sm:$0xff]   ;;  %v7020_v20 = vld [vmem:[#allocation21 + $0x1c] ss:$12 sps:$4 sm:$0xff]  }
 0x159   :  { %6454 = vmatprep.subr.bf16.mxu0 %v7912_v8  ;;  %6474 = vmatprep.subr.bf16.mxu1 %v7912_v8 }
 0x15c   :  { %6455 = vmatpush3.bf16.msra.mxu0 %v6955_v17  ;;  %6475 = vmatpush3.bf16.msra.mxu1 %v6963_v23  ;;  %v633_v17 = vmax.f32 %v632_v16, 0.0  ;;  %v7022_v23 = vld [vmem:[#allocation21 + $0x30] ss:$12 sps:$4 sm:$0xff]   ;;  %v7056_v16 = vld [vmem:[#allocation20 + $0x34] ss:$12 sps:$4 sm:$0xff]  }
 0x15d   :  { %6456 = vmatprep.subr.bf16.mxu0 %v7912_v8  ;;  %6476 = vmatprep.subr.bf16.mxu1 %v7912_v8 }
 0x160   :  { %6457 = vmatpush3.bf16.msra.mxu0 %v6956_v19  ;;  %6477 = vmatpush3.bf16.msra.mxu1 %v6964_v25  ;;  %v1123_v19 = vpack.c.bf16 %v633_v17, %v633_v17  ;;  %v7026_v25 = vld [vmem:[#allocation21 + $0x48] ss:$12 sps:$4 sm:$0xff]   ;;  %v7054_v17 = vld [vmem:[#allocation20 + $0x30] ss:$12 sps:$4 sm:$0xff]  }
 0x161   :  { %6458 = vmatprep.subr.bf16.mxu0 %v7912_v8  ;;  %6478 = vmatprep.subr.bf16.mxu1 %v7912_v8 }
 0x164   :  { %6459 = vmatpush3.bf16.msra.mxu0 %v6957_v21  ;;  %6479 = vmatpush3.bf16.msra.mxu1 %v6965_v26  ;;  %v7018_v21 = vld [vmem:[#allocation21 + $0x18] ss:$12 sps:$4 sm:$0xff]  }
 0x165   :  { %6484 = vmatprep.subr.bf16.mxu0 %v7912_v8  ;;  %6504 = vmatprep.subr.bf16.mxu1 %v7912_v8  ;;  %v7032_v26 = vld [vmem:[#allocation21 + $0x64] ss:$12 sps:$4 sm:$0xff]  }
 0x167   :  { %6461 = vmatmul.mubr.bf16.vlgmr.msra.gmra.mrb[0].mxu0 %v652_v24  ;;  %v7028_v24 = vld [vmem:[#allocation21 + $0x4c] ss:$12 sps:$4 sm:$0xff]  }
 0x168   :  { %6500 = vmatprep.mubr.msk.bf16.mxu0 %vm7913_vm0, %v7912_v8  ;;  %6485 = vmatpush3.bf16.msra.mxu0 %v6966_v27  ;;  %v7030_v27 = vld [vmem:[#allocation21 + $0x60] ss:$12 sps:$4 sm:$0xff]  }
 0x169   :  { %6486 = vmatprep.subr.bf16.mxu0 %v7912_v8 }
 0x16c   :  { %6487 = vmatpush3.bf16.msra.mxu0 %v6967_v28  ;;  %v7036_v28 = vld [vmem:[#allocation21 + $0x7c] ss:$12 sps:$4 sm:$0xff]  }
 0x16d   :  { %6488 = vmatprep.subr.bf16.mxu0 %v7912_v8 }
 0x170   :  { %6489 = vmatpush3.bf16.msra.mxu0 %v6968_v29  ;;  %v7034_v29 = vld [vmem:[#allocation21 + $0x78] ss:$12 sps:$4 sm:$0xff]  }
 0x171   :  { %6490 = vmatprep.subr.bf16.mxu0 %v7912_v8 }
 0x174   :  { %6491 = vmatpush3.bf16.msra.mxu0 %v6969_v30  ;;  %v5799_v30 = vld [vmem:[%s8700_s10] ss:$0 sm:$0xff] }
 0x175   :  { %6492 = vmatprep.subr.bf16.mxu0 %v7912_v8 }
 0x178   :  { %6493 = vmatpush3.bf16.msra.mxu0 %v6970_v31 }
 0x179   :  { %6494 = vmatprep.subr.bf16.mxu0 %v7912_v8 }
 0x17c   :  { %6495 = vmatpush3.bf16.msra.mxu0 %v6971_v32 }
 0x17d   :  { %6496 = vmatprep.subr.bf16.mxu0 %v7912_v8 }
 0x180   :  { %6497 = vmatpush3.bf16.msra.mxu0 %v6972_v43  ;;  %v7005_v43 = vld [vmem:[#allocation18 + $0x80] ss:$12 sps:$4 sm:$0xff]  }
 0x181   :  { %6498 = vmatprep.subr.bf16.mxu0 %v7912_v8 }
 0x184   :  { %6499 = vmatpush3.bf16.msra.mxu0 %v6973_v44  ;;  %v7009_v44 = vld [vmem:[#allocation18 + $0x98] ss:$12 sps:$4 sm:$0xff]  }
 0x185   :  { %1269 = vmatprep.subr.bf16.mxu0 %v6984_v62 }
 0x23a   :  { %v741_v34 = vpop.f32.mrb[0].mxu0 }
 0x23b   :  { %v742_v35 = vadd.f32 %v5781_v33, %v741_v34  ;;  %v6462_v36 = vpop.f32.mrb[1].mxu0 }
 0x23c   :  { %v744_v38 = vpop.f32.mrb[2].mxu0 }
 0x23d   :  { %v747_v39 = vmax.f32 %v742_v35, 0.0  ;;  %v6463_v40 = vpop.f32.mrb[3].mxu0 }
 0x23e   :  { %v6993_v40 = vld [vmem:[#allocation18 + $0x38] ss:$12 sps:$4 sm:$0xff]  }
 0x23f   :  { %v749_v41 = vadd.f32 %v748_v37, %v747_v39  ;;  %v6985_v37 = vld [vmem:[#allocation18 + $0x8] ss:$12 sps:$4 sm:$0xff]   ;;  %v6989_v39 = vld [vmem:[#allocation18 + $0x20] ss:$12 sps:$4 sm:$0xff]  }
 0x241   :  { %v767_v42 = vpack.c.bf16 %v749_v41, %v749_v41  ;;  %v6997_v41 = vld [vmem:[#allocation18 + $0x50] ss:$12 sps:$4 sm:$0xff]  }
 0x243   :  { %6481 = vmatmul.mubr.bf16.vlgmr.msra.gmra.mrb[0].mxu1 %v767_v42  ;;  %v7001_v42 = vld [vmem:[#allocation18 + $0x68] ss:$12 sps:$4 sm:$0xff]  }
 0x244   :  { %6520 = vmatprep.mubr.msk.bf16.mxu1 %vm7913_vm0, %v7912_v8  ;;  %6505 = vmatpush3.bf16.msra.mxu1 %v6974_v45  ;;  %v7013_v45 = vld [vmem:[#allocation18 + $0xb0] ss:$12 sps:$4 sm:$0xff]  }
 0x245   :  { %6506 = vmatprep.subr.bf16.mxu1 %v7912_v8 }
 0x248   :  { %6507 = vmatpush3.bf16.msra.mxu1 %v6975_v46  ;;  %v7017_v46 = vld [vmem:[#allocation21 + $0x8] ss:$12 sps:$4 sm:$0xff]  }
 0x249   :  { %6508 = vmatprep.subr.bf16.mxu1 %v7912_v8 }
 0x24c   :  { %6509 = vmatpush3.bf16.msra.mxu1 %v6976_v47  ;;  %v7021_v47 = vld [vmem:[#allocation21 + $0x20] ss:$12 sps:$4 sm:$0xff]  }
 0x24d   :  { %6510 = vmatprep.subr.bf16.mxu1 %v7912_v8 }
 0x250   :  { %6511 = vmatpush3.bf16.msra.mxu1 %v6977_v48  ;;  %v7025_v48 = vld [vmem:[#allocation21 + $0x38] ss:$12 sps:$4 sm:$0xff]  }
 0x251   :  { %6512 = vmatprep.subr.bf16.mxu1 %v7912_v8 }
 0x254   :  { %6513 = vmatpush3.bf16.msra.mxu1 %v6978_v49  ;;  %v7029_v49 = vld [vmem:[#allocation21 + $0x50] ss:$12 sps:$4 sm:$0xff]  }
 0x255   :  { %6514 = vmatprep.subr.bf16.mxu1 %v7912_v8 }
 0x258   :  { %6515 = vmatpush3.bf16.msra.mxu1 %v6979_v50  ;;  %v7033_v50 = vld [vmem:[#allocation21 + $0x68] ss:$12 sps:$4 sm:$0xff]  }
 0x259   :  { %6516 = vmatprep.subr.bf16.mxu1 %v7912_v8 }
 0x25c   :  { %6517 = vmatpush3.bf16.msra.mxu1 %v6980_v59 }
 0x25d   :  { %6518 = vmatprep.subr.bf16.mxu1 %v7912_v8 }
 0x260   :  { %6519 = vmatpush3.bf16.msra.mxu1 %v6981_v60 }
 0x261   :  { %6524 = vmatprep.subr.bf16.mxu1 %v7912_v8 }
 0x316   :  { %v856_v52 = vpop.f32.mrb[0].mxu1 }
 0x317   :  { %v857_v53 = vadd.f32 %v5790_v51, %v856_v52  ;;  %v6482_v54 = vpop.f32.mrb[1].mxu1  ;;  %v7037_v51 = vld [vmem:[#allocation21 + $0x80] ss:$12 sps:$4 sm:$0xff]  }
 0x318   :  { %v859_v55 = vpop.f32.mrb[2].mxu1  ;;  %v7040_v52 = vld [vmem:[#allocation21 + $0x94] ss:$12 sps:$4 sm:$0xff]   ;;  %v7041_v54 = vld [vmem:[#allocation21 + $0x98] ss:$12 sps:$4 sm:$0xff]  }
 0x319   :  { %v862_v56 = vmax.f32 %v857_v53, 0.0  ;;  %v6483_v57 = vpop.f32.mrb[3].mxu1  ;;  %v7038_v53 = vld [vmem:[#allocation21 + $0x90] ss:$12 sps:$4 sm:$0xff]   ;;  %v7042_v55 = vld [vmem:[#allocation21 + $0xa8] ss:$12 sps:$4 sm:$0xff]  }
 0x31a   :  { %v7045_v57 = vld [vmem:[#allocation21 + $0xb0] ss:$12 sps:$4 sm:$0xff]  }
 0x31b   :  { %v880_v58 = vpack.c.bf16 %v862_v56, %v862_v56  ;;  %v7044_v56 = vld [vmem:[#allocation21 + $0xac] ss:$12 sps:$4 sm:$0xff]  }
 0x31d   :  { %6501 = vmatmul.mubr.bf16.vlgmr.msra.gmra.mrb[4].mxu0 %v880_v58  ;;  %v5808_v58 = vld [vmem:[%s8702_s12] ss:$0 sm:$0xff] }
 0x31e   :  { %1270 = vmatpush1.bf16.msra.mxu0 %v6982_v61  ;;  %1301 = vmatprep.mubr.bf16.mxu0 %v7914_v15 }
 0x31f   :  { %1271 = vmatprep.subr.bf16.mxu0 %v6988_v63  ;;  %v1121_v63 = vld [vmem:[%s8736_s9] sm:$0xff] }
 0x322   :  { %1272 = vmatpush1.bf16.msra.mxu0 %v6986_v0 }
 0x323   :  { %1273 = vmatprep.subr.bf16.mxu0 %v6992_v1 }
 0x326   :  { %1274 = vmatpush1.bf16.msra.mxu0 %v6990_v2 }
 0x327   :  { %1275 = vmatprep.subr.bf16.mxu0 %v6996_v3 }
 0x32a   :  { %1276 = vmatpush1.bf16.msra.mxu0 %v6994_v4 }
 0x32b   :  { %1277 = vmatprep.subr.bf16.mxu0 %v7000_v5 }
 0x32e   :  { %1278 = vmatpush1.bf16.msra.mxu0 %v6998_v6 }
 0x32f   :  { %1279 = vmatprep.subr.bf16.mxu0 %v7004_v7 }
 0x332   :  { %1280 = vmatpush1.bf16.msra.mxu0 %v7002_v9  ;;  %v7048_v9 = vld [vmem:[#allocation20 + $0x4] ss:$12 sps:$4 sm:$0xff]  }
 0x333   :  { %1281 = vmatprep.subr.bf16.mxu0 %v7008_v10  ;;  %v7046_v10 = vld [vmem:[#allocation20] ss:$12 sps:$4 sm:$0xff]  }
 0x336   :  { %1282 = vmatpush1.bf16.msra.mxu0 %v7006_v11  ;;  %v7049_v11 = vld [vmem:[#allocation20 + $0x8] ss:$12 sps:$4 sm:$0xff]  }
 0x337   :  { %1283 = vmatprep.subr.bf16.mxu0 %v7012_v12  ;;  %v7052_v12 = vld [vmem:[#allocation20 + $0x1c] ss:$12 sps:$4 sm:$0xff]  }
 0x33a   :  { %1284 = vmatpush1.bf16.msra.mxu0 %v7010_v13  ;;  %v7050_v13 = vld [vmem:[#allocation20 + $0x18] ss:$12 sps:$4 sm:$0xff]  }
 0x33b   :  { %1528 = vmatprep.subr.bf16.mxu0 %v7016_v14  ;;  %v7053_v14 = vld [vmem:[#allocation20 + $0x20] ss:$12 sps:$4 sm:$0xff]  }
 0x33d   :  { %1302 = vmatmul.mubr.bf16.vlgmr.msra.gmra.mrb[8].mxu0 %v1123_v19 }
 0x33e   :  { %1529 = vmatpush1.bf16.msra.mxu0 %v7014_v18  ;;  %1560 = vmatprep.mubr.bf16.mxu0 %v7914_v15  ;;  %v7057_v18 = vld [vmem:[#allocation20 + $0x38] ss:$12 sps:$4 sm:$0xff]  }
 0x33f   :  { %1530 = vmatprep.subr.bf16.mxu0 %v7020_v20  ;;  %v7058_v20 = vld [vmem:[#allocation20 + $0x48] ss:$12 sps:$4 sm:$0xff]  }
 0x342   :  { %1531 = vmatpush1.bf16.msra.mxu0 %v7018_v21  ;;  %v7061_v21 = vld [vmem:[#allocation20 + $0x50] ss:$12 sps:$4 sm:$0xff]  }
 0x343   :  { %1532 = vmatprep.subr.bf16.mxu0 %v7024_v22  ;;  %v7064_v22 = vld [vmem:[#allocation20 + $0x64] ss:$12 sps:$4 sm:$0xff]  }
 0x346   :  { %1533 = vmatpush1.bf16.msra.mxu0 %v7022_v23  ;;  %v7062_v23 = vld [vmem:[#allocation20 + $0x60] ss:$12 sps:$4 sm:$0xff]  }
 0x347   :  { %1534 = vmatprep.subr.bf16.mxu0 %v7028_v24  ;;  %v7065_v24 = vld [vmem:[#allocation20 + $0x68] ss:$12 sps:$4 sm:$0xff]  }
 0x34a   :  { %1535 = vmatpush1.bf16.msra.mxu0 %v7026_v25  ;;  %v7068_v25 = vld [vmem:[#allocation20 + $0x7c] ss:$12 sps:$4 sm:$0xff]  }
 0x34b   :  { %1536 = vmatprep.subr.bf16.mxu0 %v7032_v26  ;;  %v7066_v26 = vld [vmem:[#allocation20 + $0x78] ss:$12 sps:$4 sm:$0xff]  }
 0x34e   :  { %1537 = vmatpush1.bf16.msra.mxu0 %v7030_v27  ;;  %v7069_v27 = vld [vmem:[#allocation20 + $0x80] ss:$12 sps:$4 sm:$0xff]  }
 0x34f   :  { %1538 = vmatprep.subr.bf16.mxu0 %v7036_v28  ;;  %v7072_v28 = vld [vmem:[#allocation20 + $0x94] ss:$12 sps:$4 sm:$0xff]  }
 0x352   :  { %1539 = vmatpush1.bf16.msra.mxu0 %v7034_v29  ;;  %v7070_v29 = vld [vmem:[#allocation20 + $0x90] ss:$12 sps:$4 sm:$0xff]  }
 0x353   :  { %1540 = vmatprep.subr.bf16.mxu0 %v7040_v52 }
 0x356   :  { %1541 = vmatpush1.bf16.msra.mxu0 %v7038_v53 }
 0x357   :  { %1542 = vmatprep.subr.bf16.mxu0 %v7044_v56 }
 0x35a   :  { %1543 = vmatpush1.bf16.msra.mxu0 %v7042_v55 }
 0x35b   :  { %1813 = vmatprep.subr.bf16.mxu0 %v7048_v9 }
 0x3f0   :  { %v969_v31 = vpop.f32.mrb[4].mxu0 }
 0x3f1   :  { %v970_v32 = vadd.f32 %v5799_v30, %v969_v31  ;;  %v6502_v33 = vpop.f32.mrb[5].mxu0  ;;  %v7073_v30 = vld [vmem:[#allocation20 + $0x98] ss:$12 sps:$4 sm:$0xff]  }
 0x3f2   :  { %v972_v34 = vpop.f32.mrb[6].mxu0  ;;  %v7076_v31 = vld [vmem:[#allocation20 + $0xac] ss:$12 sps:$4 sm:$0xff]   ;;  %v7077_v33 = vld [vmem:[#allocation20 + $0xb0] ss:$12 sps:$4 sm:$0xff]  }
 0x3f3   :  { %v975_v35 = vmax.f32 %v970_v32, 0.0  ;;  %v6503_v36 = vpop.f32.mrb[7].mxu0  ;;  %v7074_v32 = vld [vmem:[#allocation20 + $0xa8] ss:$12 sps:$4 sm:$0xff]   ;;  %v7080_v34 = vld [vmem:[#allocation21 + $0xc4] ss:$12 sps:$4 sm:$0xff]  }
 0x3f5   :  { %v993_v38 = vpack.c.bf16 %v975_v35, %v975_v35  ;;  %v1126_v35 = vlaneseq }
 0x3f7   :  { %6521 = vmatmul.mubr.bf16.vlgmr.msra.gmra.mrb[4].mxu1 %v993_v38  ;;  %v1127_v36 = vshrl.u32 %v1126_v35, 7  ;;  %v1383_v38 = vld [vmem:[#allocation23] sm:$0x7] }
 0x3f8   :  { %6525 = vmatpush3.bf16.msra.mxu1 %v6985_v37  ;;  %6540 = vmatprep.mubr.msk.bf16.mxu1 %vm7913_vm0, %v7912_v8 }
 0x3f9   :  { %6526 = vmatprep.subr.bf16.mxu1 %v7912_v8  ;;  %v8329_v37 = vsub.s32 0, %v1127_v36 }
 0x3fc   :  { %6527 = vmatpush3.bf16.msra.mxu1 %v6989_v39  ;;  %v1124_v39 = vld [vmem:[%s8708_s18] sm:$0x7] }
 0x3fd   :  { %6528 = vmatprep.subr.bf16.mxu1 %v7912_v8 }
 0x400   :  { %6529 = vmatpush3.bf16.msra.mxu1 %v6993_v40  ;;  %v8334_v40 = vsub.s32 1, %v1127_v36 }
 0x401   :  { %6530 = vmatprep.subr.bf16.mxu1 %v7912_v8 }
 0x404   :  { %6531 = vmatpush3.bf16.msra.mxu1 %v6997_v41  ;;  %v1129_v41 = vrot.slane %v1124_v39, %v8329_v37 }
 0x405   :  { %6532 = vmatprep.subr.bf16.mxu1 %v7912_v8 }
 0x408   :  { %6533 = vmatpush3.bf16.msra.mxu1 %v7001_v42  ;;  %v1388_v42 = vrot.slane %v1383_v38, %v8329_v37 }
 0x409   :  { %6534 = vmatprep.subr.bf16.mxu1 %v7912_v8 }
 0x40c   :  { %6535 = vmatpush3.bf16.msra.mxu1 %v7005_v43  ;;  %v1133_v43 = vrot.slane %v1124_v39, %v8334_v40 }
 0x40d   :  { %6536 = vmatprep.subr.bf16.mxu1 %v7912_v8 }
 0x410   :  { %6537 = vmatpush3.bf16.msra.mxu1 %v7009_v44  ;;  %v1392_v44 = vrot.slane %v1383_v38, %v8334_v40 }
 0x411   :  { %6538 = vmatprep.subr.bf16.mxu1 %v7912_v8 }
 0x414   :  { %6539 = vmatpush3.bf16.msra.mxu1 %v7013_v45  ;;  %v6864_v45 = vadd.f32 %v1388_v42, %v1129_v41  ;;  %v7106_v42 = vld [vmem:[#allocation21 + $0x168] ss:$12 sps:$4 sm:$0xff]  }
 0x415   :  { %6544 = vmatprep.subr.bf16.mxu1 %v7912_v8 }
 0x417   :  { %6541 = vmatmul.mubr.bf16.vlgmr.msra.gmra.mrb[8].mxu1 %v1123_v19  ;;  %v7060_v19 = vld [vmem:[#allocation20 + $0x4c] ss:$12 sps:$4 sm:$0xff]  }
 0x418   :  { %6545 = vmatpush3.bf16.msra.mxu1 %v7017_v46  ;;  %6560 = vmatprep.mubr.msk.bf16.mxu1 %vm7913_vm0, %v7912_v8 }
 0x419   :  { %6546 = vmatprep.subr.bf16.mxu1 %v7912_v8 }
 0x41c   :  { %6547 = vmatpush3.bf16.msra.mxu1 %v7021_v47 }
 0x41d   :  { %6548 = vmatprep.subr.bf16.mxu1 %v7912_v8 }
 0x420   :  { %6549 = vmatpush3.bf16.msra.mxu1 %v7025_v48  ;;  %v6866_v48 = vadd.f32 %v1392_v44, %v1133_v43  ;;  %v7109_v43 = vld [vmem:[#allocation21 + $0x170] ss:$12 sps:$4 sm:$0xff]  }
 0x421   :  { %6550 = vmatprep.subr.bf16.mxu1 %v7912_v8 }
 0x424   :  { %6551 = vmatpush3.bf16.msra.mxu1 %v7029_v49 }
 0x425   :  { %6552 = vmatprep.subr.bf16.mxu1 %v7912_v8 }
 0x428   :  { %6553 = vmatpush3.bf16.msra.mxu1 %v7033_v50 }
 0x429   :  { %6554 = vmatprep.subr.bf16.mxu1 %v7912_v8 }
 0x42c   :  { %6555 = vmatpush3.bf16.msra.mxu1 %v7037_v51 }
 0x42d   :  { %6556 = vmatprep.subr.bf16.mxu1 %v7912_v8 }
 0x430   :  { %6557 = vmatpush3.bf16.msra.mxu1 %v7041_v54 }
 0x431   :  { %6558 = vmatprep.subr.bf16.mxu1 %v7912_v8 }
 0x434   :  { %6559 = vmatpush3.bf16.msra.mxu1 %v7045_v57 }
 0x435   :  { %6564 = vmatprep.subr.bf16.mxu1 %v7912_v8 }
 0x4ca   :  { %v1082_v59 = vpop.f32.mrb[4].mxu1 }
 0x4cb   :  { %v1083_v60 = vadd.f32 %v5808_v58, %v1082_v59  ;;  %v6522_v61 = vpop.f32.mrb[5].mxu1 }
 0x4cc   :  { %v1085_v62 = vpop.f32.mrb[6].mxu1  ;;  %v8340_v61 = vsub.s32 2, %v1127_v36  ;;  %v7102_v36 = vld [vmem:[#allocation21 + $0x150] ss:$12 sps:$4 sm:$0xff]  }
 0x4cd   :  { %v8308_v0 = vmax.f32 %v1083_v60, 0.0  ;;  %v6523_v1 = vpop.f32.mrb[7].mxu1 }
 0x4ce   :  { %v1137_v1 = vrot.slane %v1124_v39, %v8340_v61  ;;  %v7108_v39 = vld [vmem:[#allocation21 + $0x16c] ss:$12 sps:$4 sm:$0xff]  }
 0x4cf   :  { %v8311_v2 = vadd.f32 %v1121_v63, %v8308_v0  ;;  %v1396_v63 = vrot.slane %v1383_v38, %v8340_v61  ;;  %v7105_v38 = vld [vmem:[#allocation21 + $0x158] ss:$12 sps:$4 sm:$0xff]  }
 0x4d1   :  { %v1382_v3 = vpack.c.bf16 %v8311_v2, %v8311_v2 }
 0x4d3   :  { %1561 = vmatmul.mubr.bf16.vlgmr.msra.gmra.mrb[8].mxu0 %v1382_v3  ;;  %6561 = vmatmul.mubr.bf16.vlgmr.msra.gmra.mrb[12].mxu1 %v1382_v3 }
 0x4d4   :  { %1845 = vmatprep.mubr.bf16.mxu0 %v7914_v15  ;;  %6580 = vmatprep.mubr.msk.bf16.mxu1 %vm7913_vm0, %v7912_v8 }
 0x4d5   :  { %1814 = vmatpush1.bf16.msra.mxu0 %v7046_v10  ;;  %6565 = vmatpush3.bf16.msra.mxu1 %v7049_v11 }
 0x4d6   :  { %6566 = vmatprep.subr.bf16.mxu1 %v7912_v8  ;;  %1815 = vmatprep.subr.bf16.mxu0 %v7052_v12 }
 0x4d9   :  { %1816 = vmatpush1.bf16.msra.mxu0 %v7050_v13  ;;  %6567 = vmatpush3.bf16.msra.mxu1 %v7053_v14 }
 0x4da   :  { %6568 = vmatprep.subr.bf16.mxu1 %v7912_v8  ;;  %1817 = vmatprep.subr.bf16.mxu0 %v7056_v16 }
 0x4dd   :  { %1818 = vmatpush1.bf16.msra.mxu0 %v7054_v17  ;;  %6569 = vmatpush3.bf16.msra.mxu1 %v7057_v18  ;;  %v7078_v18 = vld [vmem:[#allocation21 + $0xc0] ss:$12 sps:$4 sm:$0xff]  }
 0x4de   :  { %6570 = vmatprep.subr.bf16.mxu1 %v7912_v8  ;;  %1819 = vmatprep.subr.bf16.mxu0 %v7060_v19  ;;  %v7081_v19 = vld [vmem:[#allocation21 + $0xc8] ss:$12 sps:$4 sm:$0xff]  }
 0x4e1   :  { %1820 = vmatpush1.bf16.msra.mxu0 %v7058_v20  ;;  %6571 = vmatpush3.bf16.msra.mxu1 %v7061_v21  ;;  %v7084_v21 = vld [vmem:[#allocation21 + $0xdc] ss:$12 sps:$4 sm:$0xff]  }
 0x4e2   :  { %6572 = vmatprep.subr.bf16.mxu1 %v7912_v8  ;;  %1821 = vmatprep.subr.bf16.mxu0 %v7064_v22  ;;  %v7085_v22 = vld [vmem:[#allocation21 + $0xe0] ss:$12 sps:$4 sm:$0xff]  }
 0x4e5   :  { %1822 = vmatpush1.bf16.msra.mxu0 %v7062_v23  ;;  %6573 = vmatpush3.bf16.msra.mxu1 %v7065_v24  ;;  %v7088_v23 = vld [vmem:[#allocation21 + $0xf4] ss:$12 sps:$4 sm:$0xff]   ;;  %v7089_v24 = vld [vmem:[#allocation21 + $0xf8] ss:$12 sps:$4 sm:$0xff]  }
 0x4e6   :  { %1823 = vmatprep.subr.bf16.mxu0 %v7068_v25  ;;  %6574 = vmatprep.subr.bf16.mxu1 %v7912_v8  ;;  %v7092_v25 = vld [vmem:[#allocation21 + $0x10c] ss:$12 sps:$4 sm:$0xff]  }
 0x4e9   :  { %1824 = vmatpush1.bf16.msra.mxu0 %v7066_v26  ;;  %6575 = vmatpush3.bf16.msra.mxu1 %v7069_v27  ;;  %v7090_v26 = vld [vmem:[#allocation21 + $0x108] ss:$12 sps:$4 sm:$0xff]   ;;  %v7093_v27 = vld [vmem:[#allocation21 + $0x110] ss:$12 sps:$4 sm:$0xff]  }
 0x4ea   :  { %v8318_v4 = vpop.f32.mrb[8].mxu1  ;;  %1825 = vmatprep.subr.bf16.mxu0 %v7072_v28  ;;  %6576 = vmatprep.subr.bf16.mxu1 %v7912_v8  ;;  %v7096_v28 = vld [vmem:[#allocation21 + $0x124] ss:$12 sps:$4 sm:$0xff]  }
 0x4eb   :  { %v6542_v5 = vpop.f32.mrb[9].mxu1 }
 0x4ec   :  { %v1347_v6 = vpop.f32.mrb[10].mxu1 }
 0x4ed   :  { %v6543_v7 = vpop.f32.mrb[11].mxu1  ;;  %1826 = vmatpush1.bf16.msra.mxu0 %v7070_v29  ;;  %6577 = vmatpush3.bf16.msra.mxu1 %v7073_v30  ;;  %v7094_v29 = vld [vmem:[#allocation21 + $0x120] ss:$12 sps:$4 sm:$0xff]   ;;  %v7097_v30 = vld [vmem:[#allocation21 + $0x128] ss:$12 sps:$4 sm:$0xff]  }
 0x4ee   :  { %1827 = vmatprep.subr.bf16.mxu0 %v7076_v31  ;;  %6578 = vmatprep.subr.bf16.mxu1 %v7912_v8  ;;  %v1345_v7 = vadd.f32 %v8318_v4, %v1137_v1  ;;  %v7082_v4 = vld [vmem:[#allocation21 + $0xd8] ss:$12 sps:$4 sm:$0xff]   ;;  %v7100_v31 = vld [vmem:[#allocation21 + $0x13c] ss:$12 sps:$4 sm:$0xff]   ;;  %v7133_v1 = vld [vmem:[#allocation20 + $0x140] ss:$12 sps:$4 sm:$0xff]  }
 0x4f1   :  { %1828 = vmatpush1.bf16.msra.mxu0 %v7074_v32  ;;  %6579 = vmatpush3.bf16.msra.mxu1 %v7077_v33  ;;  %v7098_v32 = vld [vmem:[#allocation21 + $0x138] ss:$12 sps:$4 sm:$0xff]   ;;  %v7101_v33 = vld [vmem:[#allocation21 + $0x140] ss:$12 sps:$4 sm:$0xff]  }
 0x4f2   :  { %2074 = vmatprep.subr.bf16.mxu0 %v7080_v34  ;;  %6584 = vmatprep.subr.bf16.mxu1 %v7912_v8  ;;  %v7104_v34 = vld [vmem:[#allocation21 + $0x154] ss:$12 sps:$4 sm:$0xff]  }
 0x5a6   :  { %v1562_v46 = vpop.f32.mrb[8].mxu0  ;;  %v1603_v47 = vpop.f32.mrb[12].mxu1 }
 0x5a7   :  { %v6865_v49 = vadd.f32 %v6864_v45, %v1562_v46  ;;  %v1564_v50 = vpop.f32.mrb[9].mxu0  ;;  %v6562_v51 = vpop.f32.mrb[13].mxu1  ;;  %v1604_v5 = vadd.f32 %v1603_v47, %v1396_v63  ;;  %v7112_v46 = vld [vmem:[#allocation20 + $0xc4] ss:$12 sps:$4 sm:$0xff]   ;;  %v7110_v47 = vld [vmem:[#allocation20 + $0xc0] ss:$12 sps:$4 sm:$0xff]  }
 0x5a8   :  { %v1566_v52 = vpop.f32.mrb[10].mxu0  ;;  %v1606_v53 = vpop.f32.mrb[14].mxu1  ;;  %v6867_v57 = vadd.f32 %v6866_v48, %v1564_v50  ;;  %v7113_v48 = vld [vmem:[#allocation20 + $0xc8] ss:$12 sps:$4 sm:$0xff]   ;;  %v7114_v50 = vld [vmem:[#allocation20 + $0xd8] ss:$12 sps:$4 sm:$0xff]  }
 0x5a9   :  { %v5865_v54 = vmul.f32 -1.442695, %v6865_v49  ;;  %v1567_v55 = vpop.f32.mrb[11].mxu0  ;;  %v6563_v56 = vpop.f32.mrb[15].mxu1  ;;  %v7116_v49 = vld [vmem:[#allocation20 + $0xdc] ss:$12 sps:$4 sm:$0xff]  }
 0x5aa   :  { %v5866_v58 = vmul.f32 -1.442695, %v6867_v57  ;;  %v7117_v51 = vld [vmem:[#allocation20 + $0xe0] ss:$12 sps:$4 sm:$0xff]   ;;  %v7118_v53 = vld [vmem:[#allocation20 + $0xf0] ss:$12 sps:$4 sm:$0xff]  }
 0x5ab   :  { %7502 = vpow2.f32 %v5865_v54  ;;  %v7120_v52 = vld [vmem:[#allocation20 + $0xf4] ss:$12 sps:$4 sm:$0xff]   ;;  %v7121_v54 = vld [vmem:[#allocation20 + $0xf8] ss:$12 sps:$4 sm:$0xff]   ;;  %v7125_v57 = vld [vmem:[#allocation20 + $0x110] ss:$12 sps:$4 sm:$0xff]  }
 0x5ac   :  { %7504 = vpow2.f32 %v5866_v58  ;;  %v7124_v55 = vld [vmem:[#allocation20 + $0x10c] ss:$12 sps:$4 sm:$0xff]   ;;  %v7122_v56 = vld [vmem:[#allocation20 + $0x108] ss:$12 sps:$4 sm:$0xff]   ;;  %v7128_v58 = vld [vmem:[#allocation20 + $0x124] ss:$12 sps:$4 sm:$0xff]  }
 0x5ad   :  { %v7130_v63 = vld [vmem:[#allocation20 + $0x138] ss:$12 sps:$4 sm:$0xff]  }
 0x5b5   :  { %v7503_v59 = vpop.eup %7502 }
 0x5b6   :  { %v1613_v60 = vadd.f32 1.0, %v7503_v59  ;;  %v7505_v62 = vpop.eup %7504  ;;  %v7126_v59 = vld [vmem:[#allocation20 + $0x120] ss:$12 sps:$4 sm:$0xff]  }
 0x5b7   :  { %v1620_v3 = vadd.f32 1.0, %v7505_v62  ;;  %v7132_v62 = vld [vmem:[#allocation20 + $0x13c] ss:$12 sps:$4 sm:$0xff]  }
 0x5b8   :  { %7506 = vrcp.f32 %v1613_v60  ;;  %v7129_v60 = vld [vmem:[#allocation20 + $0x128] ss:$12 sps:$4 sm:$0xff]  }
 0x5b9   :  { %7508 = vrcp.f32 %v1620_v3  ;;  %v7136_v3 = vld [vmem:[#allocation20 + $0x154] ss:$12 sps:$4 sm:$0xff]  }
 0x5c2   :  { %v7507_v6 = vpop.eup %7506 }
 0x5c3   :  { %v1623_v9 = vmul.f32 %v7507_v6, %v1604_v5  ;;  %v7509_v11 = vpop.eup %7508  ;;  %v7134_v5 = vld [vmem:[#allocation20 + $0x150] ss:$12 sps:$4 sm:$0xff]   ;;  %v7137_v6 = vld [vmem:[#allocation20 + $0x158] ss:$12 sps:$4 sm:$0xff]  }
 0x5c4   :  { %v1626_v12 = vsub.f32 1.0, %v7509_v11  ;;  %v1628_v16 = vmul.f32 %v7509_v11, %v8311_v2  ;;  %v7086_v2 = vld [vmem:[#allocation21 + $0xf0] ss:$12 sps:$4 sm:$0xff]  }
 0x5c5   :  { %v1624_v10 = vadd.f32 %v1623_v9, %v1345_v7  ;;  %v7140_v7 = vld [vmem:[#allocation20 + $0x16c] ss:$12 sps:$4 sm:$0xff]   ;;  %v7138_v9 = vld [vmem:[#allocation20 + $0x168] ss:$12 sps:$4 sm:$0xff]   ;;  %v7144_v11 = vld [vmem:[#allocation21 + $0x184] ss:$12 sps:$4 sm:$0xff]  }
 0x5c7   :  { %7510 = vtanh.f32 %v1624_v10  ;;  %v7141_v10 = vld [vmem:[#allocation20 + $0x170] ss:$12 sps:$4 sm:$0xff]  }
 0x5d1   :  { %v7511_v13 = vpop.eup %7510 }
 0x5d2   :  { %v1627_v14 = vmul.f32 %v7511_v13, %v1626_v12 }
 0x5d4   :  { %v1629_v17 = vadd.f32 %v1628_v16, %v1627_v14 }
 0x5d6   :  { %1630 = vst [vmem:[%s8711_s21] sm:$0xff] %v1629_v17  ;;  %v1666_v20 = vpack.c.bf16 %v1629_v17, %v1629_v17  ;;  %v1929_v17 = vld [vmem:[#allocation23 + $0x3] sm:$0x7] }
 0x5d8   :  { %1846 = vmatmul.mubr.bf16.vlgmr.msra.gmra.mrb[12].mxu0 %v1666_v20  ;;  %6581 = vmatmul.mubr.bf16.vlgmr.msra.gmra.mrb[16].mxu1 %v1666_v20  ;;  %v1934_v20 = vrot.slane %v1929_v17, %v8329_v37 }
 0x5d9   :  { %2075 = vmatpush1.bf16.msra.mxu0 %v7078_v18  ;;  %6585 = vmatpush3.bf16.msra.mxu1 %v7081_v19  ;;  %v5868_v18 = vld [vmem:[%s8708_s18 + $0x3] sm:$0x7] }
 0x5da   :  { %2076 = vmatprep.subr.bf16.mxu0 %v7084_v21  ;;  %6586 = vmatprep.subr.bf16.mxu1 %v7912_v8  ;;  %v1673_v19 = vrot.slane %v5868_v18, %v8329_v37  ;;  %v1677_v21 = vrot.slane %v5868_v18, %v8334_v40 }
 0x5db   :  { %2106 = vmatprep.mubr.bf16.mxu0 %v7914_v15  ;;  %6600 = vmatprep.mubr.msk.bf16.mxu1 %vm7913_vm0, %v7912_v8 }
 0x5dd   :  { %2077 = vmatpush1.bf16.msra.mxu0 %v7082_v4  ;;  %6587 = vmatpush3.bf16.msra.mxu1 %v7085_v22  ;;  %v5867_v41 = vld [vmem:[%s8736_s9 + $0x8] sm:$0xff]  ;;  %v1938_v4 = vrot.slane %v1929_v17, %v8334_v40  ;;  %v6868_v22 = vadd.f32 %v1934_v20, %v1673_v19 }
 0x5de   :  { %2078 = vmatprep.subr.bf16.mxu0 %v7088_v23  ;;  %6588 = vmatprep.subr.bf16.mxu1 %v7912_v8  ;;  %v8363_v44 = vadd.f32 %v5867_v41, %v8308_v0  ;;  %v1942_v41 = vrot.slane %v1929_v17, %v8340_v61  ;;  %v7169_v17 = vld [vmem:[#allocation21 + $0x218] ss:$12 sps:$4 sm:$0xff]   ;;  %v7170_v20 = vld [vmem:[#allocation21 + $0x228] ss:$12 sps:$4 sm:$0xff]  }
 0x5e0   :  { %v1927_v45 = vpack.c.bf16 %v8363_v44, %v8363_v44 }
 0x5e1   :  { %2079 = vmatpush1.bf16.msra.mxu0 %v7086_v2  ;;  %6589 = vmatpush3.bf16.msra.mxu1 %v7089_v24  ;;  %v6870_v24 = vadd.f32 %v1938_v4, %v1677_v21  ;;  %v7173_v21 = vld [vmem:[#allocation21 + $0x230] ss:$12 sps:$4 sm:$0xff]  }
 0x5e2   :  { %2080 = vmatprep.subr.bf16.mxu0 %v7092_v25  ;;  %6590 = vmatprep.subr.bf16.mxu1 %v7912_v8 }
 0x5e5   :  { %2081 = vmatpush1.bf16.msra.mxu0 %v7090_v26  ;;  %6591 = vmatpush3.bf16.msra.mxu1 %v7093_v27 }
 0x5e6   :  { %2082 = vmatprep.subr.bf16.mxu0 %v7096_v28  ;;  %6592 = vmatprep.subr.bf16.mxu1 %v7912_v8 }
 0x5e9   :  { %2083 = vmatpush1.bf16.msra.mxu0 %v7094_v29  ;;  %6593 = vmatpush3.bf16.msra.mxu1 %v7097_v30 }
 0x5ea   :  { %2084 = vmatprep.subr.bf16.mxu0 %v7100_v31  ;;  %6594 = vmatprep.subr.bf16.mxu1 %v7912_v8 }
 0x5ed   :  { %2085 = vmatpush1.bf16.msra.mxu0 %v7098_v32  ;;  %6595 = vmatpush3.bf16.msra.mxu1 %v7101_v33 }
 0x5ee   :  { %2086 = vmatprep.subr.bf16.mxu0 %v7104_v34  ;;  %6596 = vmatprep.subr.bf16.mxu1 %v7912_v8 }
 0x5f1   :  { %2087 = vmatpush1.bf16.msra.mxu0 %v7102_v36  ;;  %6597 = vmatpush3.bf16.msra.mxu1 %v7105_v38 }
 0x5f2   :  { %2088 = vmatprep.subr.bf16.mxu0 %v7108_v39  ;;  %6598 = vmatprep.subr.bf16.mxu1 %v7912_v8 }
 0x5f5   :  { %2089 = vmatpush1.bf16.msra.mxu0 %v7106_v42  ;;  %6599 = vmatpush3.bf16.msra.mxu1 %v7109_v43  ;;  %v1681_v42 = vrot.slane %v5868_v18, %v8340_v61  ;;  %v7172_v18 = vld [vmem:[#allocation21 + $0x22c] ss:$12 sps:$4 sm:$0xff]  }
 0x5f6   :  { %6604 = vmatprep.subr.bf16.mxu1 %v7912_v8  ;;  %2361 = vmatprep.subr.bf16.mxu0 %v7112_v46 }
 0x5f8   :  { %2107 = vmatmul.mubr.bf16.vlgmr.msra.gmra.mrb[12].mxu0 %v1927_v45  ;;  %6601 = vmatmul.mubr.bf16.vlgmr.msra.gmra.mrb[20].mxu1 %v1927_v45 }
 0x5f9   :  { %2393 = vmatprep.mubr.bf16.mxu0 %v7914_v15  ;;  %6620 = vmatprep.mubr.msk.bf16.mxu1 %vm7913_vm0, %v7912_v8 }
 0x5fa   :  { %2362 = vmatpush1.bf16.msra.mxu0 %v7110_v47  ;;  %6605 = vmatpush3.bf16.msra.mxu1 %v7113_v48 }
 0x5fb   :  { %6606 = vmatprep.subr.bf16.mxu1 %v7912_v8  ;;  %2363 = vmatprep.subr.bf16.mxu0 %v7116_v49 }
 0x5fe   :  { %2364 = vmatpush1.bf16.msra.mxu0 %v7114_v50  ;;  %6607 = vmatpush3.bf16.msra.mxu1 %v7117_v51 }
 0x5ff   :  { %6608 = vmatprep.subr.bf16.mxu1 %v7912_v8  ;;  %2365 = vmatprep.subr.bf16.mxu0 %v7120_v52 }
 0x602   :  { %2366 = vmatpush1.bf16.msra.mxu0 %v7118_v53  ;;  %6609 = vmatpush3.bf16.msra.mxu1 %v7121_v54 }
 0x603   :  { %6610 = vmatprep.subr.bf16.mxu1 %v7912_v8  ;;  %2367 = vmatprep.subr.bf16.mxu0 %v7124_v55 }
 0x606   :  { %2368 = vmatpush1.bf16.msra.mxu0 %v7122_v56  ;;  %6611 = vmatpush3.bf16.msra.mxu1 %v7125_v57  ;;  %v7142_v56 = vld [vmem:[#allocation21 + $0x180] ss:$12 sps:$4 sm:$0xff]   ;;  %v7145_v57 = vld [vmem:[#allocation21 + $0x188] ss:$12 sps:$4 sm:$0xff]  }
 0x607   :  { %6612 = vmatprep.subr.bf16.mxu1 %v7912_v8  ;;  %2369 = vmatprep.subr.bf16.mxu0 %v7128_v58 }
 0x60a   :  { %2370 = vmatpush1.bf16.msra.mxu0 %v7126_v59  ;;  %6613 = vmatpush3.bf16.msra.mxu1 %v7129_v60  ;;  %v7148_v59 = vld [vmem:[#allocation21 + $0x19c] ss:$12 sps:$4 sm:$0xff]   ;;  %v7146_v60 = vld [vmem:[#allocation21 + $0x198] ss:$12 sps:$4 sm:$0xff]  }
 0x60b   :  { %2371 = vmatprep.subr.bf16.mxu0 %v7132_v62  ;;  %6614 = vmatprep.subr.bf16.mxu1 %v7912_v8  ;;  %v7149_v62 = vld [vmem:[#allocation21 + $0x1a0] ss:$12 sps:$4 sm:$0xff]  }
 0x60e   :  { %2372 = vmatpush1.bf16.msra.mxu0 %v7130_v63  ;;  %6615 = vmatpush3.bf16.msra.mxu1 %v7133_v1  ;;  %v7150_v63 = vld [vmem:[#allocation21 + $0x1b0] ss:$12 sps:$4 sm:$0xff]   ;;  %v7153_v1 = vld [vmem:[#allocation21 + $0x1b8] ss:$12 sps:$4 sm:$0xff]  }
 0x60f   :  { %2373 = vmatprep.subr.bf16.mxu0 %v7136_v3  ;;  %6616 = vmatprep.subr.bf16.mxu1 %v7912_v8  ;;  %v7156_v3 = vld [vmem:[#allocation21 + $0x1cc] ss:$12 sps:$4 sm:$0xff]  }
 0x612   :  { %2374 = vmatpush1.bf16.msra.mxu0 %v7134_v5  ;;  %6617 = vmatpush3.bf16.msra.mxu1 %v7137_v6  ;;  %v7154_v5 = vld [vmem:[#allocation21 + $0x1c8] ss:$12 sps:$4 sm:$0xff]   ;;  %v7157_v6 = vld [vmem:[#allocation21 + $0x1d0] ss:$12 sps:$4 sm:$0xff]  }
 0x613   :  { %2375 = vmatprep.subr.bf16.mxu0 %v7140_v7  ;;  %6618 = vmatprep.subr.bf16.mxu1 %v7912_v8  ;;  %v7160_v7 = vld [vmem:[#allocation21 + $0x1e4] ss:$12 sps:$4 sm:$0xff]  }
 0x616   :  { %2376 = vmatpush1.bf16.msra.mxu0 %v7138_v9  ;;  %6619 = vmatpush3.bf16.msra.mxu1 %v7141_v10  ;;  %v7158_v9 = vld [vmem:[#allocation21 + $0x1e0] ss:$12 sps:$4 sm:$0xff]   ;;  %v7161_v10 = vld [vmem:[#allocation21 + $0x1e8] ss:$12 sps:$4 sm:$0xff]  }
 0x617   :  { %2622 = vmatprep.subr.bf16.mxu0 %v7144_v11  ;;  %6624 = vmatprep.subr.bf16.mxu1 %v7912_v8  ;;  %v7164_v11 = vld [vmem:[#allocation21 + $0x1fc] ss:$12 sps:$4 sm:$0xff]  }
 0x6ab   :  { %v1888_v12 = vpop.f32.mrb[16].mxu1 }
 0x6ac   :  { %v6582_v13 = vpop.f32.mrb[17].mxu1  ;;  %v1889_v47 = vadd.f32 %v1888_v12, %v1681_v42  ;;  %v7162_v12 = vld [vmem:[#allocation21 + $0x1f8] ss:$12 sps:$4 sm:$0xff]   ;;  %v7197_v42 = vld [vmem:[#allocation20 + $0x200] ss:$12 sps:$4 sm:$0xff]  }
 0x6ad   :  { %v1891_v14 = vpop.f32.mrb[18].mxu1  ;;  %v7165_v13 = vld [vmem:[#allocation21 + $0x200] ss:$12 sps:$4 sm:$0xff]  }
 0x6ae   :  { %v6583_v16 = vpop.f32.mrb[19].mxu1  ;;  %v7168_v14 = vld [vmem:[#allocation21 + $0x214] ss:$12 sps:$4 sm:$0xff]  }
 0x6af   :  { %v7166_v16 = vld [vmem:[#allocation21 + $0x210] ss:$12 sps:$4 sm:$0xff]  }
 0x6cb   :  { %v2108_v23 = vpop.f32.mrb[12].mxu0  ;;  %v2149_v2 = vpop.f32.mrb[20].mxu1 }
 0x6cc   :  { %v6869_v25 = vadd.f32 %v6868_v22, %v2108_v23  ;;  %v2110_v26 = vpop.f32.mrb[13].mxu0  ;;  %v6602_v27 = vpop.f32.mrb[21].mxu1  ;;  %v2150_v45 = vadd.f32 %v2149_v2, %v1942_v41  ;;  %v7176_v23 = vld [vmem:[#allocation20 + $0x184] ss:$12 sps:$4 sm:$0xff]   ;;  %v7174_v2 = vld [vmem:[#allocation20 + $0x180] ss:$12 sps:$4 sm:$0xff]  }
 0x6cd   :  { %v2112_v28 = vpop.f32.mrb[14].mxu0  ;;  %v2152_v29 = vpop.f32.mrb[22].mxu1  ;;  %v6871_v33 = vadd.f32 %v6870_v24, %v2110_v26  ;;  %v7177_v24 = vld [vmem:[#allocation20 + $0x188] ss:$12 sps:$4 sm:$0xff]   ;;  %v7178_v26 = vld [vmem:[#allocation20 + $0x198] ss:$12 sps:$4 sm:$0xff]  }
 0x6ce   :  { %v5917_v30 = vmul.f32 -1.442695, %v6869_v25  ;;  %v2113_v31 = vpop.f32.mrb[15].mxu0  ;;  %v6603_v32 = vpop.f32.mrb[23].mxu1  ;;  %v7180_v25 = vld [vmem:[#allocation20 + $0x19c] ss:$12 sps:$4 sm:$0xff]  }
 0x6cf   :  { %v5918_v34 = vmul.f32 -1.442695, %v6871_v33  ;;  %v7181_v27 = vld [vmem:[#allocation20 + $0x1a0] ss:$12 sps:$4 sm:$0xff]   ;;  %v7182_v29 = vld [vmem:[#allocation20 + $0x1b0] ss:$12 sps:$4 sm:$0xff]  }
 0x6d0   :  { %7512 = vpow2.f32 %v5917_v30  ;;  %v7184_v28 = vld [vmem:[#allocation20 + $0x1b4] ss:$12 sps:$4 sm:$0xff]   ;;  %v7185_v30 = vld [vmem:[#allocation20 + $0x1b8] ss:$12 sps:$4 sm:$0xff]   ;;  %v7189_v33 = vld [vmem:[#allocation20 + $0x1d0] ss:$12 sps:$4 sm:$0xff]  }
 0x6d1   :  { %7514 = vpow2.f32 %v5918_v34  ;;  %v7188_v31 = vld [vmem:[#allocation20 + $0x1cc] ss:$12 sps:$4 sm:$0xff]   ;;  %v7186_v32 = vld [vmem:[#allocation20 + $0x1c8] ss:$12 sps:$4 sm:$0xff]  }
 0x6d2   :  { %v7190_v34 = vld [vmem:[#allocation20 + $0x1e0] ss:$12 sps:$4 sm:$0xff]   ;;  %v7194_v41 = vld [vmem:[#allocation20 + $0x1f8] ss:$12 sps:$4 sm:$0xff]  }
 0x6da   :  { %v7513_v36 = vpop.eup %7512 }
 0x6db   :  { %v2159_v38 = vadd.f32 1.0, %v7513_v36  ;;  %v7515_v39 = vpop.eup %7514  ;;  %v7192_v36 = vld [vmem:[#allocation20 + $0x1e4] ss:$12 sps:$4 sm:$0xff]  }
 0x6dc   :  { %v2166_v43 = vadd.f32 1.0, %v7515_v39  ;;  %v7196_v39 = vld [vmem:[#allocation20 + $0x1fc] ss:$12 sps:$4 sm:$0xff]  }
 0x6dd   :  { %7516 = vrcp.f32 %v2159_v38  ;;  %v7193_v38 = vld [vmem:[#allocation20 + $0x1e8] ss:$12 sps:$4 sm:$0xff]  }
 0x6de   :  { %7518 = vrcp.f32 %v2166_v43  ;;  %v7200_v43 = vld [vmem:[#allocation20 + $0x214] ss:$12 sps:$4 sm:$0xff]  }
 0x6e7   :  { %v7517_v46 = vpop.eup %7516 }
 0x6e8   :  { %v2169_v48 = vmul.f32 %v7517_v46, %v2150_v45  ;;  %v7519_v50 = vpop.eup %7518  ;;  %v7198_v45 = vld [vmem:[#allocation20 + $0x210] ss:$12 sps:$4 sm:$0xff]   ;;  %v7201_v46 = vld [vmem:[#allocation20 + $0x218] ss:$12 sps:$4 sm:$0xff]  }
 0x6e9   :  { %v2172_v51 = vsub.f32 1.0, %v7519_v50  ;;  %v2174_v54 = vmul.f32 %v7519_v50, %v8363_v44  ;;  %v7152_v44 = vld [vmem:[#allocation21 + $0x1b4] ss:$12 sps:$4 sm:$0xff]   ;;  %v7208_v50 = vld [vmem:[#allocation21 + $0x244] ss:$12 sps:$4 sm:$0xff]  }
 0x6ea   :  { %v2170_v49 = vadd.f32 %v2169_v48, %v1889_v47  ;;  %v7204_v47 = vld [vmem:[#allocation20 + $0x22c] ss:$12 sps:$4 sm:$0xff]   ;;  %v7202_v48 = vld [vmem:[#allocation20 + $0x228] ss:$12 sps:$4 sm:$0xff]  }
 0x6ec   :  { %7520 = vtanh.f32 %v2170_v49  ;;  %v7205_v49 = vld [vmem:[#allocation20 + $0x230] ss:$12 sps:$4 sm:$0xff]  }
 0x6f6   :  { %v7521_v52 = vpop.eup %7520 }
 0x6f7   :  { %v2173_v53 = vmul.f32 %v7521_v52, %v2172_v51 }
 0x6f9   :  { %v8389_v55 = vadd.f32 %v2174_v54, %v2173_v53 }
 0x6fb   :  { %5919 = vst [vmem:[%s8711_s21 + $0x8] sm:$0xff] %v8389_v55  ;;  %v2214_v58 = vpack.c.bf16 %v8389_v55, %v8389_v55 }
 0x6fd   :  { %2394 = vmatmul.mubr.bf16.vlgmr.msra.gmra.mrb[16].mxu0 %v2214_v58  ;;  %6621 = vmatmul.mubr.bf16.vlgmr.msra.gmra.mrb[24].mxu1 %v2214_v58 }
 0x6fe   :  { %2623 = vmatpush1.bf16.msra.mxu0 %v7142_v56  ;;  %6625 = vmatpush3.bf16.msra.mxu1 %v7145_v57  ;;  %v2477_v56 = vld [vmem:[#allocation23 + $0x6] sm:$0x7]  ;;  %v5921_v57 = vld [vmem:[%s8708_s18 + $0x6] sm:$0x7] }
 0x6ff   :  { %2624 = vmatprep.subr.bf16.mxu0 %v7148_v59  ;;  %6626 = vmatprep.subr.bf16.mxu1 %v7912_v8  ;;  %v2221_v58 = vrot.slane %v5921_v57, %v8329_v37  ;;  %v2482_v59 = vrot.slane %v2477_v56, %v8329_v37 }
 0x700   :  { %2654 = vmatprep.mubr.bf16.mxu0 %v7914_v15  ;;  %6640 = vmatprep.mubr.msk.bf16.mxu1 %vm7913_vm0, %v7912_v8 }
 0x702   :  { %2625 = vmatpush1.bf16.msra.mxu0 %v7146_v60  ;;  %6627 = vmatpush3.bf16.msra.mxu1 %v7149_v62  ;;  %v5920_v19 = vld [vmem:[%s8736_s9 + $0x10] sm:$0xff]  ;;  %v2225_v60 = vrot.slane %v5921_v57, %v8334_v40  ;;  %v2486_v62 = vrot.slane %v2477_v56, %v8334_v40 }
 0x703   :  { %2626 = vmatprep.subr.bf16.mxu0 %v7152_v44  ;;  %6628 = vmatprep.subr.bf16.mxu1 %v7912_v8  ;;  %v8411_v4 = vadd.f32 %v5920_v19, %v8308_v0  ;;  %v6872_v44 = vadd.f32 %v2482_v59, %v2221_v58  ;;  %v7236_v58 = vld [vmem:[#allocation21 + $0x2ec] ss:$12 sps:$4 sm:$0xff]  }
 0x705   :  { %v2475_v22 = vpack.c.bf16 %v8411_v4, %v8411_v4 }
 0x706   :  { %2627 = vmatpush1.bf16.msra.mxu0 %v7150_v63  ;;  %6629 = vmatpush3.bf16.msra.mxu1 %v7153_v1 }
 0x707   :  { %2628 = vmatprep.subr.bf16.mxu0 %v7156_v3  ;;  %6630 = vmatprep.subr.bf16.mxu1 %v7912_v8  ;;  %v6874_v3 = vadd.f32 %v2486_v62, %v2225_v60  ;;  %v7234_v60 = vld [vmem:[#allocation21 + $0x2e8] ss:$12 sps:$4 sm:$0xff]   ;;  %v7237_v62 = vld [vmem:[#allocation21 + $0x2f0] ss:$12 sps:$4 sm:$0xff]  }
 0x70a   :  { %2629 = vmatpush1.bf16.msra.mxu0 %v7154_v5  ;;  %6631 = vmatpush3.bf16.msra.mxu1 %v7157_v6 }
 0x70b   :  { %2630 = vmatprep.subr.bf16.mxu0 %v7160_v7  ;;  %6632 = vmatprep.subr.bf16.mxu1 %v7912_v8 }
 0x70e   :  { %2631 = vmatpush1.bf16.msra.mxu0 %v7158_v9  ;;  %6633 = vmatpush3.bf16.msra.mxu1 %v7161_v10 }
 0x70f   :  { %2632 = vmatprep.subr.bf16.mxu0 %v7164_v11  ;;  %6634 = vmatprep.subr.bf16.mxu1 %v7912_v8 }
 0x712   :  { %2633 = vmatpush1.bf16.msra.mxu0 %v7162_v12  ;;  %6635 = vmatpush3.bf16.msra.mxu1 %v7165_v13 }
 0x713   :  { %2634 = vmatprep.subr.bf16.mxu0 %v7168_v14  ;;  %6636 = vmatprep.subr.bf16.mxu1 %v7912_v8 }
 0x716   :  { %2635 = vmatpush1.bf16.msra.mxu0 %v7166_v16  ;;  %6637 = vmatpush3.bf16.msra.mxu1 %v7169_v17 }
 0x717   :  { %2636 = vmatprep.subr.bf16.mxu0 %v7172_v18  ;;  %6638 = vmatprep.subr.bf16.mxu1 %v7912_v8 }
 0x71a   :  { %2637 = vmatpush1.bf16.msra.mxu0 %v7170_v20  ;;  %6639 = vmatpush3.bf16.msra.mxu1 %v7173_v21  ;;  %v2490_v20 = vrot.slane %v2477_v56, %v8340_v61  ;;  %v2229_v21 = vrot.slane %v5921_v57, %v8340_v61  ;;  %v7230_v56 = vld [vmem:[#allocation21 + $0x2d0] ss:$12 sps:$4 sm:$0xff]   ;;  %v7233_v57 = vld [vmem:[#allocation21 + $0x2d8] ss:$12 sps:$4 sm:$0xff]  }
 0x71b   :  { %6644 = vmatprep.subr.bf16.mxu1 %v7912_v8  ;;  %2910 = vmatprep.subr.bf16.mxu0 %v7176_v23 }
 0x71d   :  { %2655 = vmatmul.mubr.bf16.vlgmr.msra.gmra.mrb[16].mxu0 %v2475_v22  ;;  %6641 = vmatmul.mubr.bf16.vlgmr.msra.gmra.mrb[28].mxu1 %v2475_v22 }
 0x71e   :  { %2942 = vmatprep.mubr.bf16.mxu0 %v7914_v15  ;;  %6660 = vmatprep.mubr.msk.bf16.mxu1 %vm7913_vm0, %v7912_v8 }
 0x71f   :  { %2911 = vmatpush1.bf16.msra.mxu0 %v7174_v2  ;;  %6645 = vmatpush3.bf16.msra.mxu1 %v7177_v24 }
 0x720   :  { %6646 = vmatprep.subr.bf16.mxu1 %v7912_v8  ;;  %2912 = vmatprep.subr.bf16.mxu0 %v7180_v25 }
 0x723   :  { %2913 = vmatpush1.bf16.msra.mxu0 %v7178_v26  ;;  %6647 = vmatpush3.bf16.msra.mxu1 %v7181_v27 }
 0x724   :  { %6648 = vmatprep.subr.bf16.mxu1 %v7912_v8  ;;  %2914 = vmatprep.subr.bf16.mxu0 %v7184_v28 }
 0x727   :  { %2915 = vmatpush1.bf16.msra.mxu0 %v7182_v29  ;;  %6649 = vmatpush3.bf16.msra.mxu1 %v7185_v30 }
 0x728   :  { %6650 = vmatprep.subr.bf16.mxu1 %v7912_v8  ;;  %2916 = vmatprep.subr.bf16.mxu0 %v7188_v31 }
 0x72b   :  { %2917 = vmatpush1.bf16.msra.mxu0 %v7186_v32  ;;  %6651 = vmatpush3.bf16.msra.mxu1 %v7189_v33 }
 0x72c   :  { %6652 = vmatprep.subr.bf16.mxu1 %v7912_v8  ;;  %2918 = vmatprep.subr.bf16.mxu0 %v7192_v36  ;;  %v7209_v36 = vld [vmem:[#allocation21 + $0x248] ss:$12 sps:$4 sm:$0xff]  }
 0x72f   :  { %2919 = vmatpush1.bf16.msra.mxu0 %v7190_v34  ;;  %6653 = vmatpush3.bf16.msra.mxu1 %v7193_v38  ;;  %v7206_v34 = vld [vmem:[#allocation21 + $0x240] ss:$12 sps:$4 sm:$0xff]  }
 0x730   :  { %2920 = vmatprep.subr.bf16.mxu0 %v7196_v39  ;;  %6654 = vmatprep.subr.bf16.mxu1 %v7912_v8  ;;  %v7212_v39 = vld [vmem:[#allocation21 + $0x25c] ss:$12 sps:$4 sm:$0xff]  }
 0x733   :  { %2921 = vmatpush1.bf16.msra.mxu0 %v7194_v41  ;;  %6655 = vmatpush3.bf16.msra.mxu1 %v7197_v42  ;;  %v7210_v41 = vld [vmem:[#allocation21 + $0x258] ss:$12 sps:$4 sm:$0xff]   ;;  %v7216_v42 = vld [vmem:[#allocation21 + $0x274] ss:$12 sps:$4 sm:$0xff]  }
 0x734   :  { %2922 = vmatprep.subr.bf16.mxu0 %v7200_v43  ;;  %6656 = vmatprep.subr.bf16.mxu1 %v7912_v8  ;;  %v7217_v43 = vld [vmem:[#allocation21 + $0x278] ss:$12 sps:$4 sm:$0xff]  }
 0x737   :  { %2923 = vmatpush1.bf16.msra.mxu0 %v7198_v45  ;;  %6657 = vmatpush3.bf16.msra.mxu1 %v7201_v46  ;;  %v7220_v45 = vld [vmem:[#allocation21 + $0x28c] ss:$12 sps:$4 sm:$0xff]   ;;  %v7218_v46 = vld [vmem:[#allocation21 + $0x288] ss:$12 sps:$4 sm:$0xff]  }
 0x738   :  { %2924 = vmatprep.subr.bf16.mxu0 %v7204_v47  ;;  %6658 = vmatprep.subr.bf16.mxu1 %v7912_v8  ;;  %v7221_v47 = vld [vmem:[#allocation21 + $0x290] ss:$12 sps:$4 sm:$0xff]  }
 0x73b   :  { %2925 = vmatpush1.bf16.msra.mxu0 %v7202_v48  ;;  %6659 = vmatpush3.bf16.msra.mxu1 %v7205_v49  ;;  %v7224_v48 = vld [vmem:[#allocation21 + $0x2a4] ss:$12 sps:$4 sm:$0xff]   ;;  %v7222_v49 = vld [vmem:[#allocation21 + $0x2a0] ss:$12 sps:$4 sm:$0xff]  }
 0x73c   :  { %3171 = vmatprep.subr.bf16.mxu0 %v7208_v50  ;;  %6664 = vmatprep.subr.bf16.mxu1 %v7912_v8  ;;  %v7225_v50 = vld [vmem:[#allocation21 + $0x2a8] ss:$12 sps:$4 sm:$0xff]  }
 0x7d0   :  { %v2436_v51 = vpop.f32.mrb[24].mxu1 }
 0x7d1   :  { %v6622_v52 = vpop.f32.mrb[25].mxu1  ;;  %v2437_v24 = vadd.f32 %v2436_v51, %v2229_v21  ;;  %v7228_v51 = vld [vmem:[#allocation21 + $0x2bc] ss:$12 sps:$4 sm:$0xff]   ;;  %v7258_v21 = vld [vmem:[#allocation20 + $0x2b8] ss:$12 sps:$4 sm:$0xff]  }
 0x7d2   :  { %v2439_v53 = vpop.f32.mrb[26].mxu1  ;;  %v7226_v52 = vld [vmem:[#allocation21 + $0x2b8] ss:$12 sps:$4 sm:$0xff]  }
 0x7d3   :  { %v6623_v54 = vpop.f32.mrb[27].mxu1  ;;  %v7229_v53 = vld [vmem:[#allocation21 + $0x2c0] ss:$12 sps:$4 sm:$0xff]  }
 0x7d4   :  { %v7232_v54 = vld [vmem:[#allocation21 + $0x2d4] ss:$12 sps:$4 sm:$0xff]  }
 0x7f0   :  { %v2656_v63 = vpop.f32.mrb[16].mxu0  ;;  %v2697_v1 = vpop.f32.mrb[28].mxu1 }
 0x7f1   :  { %v6873_v5 = vadd.f32 %v6872_v44, %v2656_v63  ;;  %v2658_v6 = vpop.f32.mrb[17].mxu0  ;;  %v6642_v7 = vpop.f32.mrb[29].mxu1  ;;  %v2698_v23 = vadd.f32 %v2697_v1, %v2490_v20  ;;  %v7240_v1 = vld [vmem:[#allocation20 + $0x244] ss:$12 sps:$4 sm:$0xff]   ;;  %v7260_v20 = vld [vmem:[#allocation20 + $0x2bc] ss:$12 sps:$4 sm:$0xff]  }
 0x7f2   :  { %v2660_v9 = vpop.f32.mrb[18].mxu0  ;;  %v2700_v10 = vpop.f32.mrb[30].mxu1  ;;  %v6875_v14 = vadd.f32 %v6874_v3, %v2658_v6  ;;  %v7238_v3 = vld [vmem:[#allocation20 + $0x240] ss:$12 sps:$4 sm:$0xff]   ;;  %v7244_v6 = vld [vmem:[#allocation20 + $0x25c] ss:$12 sps:$4 sm:$0xff]  }
 0x7f3   :  { %v5970_v11 = vmul.f32 -1.442695, %v6873_v5  ;;  %v2661_v12 = vpop.f32.mrb[19].mxu0  ;;  %v6643_v13 = vpop.f32.mrb[31].mxu1  ;;  %v7241_v5 = vld [vmem:[#allocation20 + $0x248] ss:$12 sps:$4 sm:$0xff]  }
 0x7f4   :  { %v5971_v16 = vmul.f32 -1.442695, %v6875_v14  ;;  %v7242_v7 = vld [vmem:[#allocation20 + $0x258] ss:$12 sps:$4 sm:$0xff]   ;;  %v7245_v9 = vld [vmem:[#allocation20 + $0x260] ss:$12 sps:$4 sm:$0xff]  }
 0x7f5   :  { %7522 = vpow2.f32 %v5970_v11  ;;  %v7248_v10 = vld [vmem:[#allocation20 + $0x274] ss:$12 sps:$4 sm:$0xff]   ;;  %v7246_v11 = vld [vmem:[#allocation20 + $0x270] ss:$12 sps:$4 sm:$0xff]   ;;  %v7249_v12 = vld [vmem:[#allocation20 + $0x278] ss:$12 sps:$4 sm:$0xff]  }
 0x7f6   :  { %7524 = vpow2.f32 %v5971_v16  ;;  %v7252_v13 = vld [vmem:[#allocation20 + $0x28c] ss:$12 sps:$4 sm:$0xff]   ;;  %v7250_v14 = vld [vmem:[#allocation20 + $0x288] ss:$12 sps:$4 sm:$0xff]   ;;  %v7253_v16 = vld [vmem:[#allocation20 + $0x290] ss:$12 sps:$4 sm:$0xff]  }
 0x7ff   :  { %v7523_v17 = vpop.eup %7522 }
 0x800   :  { %v2707_v18 = vadd.f32 1.0, %v7523_v17  ;;  %v7525_v19 = vpop.eup %7524  ;;  %v7254_v17 = vld [vmem:[#allocation20 + $0x2a0] ss:$12 sps:$4 sm:$0xff]  }
 0x801   :  { %v2714_v22 = vadd.f32 1.0, %v7525_v19  ;;  %v7257_v19 = vld [vmem:[#allocation20 + $0x2a8] ss:$12 sps:$4 sm:$0xff]  }
 0x802   :  { %7526 = vrcp.f32 %v2707_v18  ;;  %v7256_v18 = vld [vmem:[#allocation20 + $0x2a4] ss:$12 sps:$4 sm:$0xff]  }
 0x803   :  { %7528 = vrcp.f32 %v2714_v22  ;;  %v7261_v22 = vld [vmem:[#allocation20 + $0x2c0] ss:$12 sps:$4 sm:$0xff]  }
 0x80c   :  { %v7527_v2 = vpop.eup %7526 }
 0x80d   :  { %v2717_v25 = vmul.f32 %v7527_v2, %v2698_v23  ;;  %v7529_v27 = vpop.eup %7528  ;;  %v7264_v23 = vld [vmem:[#allocation20 + $0x2d4] ss:$12 sps:$4 sm:$0xff]   ;;  %v7262_v2 = vld [vmem:[#allocation20 + $0x2d0] ss:$12 sps:$4 sm:$0xff]  }
 0x80e   :  { %v2720_v28 = vsub.f32 1.0, %v7529_v27  ;;  %v2722_v31 = vmul.f32 %v7529_v27, %v8411_v4  ;;  %v7213_v4 = vld [vmem:[#allocation21 + $0x260] ss:$12 sps:$4 sm:$0xff]   ;;  %v7269_v27 = vld [vmem:[#allocation20 + $0x2f0] ss:$12 sps:$4 sm:$0xff]  }
 0x80f   :  { %v2718_v26 = vadd.f32 %v2717_v25, %v2437_v24  ;;  %v7265_v24 = vld [vmem:[#allocation20 + $0x2d8] ss:$12 sps:$4 sm:$0xff]  }
 0x810   :  { %v7268_v25 = vld [vmem:[#allocation20 + $0x2ec] ss:$12 sps:$4 sm:$0xff]  }
 0x811   :  { %7530 = vtanh.f32 %v2718_v26  ;;  %v7266_v26 = vld [vmem:[#allocation20 + $0x2e8] ss:$12 sps:$4 sm:$0xff]  }
 0x81b   :  { %v7531_v29 = vpop.eup %7530 }
 0x81c   :  { %v2721_v30 = vmul.f32 %v7531_v29, %v2720_v28  ;;  %v7272_v28 = vld [vmem:[#allocation21 + $0x304] ss:$12 sps:$4 sm:$0xff]  }
 0x81e   :  { %v8437_v32 = vadd.f32 %v2722_v31, %v2721_v30 }
 0x820   :  { %5972 = vst [vmem:[%s8711_s21 + $0x10] sm:$0xff] %v8437_v32  ;;  %v2726_v33 = vadd.f32 %v8437_v32, %v8389_v55  ;;  %v7214_v55 = vld [vmem:[#allocation21 + $0x270] ss:$12 sps:$4 sm:$0xff]  }
 0x822   :  { %v2763_v38 = vpack.c.bf16 %v2726_v33, %v2726_v33 }
 0x824   :  { %2943 = vmatmul.mubr.bf16.vlgmr.msra.gmra.mrb[20].mxu0 %v2763_v38  ;;  %6661 = vmatmul.mubr.bf16.vlgmr.msra.gmra.mrb[32].mxu1 %v2763_v38 }
 0x825   :  { %3172 = vmatpush1.bf16.msra.mxu0 %v7206_v34  ;;  %6665 = vmatpush3.bf16.msra.mxu1 %v7209_v36  ;;  %v3026_v34 = vld [vmem:[#allocation23 + $0x9] sm:$0x7]  ;;  %v5974_v36 = vld [vmem:[%s8708_s18 + $0x9] sm:$0x7] }
 0x826   :  { %3173 = vmatprep.subr.bf16.mxu0 %v7212_v39  ;;  %6666 = vmatprep.subr.bf16.mxu1 %v7912_v8  ;;  %v2770_v38 = vrot.slane %v5974_v36, %v8329_v37  ;;  %v3031_v39 = vrot.slane %v3026_v34, %v8329_v37 }
 0x827   :  { %3203 = vmatprep.mubr.bf16.mxu0 %v7914_v15  ;;  %6680 = vmatprep.mubr.msk.bf16.mxu1 %vm7913_vm0, %v7912_v8  ;;  %v5973_v59 = vld [vmem:[%s8736_s9 + $0x18] sm:$0xff] }
 0x828   :  { %v8459_v44 = vadd.f32 %v5973_v59, %v8308_v0 }
 0x829   :  { %3174 = vmatpush1.bf16.msra.mxu0 %v7210_v41  ;;  %6667 = vmatpush3.bf16.msra.mxu1 %v7213_v4  ;;  %v2774_v41 = vrot.slane %v5974_v36, %v8334_v40  ;;  %v3035_v4 = vrot.slane %v3026_v34, %v8334_v40 }
 0x82a   :  { %3175 = vmatprep.subr.bf16.mxu0 %v7216_v42  ;;  %6668 = vmatprep.subr.bf16.mxu1 %v7912_v8  ;;  %v3024_v63 = vpack.c.bf16 %v8459_v44, %v8459_v44  ;;  %v6876_v42 = vadd.f32 %v3031_v39, %v2770_v38  ;;  %v7300_v38 = vld [vmem:[#allocation21 + $0x3ac] ss:$12 sps:$4 sm:$0xff]  }
 0x82d   :  { %3176 = vmatpush1.bf16.msra.mxu0 %v7214_v55  ;;  %6669 = vmatpush3.bf16.msra.mxu1 %v7217_v43 }
 0x82e   :  { %3177 = vmatprep.subr.bf16.mxu0 %v7220_v45  ;;  %6670 = vmatprep.subr.bf16.mxu1 %v7912_v8  ;;  %v6878_v45 = vadd.f32 %v3035_v4, %v2774_v41  ;;  %v7298_v41 = vld [vmem:[#allocation21 + $0x3a8] ss:$12 sps:$4 sm:$0xff]   ;;  %v7301_v4 = vld [vmem:[#allocation21 + $0x3b0] ss:$12 sps:$4 sm:$0xff]  }
 0x831   :  { %3178 = vmatpush1.bf16.msra.mxu0 %v7218_v46  ;;  %6671 = vmatpush3.bf16.msra.mxu1 %v7221_v47 }
 0x832   :  { %3179 = vmatprep.subr.bf16.mxu0 %v7224_v48  ;;  %6672 = vmatprep.subr.bf16.mxu1 %v7912_v8 }
 0x835   :  { %3180 = vmatpush1.bf16.msra.mxu0 %v7222_v49  ;;  %6673 = vmatpush3.bf16.msra.mxu1 %v7225_v50 }
 0x836   :  { %3181 = vmatprep.subr.bf16.mxu0 %v7228_v51  ;;  %6674 = vmatprep.subr.bf16.mxu1 %v7912_v8 }
 0x839   :  { %3182 = vmatpush1.bf16.msra.mxu0 %v7226_v52  ;;  %6675 = vmatpush3.bf16.msra.mxu1 %v7229_v53 }
 0x83a   :  { %3183 = vmatprep.subr.bf16.mxu0 %v7232_v54  ;;  %6676 = vmatprep.subr.bf16.mxu1 %v7912_v8 }
 0x83d   :  { %3184 = vmatpush1.bf16.msra.mxu0 %v7230_v56  ;;  %6677 = vmatpush3.bf16.msra.mxu1 %v7233_v57 }
 0x83e   :  { %3185 = vmatprep.subr.bf16.mxu0 %v7236_v58  ;;  %6678 = vmatprep.subr.bf16.mxu1 %v7912_v8 }
 0x841   :  { %3186 = vmatpush1.bf16.msra.mxu0 %v7234_v60  ;;  %6679 = vmatpush3.bf16.msra.mxu1 %v7237_v62  ;;  %v3039_v60 = vrot.slane %v3026_v34, %v8340_v61  ;;  %v2778_v62 = vrot.slane %v5974_v36, %v8340_v61  ;;  %v7294_v34 = vld [vmem:[#allocation21 + $0x390] ss:$12 sps:$4 sm:$0xff]   ;;  %v7297_v36 = vld [vmem:[#allocation21 + $0x398] ss:$12 sps:$4 sm:$0xff]  }
 0x842   :  { %6684 = vmatprep.subr.bf16.mxu1 %v7912_v8  ;;  %3459 = vmatprep.subr.bf16.mxu0 %v7240_v1 }
 0x844   :  { %3204 = vmatmul.mubr.bf16.vlgmr.msra.gmra.mrb[20].mxu0 %v3024_v63  ;;  %6681 = vmatmul.mubr.bf16.vlgmr.msra.gmra.mrb[36].mxu1 %v3024_v63 }
 0x845   :  { %3491 = vmatprep.mubr.bf16.mxu0 %v7914_v15  ;;  %6700 = vmatprep.mubr.msk.bf16.mxu1 %vm7913_vm0, %v7912_v8 }
 0x846   :  { %3460 = vmatpush1.bf16.msra.mxu0 %v7238_v3  ;;  %6685 = vmatpush3.bf16.msra.mxu1 %v7241_v5 }
 0x847   :  { %6686 = vmatprep.subr.bf16.mxu1 %v7912_v8  ;;  %3461 = vmatprep.subr.bf16.mxu0 %v7244_v6 }
 0x84a   :  { %3462 = vmatpush1.bf16.msra.mxu0 %v7242_v7  ;;  %6687 = vmatpush3.bf16.msra.mxu1 %v7245_v9 }
 0x84b   :  { %6688 = vmatprep.subr.bf16.mxu1 %v7912_v8  ;;  %3463 = vmatprep.subr.bf16.mxu0 %v7248_v10 }
 0x84e   :  { %3464 = vmatpush1.bf16.msra.mxu0 %v7246_v11  ;;  %6689 = vmatpush3.bf16.msra.mxu1 %v7249_v12 }
 0x84f   :  { %6690 = vmatprep.subr.bf16.mxu1 %v7912_v8  ;;  %3465 = vmatprep.subr.bf16.mxu0 %v7252_v13 }
 0x852   :  { %3466 = vmatpush1.bf16.msra.mxu0 %v7250_v14  ;;  %6691 = vmatpush3.bf16.msra.mxu1 %v7253_v16 }
 0x853   :  { %6692 = vmatprep.subr.bf16.mxu1 %v7912_v8  ;;  %3467 = vmatprep.subr.bf16.mxu0 %v7256_v18  ;;  %v7273_v18 = vld [vmem:[#allocation21 + $0x308] ss:$12 sps:$4 sm:$0xff]  }
 0x856   :  { %3468 = vmatpush1.bf16.msra.mxu0 %v7254_v17  ;;  %6693 = vmatpush3.bf16.msra.mxu1 %v7257_v19  ;;  %v7270_v17 = vld [vmem:[#allocation21 + $0x300] ss:$12 sps:$4 sm:$0xff]  }
 0x857   :  { %3469 = vmatprep.subr.bf16.mxu0 %v7260_v20  ;;  %6694 = vmatprep.subr.bf16.mxu1 %v7912_v8  ;;  %v7276_v20 = vld [vmem:[#allocation21 + $0x31c] ss:$12 sps:$4 sm:$0xff]  }
 0x85a   :  { %3470 = vmatpush1.bf16.msra.mxu0 %v7258_v21  ;;  %6695 = vmatpush3.bf16.msra.mxu1 %v7261_v22  ;;  %v7274_v21 = vld [vmem:[#allocation21 + $0x318] ss:$12 sps:$4 sm:$0xff]   ;;  %v7280_v22 = vld [vmem:[#allocation21 + $0x334] ss:$12 sps:$4 sm:$0xff]  }
 0x85b   :  { %3471 = vmatprep.subr.bf16.mxu0 %v7264_v23  ;;  %6696 = vmatprep.subr.bf16.mxu1 %v7912_v8  ;;  %v7281_v23 = vld [vmem:[#allocation21 + $0x338] ss:$12 sps:$4 sm:$0xff]  }
 0x85e   :  { %3472 = vmatpush1.bf16.msra.mxu0 %v7262_v2  ;;  %6697 = vmatpush3.bf16.msra.mxu1 %v7265_v24  ;;  %v7284_v2 = vld [vmem:[#allocation21 + $0x34c] ss:$12 sps:$4 sm:$0xff]   ;;  %v7282_v24 = vld [vmem:[#allocation21 + $0x348] ss:$12 sps:$4 sm:$0xff]  }
 0x85f   :  { %3473 = vmatprep.subr.bf16.mxu0 %v7268_v25  ;;  %6698 = vmatprep.subr.bf16.mxu1 %v7912_v8  ;;  %v7285_v25 = vld [vmem:[#allocation21 + $0x350] ss:$12 sps:$4 sm:$0xff]  }
 0x862   :  { %3474 = vmatpush1.bf16.msra.mxu0 %v7266_v26  ;;  %6699 = vmatpush3.bf16.msra.mxu1 %v7269_v27  ;;  %v7288_v26 = vld [vmem:[#allocation21 + $0x364] ss:$12 sps:$4 sm:$0xff]   ;;  %v7286_v27 = vld [vmem:[#allocation21 + $0x360] ss:$12 sps:$4 sm:$0xff]  }
 0x863   :  { %3720 = vmatprep.subr.bf16.mxu0 %v7272_v28  ;;  %6704 = vmatprep.subr.bf16.mxu1 %v7912_v8  ;;  %v7289_v28 = vld [vmem:[#allocation21 + $0x368] ss:$12 sps:$4 sm:$0xff]  }
 0x8f7   :  { %v2985_v29 = vpop.f32.mrb[32].mxu1 }
 0x8f8   :  { %v6662_v30 = vpop.f32.mrb[33].mxu1  ;;  %v2986_v5 = vadd.f32 %v2985_v29, %v2778_v62  ;;  %v7292_v29 = vld [vmem:[#allocation21 + $0x37c] ss:$12 sps:$4 sm:$0xff]   ;;  %v7322_v62 = vld [vmem:[#allocation20 + $0x378] ss:$12 sps:$4 sm:$0xff]  }
 0x8f9   :  { %v2988_v31 = vpop.f32.mrb[34].mxu1  ;;  %v7290_v30 = vld [vmem:[#allocation21 + $0x378] ss:$12 sps:$4 sm:$0xff]  }
 0x8fa   :  { %v6663_v33 = vpop.f32.mrb[35].mxu1  ;;  %v7293_v31 = vld [vmem:[#allocation21 + $0x380] ss:$12 sps:$4 sm:$0xff]  }
 0x8fb   :  { %v7296_v33 = vld [vmem:[#allocation21 + $0x394] ss:$12 sps:$4 sm:$0xff]  }
 0x917   :  { %v3205_v55 = vpop.f32.mrb[20].mxu0  ;;  %v3246_v43 = vpop.f32.mrb[36].mxu1 }
 0x918   :  { %v6877_v46 = vadd.f32 %v6876_v42, %v3205_v55  ;;  %v3207_v47 = vpop.f32.mrb[21].mxu0  ;;  %v6682_v48 = vpop.f32.mrb[37].mxu1  ;;  %v3247_v1 = vadd.f32 %v3246_v43, %v3039_v60  ;;  %v7304_v43 = vld [vmem:[#allocation20 + $0x304] ss:$12 sps:$4 sm:$0xff]   ;;  %v7324_v60 = vld [vmem:[#allocation20 + $0x37c] ss:$12 sps:$4 sm:$0xff]  }
 0x919   :  { %v3209_v49 = vpop.f32.mrb[22].mxu0  ;;  %v3249_v50 = vpop.f32.mrb[38].mxu1  ;;  %v6879_v54 = vadd.f32 %v6878_v45, %v3207_v47  ;;  %v7302_v45 = vld [vmem:[#allocation20 + $0x300] ss:$12 sps:$4 sm:$0xff]   ;;  %v7308_v47 = vld [vmem:[#allocation20 + $0x31c] ss:$12 sps:$4 sm:$0xff]  }
 0x91a   :  { %v6023_v51 = vmul.f32 -1.442695, %v6877_v46  ;;  %v3210_v52 = vpop.f32.mrb[23].mxu0  ;;  %v6683_v53 = vpop.f32.mrb[39].mxu1  ;;  %v7305_v46 = vld [vmem:[#allocation20 + $0x308] ss:$12 sps:$4 sm:$0xff]  }
 0x91b   :  { %v6024_v56 = vmul.f32 -1.442695, %v6879_v54  ;;  %v7306_v48 = vld [vmem:[#allocation20 + $0x318] ss:$12 sps:$4 sm:$0xff]   ;;  %v7309_v49 = vld [vmem:[#allocation20 + $0x320] ss:$12 sps:$4 sm:$0xff]  }
 0x91c   :  { %7532 = vpow2.f32 %v6023_v51  ;;  %v7312_v50 = vld [vmem:[#allocation20 + $0x334] ss:$12 sps:$4 sm:$0xff]   ;;  %v7310_v51 = vld [vmem:[#allocation20 + $0x330] ss:$12 sps:$4 sm:$0xff]   ;;  %v7313_v52 = vld [vmem:[#allocation20 + $0x338] ss:$12 sps:$4 sm:$0xff]  }
 0x91d   :  { %7534 = vpow2.f32 %v6024_v56  ;;  %v7316_v53 = vld [vmem:[#allocation20 + $0x34c] ss:$12 sps:$4 sm:$0xff]   ;;  %v7314_v54 = vld [vmem:[#allocation20 + $0x348] ss:$12 sps:$4 sm:$0xff]   ;;  %v7317_v56 = vld [vmem:[#allocation20 + $0x350] ss:$12 sps:$4 sm:$0xff]  }
 0x926   :  { %v7533_v57 = vpop.eup %7532 }
 0x927   :  { %v3256_v58 = vadd.f32 1.0, %v7533_v57  ;;  %v7535_v59 = vpop.eup %7534  ;;  %v7318_v57 = vld [vmem:[#allocation20 + $0x360] ss:$12 sps:$4 sm:$0xff]  }
 0x928   :  { %v3263_v63 = vadd.f32 1.0, %v7535_v59  ;;  %v7321_v59 = vld [vmem:[#allocation20 + $0x368] ss:$12 sps:$4 sm:$0xff]  }
 0x929   :  { %7536 = vrcp.f32 %v3256_v58  ;;  %v7320_v58 = vld [vmem:[#allocation20 + $0x364] ss:$12 sps:$4 sm:$0xff]  }
 0x92a   :  { %7538 = vrcp.f32 %v3263_v63  ;;  %v7325_v63 = vld [vmem:[#allocation20 + $0x380] ss:$12 sps:$4 sm:$0xff]  }
 0x933   :  { %v7537_v3 = vpop.eup %7536 }
 0x934   :  { %v3266_v6 = vmul.f32 %v7537_v3, %v3247_v1  ;;  %v7539_v9 = vpop.eup %7538  ;;  %v7328_v1 = vld [vmem:[#allocation20 + $0x394] ss:$12 sps:$4 sm:$0xff]   ;;  %v7326_v3 = vld [vmem:[#allocation20 + $0x390] ss:$12 sps:$4 sm:$0xff]  }
 0x935   :  { %v3269_v10 = vsub.f32 1.0, %v7539_v9  ;;  %v3271_v13 = vmul.f32 %v7539_v9, %v8459_v44  ;;  %v7277_v44 = vld [vmem:[#allocation21 + $0x320] ss:$12 sps:$4 sm:$0xff]   ;;  %v7333_v9 = vld [vmem:[#allocation20 + $0x3b0] ss:$12 sps:$4 sm:$0xff]  }
 0x936   :  { %v3267_v7 = vadd.f32 %v3266_v6, %v2986_v5  ;;  %v7329_v5 = vld [vmem:[#allocation20 + $0x398] ss:$12 sps:$4 sm:$0xff]  }
 0x937   :  { %v7332_v6 = vld [vmem:[#allocation20 + $0x3ac] ss:$12 sps:$4 sm:$0xff]  }
 0x938   :  { %7540 = vtanh.f32 %v3267_v7  ;;  %v7330_v7 = vld [vmem:[#allocation20 + $0x3a8] ss:$12 sps:$4 sm:$0xff]  }
 0x942   :  { %v7541_v11 = vpop.eup %7540 }
 0x943   :  { %v3270_v12 = vmul.f32 %v7541_v11, %v3269_v10  ;;  %v7336_v10 = vld [vmem:[#allocation21 + $0x3c4] ss:$12 sps:$4 sm:$0xff]  }
 0x945   :  { %v8485_v14 = vadd.f32 %v3271_v13, %v3270_v12 }
 0x947   :  { %6025 = vst [vmem:[%s8711_s21 + $0x18] sm:$0xff] %v8485_v14  ;;  %v3275_v16 = vadd.f32 %v8485_v14, %v8437_v32  ;;  %v7278_v32 = vld [vmem:[#allocation21 + $0x330] ss:$12 sps:$4 sm:$0xff]  }
 0x949   :  { %v3312_v19 = vpack.c.bf16 %v3275_v16, %v3275_v16 }
 0x94b   :  { %3492 = vmatmul.mubr.bf16.vlgmr.msra.gmra.mrb[24].mxu0 %v3312_v19  ;;  %6701 = vmatmul.mubr.bf16.vlgmr.msra.gmra.mrb[40].mxu1 %v3312_v19 }
 0x94c   :  { %3721 = vmatpush1.bf16.msra.mxu0 %v7270_v17  ;;  %6705 = vmatpush3.bf16.msra.mxu1 %v7273_v18  ;;  %v3575_v17 = vld [vmem:[#allocation23 + $0xc] sm:$0x7]  ;;  %v6027_v18 = vld [vmem:[%s8708_s18 + $0xc] sm:$0x7] }
 0x94d   :  { %3722 = vmatprep.subr.bf16.mxu0 %v7276_v20  ;;  %6706 = vmatprep.subr.bf16.mxu1 %v7912_v8  ;;  %v3319_v19 = vrot.slane %v6027_v18, %v8329_v37  ;;  %v3580_v20 = vrot.slane %v3575_v17, %v8329_v37 }
 0x94e   :  { %3752 = vmatprep.mubr.bf16.mxu0 %v7914_v15  ;;  %6720 = vmatprep.mubr.msk.bf16.mxu1 %vm7913_vm0, %v7912_v8  ;;  %v6026_v39 = vld [vmem:[%s8736_s9 + $0x20] sm:$0xff] }
 0x94f   :  { %v8507_v42 = vadd.f32 %v6026_v39, %v8308_v0 }
 0x950   :  { %3723 = vmatpush1.bf16.msra.mxu0 %v7274_v21  ;;  %6707 = vmatpush3.bf16.msra.mxu1 %v7277_v44  ;;  %v3323_v21 = vrot.slane %v6027_v18, %v8334_v40  ;;  %v3584_v44 = vrot.slane %v3575_v17, %v8334_v40 }
 0x951   :  { %3724 = vmatprep.subr.bf16.mxu0 %v7280_v22  ;;  %6708 = vmatprep.subr.bf16.mxu1 %v7912_v8  ;;  %v3573_v55 = vpack.c.bf16 %v8507_v42, %v8507_v42  ;;  %v6880_v22 = vadd.f32 %v3580_v20, %v3319_v19  ;;  %v7364_v19 = vld [vmem:[#allocation21 + $0x46c] ss:$12 sps:$4 sm:$0xff]  }
 0x954   :  { %3725 = vmatpush1.bf16.msra.mxu0 %v7278_v32  ;;  %6709 = vmatpush3.bf16.msra.mxu1 %v7281_v23 }
 0x955   :  { %3726 = vmatprep.subr.bf16.mxu0 %v7284_v2  ;;  %6710 = vmatprep.subr.bf16.mxu1 %v7912_v8  ;;  %v6882_v2 = vadd.f32 %v3584_v44, %v3323_v21  ;;  %v7362_v21 = vld [vmem:[#allocation21 + $0x468] ss:$12 sps:$4 sm:$0xff]   ;;  %v7365_v44 = vld [vmem:[#allocation21 + $0x470] ss:$12 sps:$4 sm:$0xff]  }
 0x958   :  { %3727 = vmatpush1.bf16.msra.mxu0 %v7282_v24  ;;  %6711 = vmatpush3.bf16.msra.mxu1 %v7285_v25 }
 0x959   :  { %3728 = vmatprep.subr.bf16.mxu0 %v7288_v26  ;;  %6712 = vmatprep.subr.bf16.mxu1 %v7912_v8 }
 0x95c   :  { %3729 = vmatpush1.bf16.msra.mxu0 %v7286_v27  ;;  %6713 = vmatpush3.bf16.msra.mxu1 %v7289_v28 }
 0x95d   :  { %3730 = vmatprep.subr.bf16.mxu0 %v7292_v29  ;;  %6714 = vmatprep.subr.bf16.mxu1 %v7912_v8 }
 0x960   :  { %3731 = vmatpush1.bf16.msra.mxu0 %v7290_v30  ;;  %6715 = vmatpush3.bf16.msra.mxu1 %v7293_v31 }
 0x961   :  { %3732 = vmatprep.subr.bf16.mxu0 %v7296_v33  ;;  %6716 = vmatprep.subr.bf16.mxu1 %v7912_v8 }
 0x964   :  { %3733 = vmatpush1.bf16.msra.mxu0 %v7294_v34  ;;  %6717 = vmatpush3.bf16.msra.mxu1 %v7297_v36 }
 0x965   :  { %3734 = vmatprep.subr.bf16.mxu0 %v7300_v38  ;;  %6718 = vmatprep.subr.bf16.mxu1 %v7912_v8 }
 0x968   :  { %3735 = vmatpush1.bf16.msra.mxu0 %v7298_v41  ;;  %6719 = vmatpush3.bf16.msra.mxu1 %v7301_v4  ;;  %v3588_v41 = vrot.slane %v3575_v17, %v8340_v61  ;;  %v3327_v4 = vrot.slane %v6027_v18, %v8340_v61  ;;  %v7358_v17 = vld [vmem:[#allocation21 + $0x450] ss:$12 sps:$4 sm:$0xff]   ;;  %v7361_v18 = vld [vmem:[#allocation21 + $0x458] ss:$12 sps:$4 sm:$0xff]  }
 0x969   :  { %6724 = vmatprep.subr.bf16.mxu1 %v7912_v8  ;;  %4008 = vmatprep.subr.bf16.mxu0 %v7304_v43 }
 0x96b   :  { %3753 = vmatmul.mubr.bf16.vlgmr.msra.gmra.mrb[24].mxu0 %v3573_v55  ;;  %6721 = vmatmul.mubr.bf16.vlgmr.msra.gmra.mrb[44].mxu1 %v3573_v55 }
 0x96c   :  { %4040 = vmatprep.mubr.bf16.mxu0 %v7914_v15  ;;  %6740 = vmatprep.mubr.msk.bf16.mxu1 %vm7913_vm0, %v7912_v8 }
 0x96d   :  { %4009 = vmatpush1.bf16.msra.mxu0 %v7302_v45  ;;  %6725 = vmatpush3.bf16.msra.mxu1 %v7305_v46 }
 0x96e   :  { %6726 = vmatprep.subr.bf16.mxu1 %v7912_v8  ;;  %4010 = vmatprep.subr.bf16.mxu0 %v7308_v47 }
 0x971   :  { %4011 = vmatpush1.bf16.msra.mxu0 %v7306_v48  ;;  %6727 = vmatpush3.bf16.msra.mxu1 %v7309_v49 }
 0x972   :  { %6728 = vmatprep.subr.bf16.mxu1 %v7912_v8  ;;  %4012 = vmatprep.subr.bf16.mxu0 %v7312_v50 }
 0x975   :  { %4013 = vmatpush1.bf16.msra.mxu0 %v7310_v51  ;;  %6729 = vmatpush3.bf16.msra.mxu1 %v7313_v52 }
 0x976   :  { %6730 = vmatprep.subr.bf16.mxu1 %v7912_v8  ;;  %4014 = vmatprep.subr.bf16.mxu0 %v7316_v53 }
 0x979   :  { %4015 = vmatpush1.bf16.msra.mxu0 %v7314_v54  ;;  %6731 = vmatpush3.bf16.msra.mxu1 %v7317_v56 }
 0x97a   :  { %6732 = vmatprep.subr.bf16.mxu1 %v7912_v8  ;;  %4016 = vmatprep.subr.bf16.mxu0 %v7320_v58  ;;  %v7337_v58 = vld [vmem:[#allocation21 + $0x3c8] ss:$12 sps:$4 sm:$0xff]  }
 0x97d   :  { %4017 = vmatpush1.bf16.msra.mxu0 %v7318_v57  ;;  %6733 = vmatpush3.bf16.msra.mxu1 %v7321_v59  ;;  %v7334_v57 = vld [vmem:[#allocation21 + $0x3c0] ss:$12 sps:$4 sm:$0xff]  }
 0x97e   :  { %4018 = vmatprep.subr.bf16.mxu0 %v7324_v60  ;;  %6734 = vmatprep.subr.bf16.mxu1 %v7912_v8  ;;  %v7340_v60 = vld [vmem:[#allocation21 + $0x3dc] ss:$12 sps:$4 sm:$0xff]  }
 0x981   :  { %4019 = vmatpush1.bf16.msra.mxu0 %v7322_v62  ;;  %6735 = vmatpush3.bf16.msra.mxu1 %v7325_v63  ;;  %v7338_v62 = vld [vmem:[#allocation21 + $0x3d8] ss:$12 sps:$4 sm:$0xff]   ;;  %v7344_v63 = vld [vmem:[#allocation21 + $0x3f4] ss:$12 sps:$4 sm:$0xff]  }
 0x982   :  { %4020 = vmatprep.subr.bf16.mxu0 %v7328_v1  ;;  %6736 = vmatprep.subr.bf16.mxu1 %v7912_v8  ;;  %v7345_v1 = vld [vmem:[#allocation21 + $0x3f8] ss:$12 sps:$4 sm:$0xff]  }
 0x985   :  { %4021 = vmatpush1.bf16.msra.mxu0 %v7326_v3  ;;  %6737 = vmatpush3.bf16.msra.mxu1 %v7329_v5  ;;  %v7348_v3 = vld [vmem:[#allocation21 + $0x40c] ss:$12 sps:$4 sm:$0xff]   ;;  %v7346_v5 = vld [vmem:[#allocation21 + $0x408] ss:$12 sps:$4 sm:$0xff]  }
 0x986   :  { %4022 = vmatprep.subr.bf16.mxu0 %v7332_v6  ;;  %6738 = vmatprep.subr.bf16.mxu1 %v7912_v8  ;;  %v7349_v6 = vld [vmem:[#allocation21 + $0x410] ss:$12 sps:$4 sm:$0xff]  }
 0x989   :  { %4023 = vmatpush1.bf16.msra.mxu0 %v7330_v7  ;;  %6739 = vmatpush3.bf16.msra.mxu1 %v7333_v9  ;;  %v7352_v7 = vld [vmem:[#allocation21 + $0x424] ss:$12 sps:$4 sm:$0xff]   ;;  %v7350_v9 = vld [vmem:[#allocation21 + $0x420] ss:$12 sps:$4 sm:$0xff]  }
 0x98a   :  { %4269 = vmatprep.subr.bf16.mxu0 %v7336_v10  ;;  %6744 = vmatprep.subr.bf16.mxu1 %v7912_v8  ;;  %v7353_v10 = vld [vmem:[#allocation21 + $0x428] ss:$12 sps:$4 sm:$0xff]  }
 0xa1e   :  { %v3534_v11 = vpop.f32.mrb[40].mxu1 }
 0xa1f   :  { %v6702_v12 = vpop.f32.mrb[41].mxu1  ;;  %v3535_v46 = vadd.f32 %v3534_v11, %v3327_v4  ;;  %v7356_v11 = vld [vmem:[#allocation21 + $0x43c] ss:$12 sps:$4 sm:$0xff]   ;;  %v7386_v4 = vld [vmem:[#allocation20 + $0x438] ss:$12 sps:$4 sm:$0xff]  }
 0xa20   :  { %v3537_v13 = vpop.f32.mrb[42].mxu1  ;;  %v7354_v12 = vld [vmem:[#allocation21 + $0x438] ss:$12 sps:$4 sm:$0xff]  }
 0xa21   :  { %v6703_v16 = vpop.f32.mrb[43].mxu1  ;;  %v7357_v13 = vld [vmem:[#allocation21 + $0x440] ss:$12 sps:$4 sm:$0xff]  }
 0xa22   :  { %v7360_v16 = vld [vmem:[#allocation21 + $0x454] ss:$12 sps:$4 sm:$0xff]  }
 0xa3e   :  { %v3754_v32 = vpop.f32.mrb[24].mxu0  ;;  %v3795_v23 = vpop.f32.mrb[44].mxu1 }
 0xa3f   :  { %v6881_v24 = vadd.f32 %v6880_v22, %v3754_v32  ;;  %v3756_v25 = vpop.f32.mrb[25].mxu0  ;;  %v6722_v26 = vpop.f32.mrb[45].mxu1  ;;  %v3796_v43 = vadd.f32 %v3795_v23, %v3588_v41  ;;  %v7368_v23 = vld [vmem:[#allocation20 + $0x3c4] ss:$12 sps:$4 sm:$0xff]   ;;  %v7388_v41 = vld [vmem:[#allocation20 + $0x43c] ss:$12 sps:$4 sm:$0xff]  }
 0xa40   :  { %v3758_v27 = vpop.f32.mrb[26].mxu0  ;;  %v3798_v28 = vpop.f32.mrb[46].mxu1  ;;  %v6883_v33 = vadd.f32 %v6882_v2, %v3756_v25  ;;  %v7366_v2 = vld [vmem:[#allocation20 + $0x3c0] ss:$12 sps:$4 sm:$0xff]   ;;  %v7372_v25 = vld [vmem:[#allocation20 + $0x3dc] ss:$12 sps:$4 sm:$0xff]  }
 0xa41   :  { %v6076_v29 = vmul.f32 -1.442695, %v6881_v24  ;;  %v3759_v30 = vpop.f32.mrb[27].mxu0  ;;  %v6723_v31 = vpop.f32.mrb[47].mxu1  ;;  %v7369_v24 = vld [vmem:[#allocation20 + $0x3c8] ss:$12 sps:$4 sm:$0xff]  }
 0xa42   :  { %v6077_v34 = vmul.f32 -1.442695, %v6883_v33  ;;  %v7370_v26 = vld [vmem:[#allocation20 + $0x3d8] ss:$12 sps:$4 sm:$0xff]   ;;  %v7373_v27 = vld [vmem:[#allocation20 + $0x3e0] ss:$12 sps:$4 sm:$0xff]  }
 0xa43   :  { %7542 = vpow2.f32 %v6076_v29  ;;  %v7376_v28 = vld [vmem:[#allocation20 + $0x3f4] ss:$12 sps:$4 sm:$0xff]   ;;  %v7374_v29 = vld [vmem:[#allocation20 + $0x3f0] ss:$12 sps:$4 sm:$0xff]   ;;  %v7377_v30 = vld [vmem:[#allocation20 + $0x3f8] ss:$12 sps:$4 sm:$0xff]  }
 0xa44   :  { %7544 = vpow2.f32 %v6077_v34  ;;  %v7380_v31 = vld [vmem:[#allocation20 + $0x40c] ss:$12 sps:$4 sm:$0xff]   ;;  %v7378_v33 = vld [vmem:[#allocation20 + $0x408] ss:$12 sps:$4 sm:$0xff]   ;;  %v7381_v34 = vld [vmem:[#allocation20 + $0x410] ss:$12 sps:$4 sm:$0xff]  }
 0xa4d   :  { %v7543_v36 = vpop.eup %7542 }
 0xa4e   :  { %v3805_v38 = vadd.f32 1.0, %v7543_v36  ;;  %v7545_v39 = vpop.eup %7544  ;;  %v7382_v36 = vld [vmem:[#allocation20 + $0x420] ss:$12 sps:$4 sm:$0xff]  }
 0xa4f   :  { %v3812_v55 = vadd.f32 1.0, %v7545_v39  ;;  %v7385_v39 = vld [vmem:[#allocation20 + $0x428] ss:$12 sps:$4 sm:$0xff]  }
 0xa50   :  { %7546 = vrcp.f32 %v3805_v38  ;;  %v7384_v38 = vld [vmem:[#allocation20 + $0x424] ss:$12 sps:$4 sm:$0xff]  }
 0xa51   :  { %7548 = vrcp.f32 %v3812_v55  ;;  %v7389_v55 = vld [vmem:[#allocation20 + $0x440] ss:$12 sps:$4 sm:$0xff]  }
 0xa5a   :  { %v7547_v45 = vpop.eup %7546 }
 0xa5b   :  { %v3815_v47 = vmul.f32 %v7547_v45, %v3796_v43  ;;  %v7549_v49 = vpop.eup %7548  ;;  %v7392_v43 = vld [vmem:[#allocation20 + $0x454] ss:$12 sps:$4 sm:$0xff]   ;;  %v7390_v45 = vld [vmem:[#allocation20 + $0x450] ss:$12 sps:$4 sm:$0xff]  }
 0xa5c   :  { %v3818_v50 = vsub.f32 1.0, %v7549_v49  ;;  %v3820_v53 = vmul.f32 %v7549_v49, %v8507_v42  ;;  %v7341_v42 = vld [vmem:[#allocation21 + $0x3e0] ss:$12 sps:$4 sm:$0xff]   ;;  %v7397_v49 = vld [vmem:[#allocation20 + $0x470] ss:$12 sps:$4 sm:$0xff]  }
 0xa5d   :  { %v3816_v48 = vadd.f32 %v3815_v47, %v3535_v46  ;;  %v7393_v46 = vld [vmem:[#allocation20 + $0x458] ss:$12 sps:$4 sm:$0xff]  }
 0xa5e   :  { %v7396_v47 = vld [vmem:[#allocation20 + $0x46c] ss:$12 sps:$4 sm:$0xff]  }
 0xa5f   :  { %7550 = vtanh.f32 %v3816_v48  ;;  %v7394_v48 = vld [vmem:[#allocation20 + $0x468] ss:$12 sps:$4 sm:$0xff]  }
 0xa69   :  { %v7551_v51 = vpop.eup %7550 }
 0xa6a   :  { %v3819_v52 = vmul.f32 %v7551_v51, %v3818_v50  ;;  %v7400_v50 = vld [vmem:[#allocation21 + $0x484] ss:$12 sps:$4 sm:$0xff]  }
 0xa6c   :  { %v8533_v54 = vadd.f32 %v3820_v53, %v3819_v52 }
 0xa6e   :  { %6078 = vst [vmem:[%s8711_s21 + $0x20] sm:$0xff] %v8533_v54  ;;  %v3824_v56 = vadd.f32 %v8533_v54, %v8485_v14  ;;  %v7342_v14 = vld [vmem:[#allocation21 + $0x3f0] ss:$12 sps:$4 sm:$0xff]  }
 0xa70   :  { %v3861_v59 = vpack.c.bf16 %v3824_v56, %v3824_v56 }
 0xa72   :  { %4041 = vmatmul.mubr.bf16.vlgmr.msra.gmra.mrb[28].mxu0 %v3861_v59  ;;  %6741 = vmatmul.mubr.bf16.vlgmr.msra.gmra.mrb[48].mxu1 %v3861_v59 }
 0xa73   :  { %4270 = vmatpush1.bf16.msra.mxu0 %v7334_v57  ;;  %6745 = vmatpush3.bf16.msra.mxu1 %v7337_v58  ;;  %v4124_v57 = vld [vmem:[#allocation23 + $0xf] sm:$0x7]  ;;  %v6080_v58 = vld [vmem:[%s8708_s18 + $0xf] sm:$0x7] }
 0xa74   :  { %4271 = vmatprep.subr.bf16.mxu0 %v7340_v60  ;;  %6746 = vmatprep.subr.bf16.mxu1 %v7912_v8  ;;  %v3868_v59 = vrot.slane %v6080_v58, %v8329_v37  ;;  %v4129_v60 = vrot.slane %v4124_v57, %v8329_v37 }
 0xa75   :  { %4301 = vmatprep.mubr.bf16.mxu0 %v7914_v15  ;;  %6760 = vmatprep.mubr.msk.bf16.mxu1 %vm7913_vm0, %v7912_v8  ;;  %v6079_v20 = vld [vmem:[%s8736_s9 + $0x28] sm:$0xff] }
 0xa76   :  { %v8555_v22 = vadd.f32 %v6079_v20, %v8308_v0 }
 0xa77   :  { %4272 = vmatpush1.bf16.msra.mxu0 %v7338_v62  ;;  %6747 = vmatpush3.bf16.msra.mxu1 %v7341_v42  ;;  %v3872_v62 = vrot.slane %v6080_v58, %v8334_v40  ;;  %v4133_v42 = vrot.slane %v4124_v57, %v8334_v40 }
 0xa78   :  { %4273 = vmatprep.subr.bf16.mxu0 %v7344_v63  ;;  %6748 = vmatprep.subr.bf16.mxu1 %v7912_v8  ;;  %v4122_v32 = vpack.c.bf16 %v8555_v22, %v8555_v22  ;;  %v6884_v63 = vadd.f32 %v4129_v60, %v3868_v59  ;;  %v7428_v59 = vld [vmem:[#allocation21 + $0x52c] ss:$12 sps:$4 sm:$0xff]  }
 0xa7b   :  { %4274 = vmatpush1.bf16.msra.mxu0 %v7342_v14  ;;  %6749 = vmatpush3.bf16.msra.mxu1 %v7345_v1 }
 0xa7c   :  { %4275 = vmatprep.subr.bf16.mxu0 %v7348_v3  ;;  %6750 = vmatprep.subr.bf16.mxu1 %v7912_v8  ;;  %v6886_v3 = vadd.f32 %v4133_v42, %v3872_v62  ;;  %v7426_v62 = vld [vmem:[#allocation21 + $0x528] ss:$12 sps:$4 sm:$0xff]   ;;  %v7429_v42 = vld [vmem:[#allocation21 + $0x530] ss:$12 sps:$4 sm:$0xff]  }
 0xa7f   :  { %4276 = vmatpush1.bf16.msra.mxu0 %v7346_v5  ;;  %6751 = vmatpush3.bf16.msra.mxu1 %v7349_v6 }
 0xa80   :  { %4277 = vmatprep.subr.bf16.mxu0 %v7352_v7  ;;  %6752 = vmatprep.subr.bf16.mxu1 %v7912_v8 }
 0xa83   :  { %4278 = vmatpush1.bf16.msra.mxu0 %v7350_v9  ;;  %6753 = vmatpush3.bf16.msra.mxu1 %v7353_v10 }
 0xa84   :  { %4279 = vmatprep.subr.bf16.mxu0 %v7356_v11  ;;  %6754 = vmatprep.subr.bf16.mxu1 %v7912_v8 }
 0xa87   :  { %4280 = vmatpush1.bf16.msra.mxu0 %v7354_v12  ;;  %6755 = vmatpush3.bf16.msra.mxu1 %v7357_v13 }
 0xa88   :  { %4281 = vmatprep.subr.bf16.mxu0 %v7360_v16  ;;  %6756 = vmatprep.subr.bf16.mxu1 %v7912_v8 }
 0xa8b   :  { %4282 = vmatpush1.bf16.msra.mxu0 %v7358_v17  ;;  %6757 = vmatpush3.bf16.msra.mxu1 %v7361_v18 }
 0xa8c   :  { %4283 = vmatprep.subr.bf16.mxu0 %v7364_v19  ;;  %6758 = vmatprep.subr.bf16.mxu1 %v7912_v8 }
 0xa8f   :  { %4284 = vmatpush1.bf16.msra.mxu0 %v7362_v21  ;;  %6759 = vmatpush3.bf16.msra.mxu1 %v7365_v44  ;;  %v4137_v21 = vrot.slane %v4124_v57, %v8340_v61  ;;  %v3876_v44 = vrot.slane %v6080_v58, %v8340_v61  ;;  %v7422_v57 = vld [vmem:[#allocation21 + $0x510] ss:$12 sps:$4 sm:$0xff]   ;;  %v7425_v58 = vld [vmem:[#allocation21 + $0x518] ss:$12 sps:$4 sm:$0xff]  }
 0xa90   :  { %6764 = vmatprep.subr.bf16.mxu1 %v7912_v8  ;;  %4557 = vmatprep.subr.bf16.mxu0 %v7368_v23 }
 0xa92   :  { %4302 = vmatmul.mubr.bf16.vlgmr.msra.gmra.mrb[28].mxu0 %v4122_v32  ;;  %6761 = vmatmul.mubr.bf16.vlgmr.msra.gmra.mrb[52].mxu1 %v4122_v32 }
 0xa93   :  { %4589 = vmatprep.mubr.bf16.mxu0 %v7914_v15  ;;  %6780 = vmatprep.mubr.msk.bf16.mxu1 %vm7913_vm0, %v7912_v8 }
 0xa94   :  { %4558 = vmatpush1.bf16.msra.mxu0 %v7366_v2  ;;  %6765 = vmatpush3.bf16.msra.mxu1 %v7369_v24 }
 0xa95   :  { %6766 = vmatprep.subr.bf16.mxu1 %v7912_v8  ;;  %4559 = vmatprep.subr.bf16.mxu0 %v7372_v25 }
 0xa98   :  { %4560 = vmatpush1.bf16.msra.mxu0 %v7370_v26  ;;  %6767 = vmatpush3.bf16.msra.mxu1 %v7373_v27 }
 0xa99   :  { %6768 = vmatprep.subr.bf16.mxu1 %v7912_v8  ;;  %4561 = vmatprep.subr.bf16.mxu0 %v7376_v28 }
 0xa9c   :  { %4562 = vmatpush1.bf16.msra.mxu0 %v7374_v29  ;;  %6769 = vmatpush3.bf16.msra.mxu1 %v7377_v30 }
 0xa9d   :  { %6770 = vmatprep.subr.bf16.mxu1 %v7912_v8  ;;  %4563 = vmatprep.subr.bf16.mxu0 %v7380_v31 }
 0xaa0   :  { %4564 = vmatpush1.bf16.msra.mxu0 %v7378_v33  ;;  %6771 = vmatpush3.bf16.msra.mxu1 %v7381_v34 }
 0xaa1   :  { %6772 = vmatprep.subr.bf16.mxu1 %v7912_v8  ;;  %4565 = vmatprep.subr.bf16.mxu0 %v7384_v38  ;;  %v7401_v38 = vld [vmem:[#allocation21 + $0x488] ss:$12 sps:$4 sm:$0xff]  }
 0xaa4   :  { %4566 = vmatpush1.bf16.msra.mxu0 %v7382_v36  ;;  %6773 = vmatpush3.bf16.msra.mxu1 %v7385_v39  ;;  %v7398_v36 = vld [vmem:[#allocation21 + $0x480] ss:$12 sps:$4 sm:$0xff]  }
 0xaa5   :  { %4567 = vmatprep.subr.bf16.mxu0 %v7388_v41  ;;  %6774 = vmatprep.subr.bf16.mxu1 %v7912_v8  ;;  %v7404_v41 = vld [vmem:[#allocation21 + $0x49c] ss:$12 sps:$4 sm:$0xff]  }
 0xaa8   :  { %4568 = vmatpush1.bf16.msra.mxu0 %v7386_v4  ;;  %6775 = vmatpush3.bf16.msra.mxu1 %v7389_v55  ;;  %v7402_v4 = vld [vmem:[#allocation21 + $0x498] ss:$12 sps:$4 sm:$0xff]   ;;  %v7408_v55 = vld [vmem:[#allocation21 + $0x4b4] ss:$12 sps:$4 sm:$0xff]  }
 0xaa9   :  { %4569 = vmatprep.subr.bf16.mxu0 %v7392_v43  ;;  %6776 = vmatprep.subr.bf16.mxu1 %v7912_v8  ;;  %v7409_v43 = vld [vmem:[#allocation21 + $0x4b8] ss:$12 sps:$4 sm:$0xff]  }
 0xaac   :  { %4570 = vmatpush1.bf16.msra.mxu0 %v7390_v45  ;;  %6777 = vmatpush3.bf16.msra.mxu1 %v7393_v46  ;;  %v7412_v45 = vld [vmem:[#allocation21 + $0x4cc] ss:$12 sps:$4 sm:$0xff]   ;;  %v7410_v46 = vld [vmem:[#allocation21 + $0x4c8] ss:$12 sps:$4 sm:$0xff]  }
 0xaad   :  { %4571 = vmatprep.subr.bf16.mxu0 %v7396_v47  ;;  %6778 = vmatprep.subr.bf16.mxu1 %v7912_v8  ;;  %v7413_v47 = vld [vmem:[#allocation21 + $0x4d0] ss:$12 sps:$4 sm:$0xff]  }
 0xab0   :  { %4572 = vmatpush1.bf16.msra.mxu0 %v7394_v48  ;;  %6779 = vmatpush3.bf16.msra.mxu1 %v7397_v49  ;;  %v7416_v48 = vld [vmem:[#allocation21 + $0x4e4] ss:$12 sps:$4 sm:$0xff]   ;;  %v7414_v49 = vld [vmem:[#allocation21 + $0x4e0] ss:$12 sps:$4 sm:$0xff]  }
 0xab1   :  { %4818 = vmatprep.subr.bf16.mxu0 %v7400_v50  ;;  %6784 = vmatprep.subr.bf16.mxu1 %v7912_v8  ;;  %v7417_v50 = vld [vmem:[#allocation21 + $0x4e8] ss:$12 sps:$4 sm:$0xff]  }
 0xb45   :  { %v4083_v51 = vpop.f32.mrb[48].mxu1 }
 0xb46   :  { %v6742_v52 = vpop.f32.mrb[49].mxu1  ;;  %v4084_v24 = vadd.f32 %v4083_v51, %v3876_v44  ;;  %v7420_v51 = vld [vmem:[#allocation21 + $0x4fc] ss:$12 sps:$4 sm:$0xff]   ;;  %v7450_v44 = vld [vmem:[#allocation20 + $0x4f8] ss:$12 sps:$4 sm:$0xff]  }
 0xb47   :  { %v4086_v53 = vpop.f32.mrb[50].mxu1  ;;  %v7418_v52 = vld [vmem:[#allocation21 + $0x4f8] ss:$12 sps:$4 sm:$0xff]  }
 0xb48   :  { %v6743_v56 = vpop.f32.mrb[51].mxu1  ;;  %v7421_v53 = vld [vmem:[#allocation21 + $0x500] ss:$12 sps:$4 sm:$0xff]  }
 0xb49   :  { %v7424_v56 = vld [vmem:[#allocation21 + $0x514] ss:$12 sps:$4 sm:$0xff]  }
 0xb65   :  { %v4303_v14 = vpop.f32.mrb[28].mxu0  ;;  %v4344_v1 = vpop.f32.mrb[52].mxu1 }
 0xb66   :  { %v6885_v5 = vadd.f32 %v6884_v63, %v4303_v14  ;;  %v4305_v6 = vpop.f32.mrb[29].mxu0  ;;  %v6762_v7 = vpop.f32.mrb[53].mxu1  ;;  %v4345_v23 = vadd.f32 %v4344_v1, %v4137_v21  ;;  %v7432_v1 = vld [vmem:[#allocation20 + $0x484] ss:$12 sps:$4 sm:$0xff]   ;;  %v7452_v21 = vld [vmem:[#allocation20 + $0x4fc] ss:$12 sps:$4 sm:$0xff]  }
 0xb67   :  { %v4307_v9 = vpop.f32.mrb[30].mxu0  ;;  %v4347_v10 = vpop.f32.mrb[54].mxu1  ;;  %v6887_v16 = vadd.f32 %v6886_v3, %v4305_v6  ;;  %v7430_v3 = vld [vmem:[#allocation20 + $0x480] ss:$12 sps:$4 sm:$0xff]   ;;  %v7436_v6 = vld [vmem:[#allocation20 + $0x49c] ss:$12 sps:$4 sm:$0xff]  }
 0xb68   :  { %v6129_v11 = vmul.f32 -1.442695, %v6885_v5  ;;  %v4308_v12 = vpop.f32.mrb[31].mxu0  ;;  %v6763_v13 = vpop.f32.mrb[55].mxu1  ;;  %v7433_v5 = vld [vmem:[#allocation20 + $0x488] ss:$12 sps:$4 sm:$0xff]  }
 0xb69   :  { %v6130_v17 = vmul.f32 -1.442695, %v6887_v16  ;;  %v7434_v7 = vld [vmem:[#allocation20 + $0x498] ss:$12 sps:$4 sm:$0xff]   ;;  %v7437_v9 = vld [vmem:[#allocation20 + $0x4a0] ss:$12 sps:$4 sm:$0xff]  }
 0xb6a   :  { %7552 = vpow2.f32 %v6129_v11  ;;  %v7440_v10 = vld [vmem:[#allocation20 + $0x4b4] ss:$12 sps:$4 sm:$0xff]   ;;  %v7438_v11 = vld [vmem:[#allocation20 + $0x4b0] ss:$12 sps:$4 sm:$0xff]   ;;  %v7441_v12 = vld [vmem:[#allocation20 + $0x4b8] ss:$12 sps:$4 sm:$0xff]  }
 0xb6b   :  { %7554 = vpow2.f32 %v6130_v17  ;;  %v7444_v13 = vld [vmem:[#allocation20 + $0x4cc] ss:$12 sps:$4 sm:$0xff]   ;;  %v7442_v16 = vld [vmem:[#allocation20 + $0x4c8] ss:$12 sps:$4 sm:$0xff]   ;;  %v7445_v17 = vld [vmem:[#allocation20 + $0x4d0] ss:$12 sps:$4 sm:$0xff]  }
 0xb74   :  { %v7553_v18 = vpop.eup %7552 }
 0xb75   :  { %v4354_v19 = vadd.f32 1.0, %v7553_v18  ;;  %v7555_v20 = vpop.eup %7554  ;;  %v7446_v18 = vld [vmem:[#allocation20 + $0x4e0] ss:$12 sps:$4 sm:$0xff]  }
 0xb76   :  { %v4361_v32 = vadd.f32 1.0, %v7555_v20  ;;  %v7449_v20 = vld [vmem:[#allocation20 + $0x4e8] ss:$12 sps:$4 sm:$0xff]  }
 0xb77   :  { %7556 = vrcp.f32 %v4354_v19  ;;  %v7448_v19 = vld [vmem:[#allocation20 + $0x4e4] ss:$12 sps:$4 sm:$0xff]  }
 0xb78   :  { %7558 = vrcp.f32 %v4361_v32  ;;  %v7453_v32 = vld [vmem:[#allocation20 + $0x500] ss:$12 sps:$4 sm:$0xff]  }
 0xb81   :  { %v7557_v2 = vpop.eup %7556 }
 0xb82   :  { %v4364_v25 = vmul.f32 %v7557_v2, %v4345_v23  ;;  %v7559_v27 = vpop.eup %7558  ;;  %v7456_v23 = vld [vmem:[#allocation20 + $0x514] ss:$12 sps:$4 sm:$0xff]   ;;  %v7454_v2 = vld [vmem:[#allocation20 + $0x510] ss:$12 sps:$4 sm:$0xff]  }
 0xb83   :  { %v4367_v28 = vsub.f32 1.0, %v7559_v27  ;;  %v4369_v31 = vmul.f32 %v7559_v27, %v8555_v22  ;;  %v7405_v22 = vld [vmem:[#allocation21 + $0x4a0] ss:$12 sps:$4 sm:$0xff]   ;;  %v7461_v27 = vld [vmem:[#allocation20 + $0x530] ss:$12 sps:$4 sm:$0xff]  }
 0xb84   :  { %v4365_v26 = vadd.f32 %v4364_v25, %v4084_v24  ;;  %v7457_v24 = vld [vmem:[#allocation20 + $0x518] ss:$12 sps:$4 sm:$0xff]  }
 0xb85   :  { %v7460_v25 = vld [vmem:[#allocation20 + $0x52c] ss:$12 sps:$4 sm:$0xff]  }
 0xb86   :  { %7560 = vtanh.f32 %v4365_v26  ;;  %v7458_v26 = vld [vmem:[#allocation20 + $0x528] ss:$12 sps:$4 sm:$0xff]  }
 0xb90   :  { %v7561_v29 = vpop.eup %7560 }
 0xb91   :  { %v4368_v30 = vmul.f32 %v7561_v29, %v4367_v28  ;;  %v7464_v28 = vld [vmem:[#allocation21 + $0x544] ss:$12 sps:$4 sm:$0xff]  }
 0xb93   :  { %v8581_v33 = vadd.f32 %v4369_v31, %v4368_v30 }
 0xb95   :  { %6131 = vst [vmem:[%s8711_s21 + $0x28] sm:$0xff] %v8581_v33  ;;  %v4373_v34 = vadd.f32 %v8581_v33, %v8533_v54  ;;  %v7406_v54 = vld [vmem:[#allocation21 + $0x4b0] ss:$12 sps:$4 sm:$0xff]  }
 0xb97   :  { %v4410_v39 = vpack.c.bf16 %v4373_v34, %v4373_v34 }
 0xb99   :  { %4590 = vmatmul.mubr.bf16.vlgmr.msra.gmra.mrb[32].mxu0 %v4410_v39  ;;  %6781 = vmatmul.mubr.bf16.vlgmr.msra.gmra.mrb[56].mxu1 %v4410_v39 }
 0xb9a   :  { %4819 = vmatpush1.bf16.msra.mxu0 %v7398_v36  ;;  %6785 = vmatpush3.bf16.msra.mxu1 %v7401_v38  ;;  %v4673_v36 = vld [vmem:[#allocation23 + $0x12] sm:$0x7]  ;;  %v6133_v38 = vld [vmem:[%s8708_s18 + $0x12] sm:$0x7] }
 0xb9b   :  { %4820 = vmatprep.subr.bf16.mxu0 %v7404_v41  ;;  %6786 = vmatprep.subr.bf16.mxu1 %v7912_v8  ;;  %v4417_v39 = vrot.slane %v6133_v38, %v8329_v37  ;;  %v4678_v41 = vrot.slane %v4673_v36, %v8329_v37 }
 0xb9c   :  { %4850 = vmatprep.mubr.bf16.mxu0 %v7914_v15  ;;  %6800 = vmatprep.mubr.msk.bf16.mxu1 %vm7913_vm0, %v7912_v8  ;;  %v6132_v60 = vld [vmem:[%s8736_s9 + $0x30] sm:$0xff] }
 0xb9d   :  { %v8603_v63 = vadd.f32 %v6132_v60, %v8308_v0 }
 0xb9e   :  { %4821 = vmatpush1.bf16.msra.mxu0 %v7402_v4  ;;  %6787 = vmatpush3.bf16.msra.mxu1 %v7405_v22  ;;  %v4421_v4 = vrot.slane %v6133_v38, %v8334_v40  ;;  %v4682_v22 = vrot.slane %v4673_v36, %v8334_v40 }
 0xb9f   :  { %4822 = vmatprep.subr.bf16.mxu0 %v7408_v55  ;;  %6788 = vmatprep.subr.bf16.mxu1 %v7912_v8  ;;  %v4671_v14 = vpack.c.bf16 %v8603_v63, %v8603_v63  ;;  %v6888_v55 = vadd.f32 %v4678_v41, %v4417_v39  ;;  %v7490_v41 = vld [vmem:[#allocation21 + $0x5e8] ss:$12 sps:$4 sm:$0xff]  }
 0xba2   :  { %4823 = vmatpush1.bf16.msra.mxu0 %v7406_v54  ;;  %6789 = vmatpush3.bf16.msra.mxu1 %v7409_v43 }
 0xba3   :  { %4824 = vmatprep.subr.bf16.mxu0 %v7412_v45  ;;  %6790 = vmatprep.subr.bf16.mxu1 %v7912_v8  ;;  %v6890_v45 = vadd.f32 %v4682_v22, %v4421_v4  ;;  %v7493_v4 = vld [vmem:[#allocation21 + $0x5f0] ss:$12 sps:$4 sm:$0xff]  }
 0xba6   :  { %4825 = vmatpush1.bf16.msra.mxu0 %v7410_v46  ;;  %6791 = vmatpush3.bf16.msra.mxu1 %v7413_v47 }
 0xba7   :  { %4826 = vmatprep.subr.bf16.mxu0 %v7416_v48  ;;  %6792 = vmatprep.subr.bf16.mxu1 %v7912_v8 }
 0xbaa   :  { %4827 = vmatpush1.bf16.msra.mxu0 %v7414_v49  ;;  %6793 = vmatpush3.bf16.msra.mxu1 %v7417_v50 }
 0xbab   :  { %4828 = vmatprep.subr.bf16.mxu0 %v7420_v51  ;;  %6794 = vmatprep.subr.bf16.mxu1 %v7912_v8 }
 0xbae   :  { %4829 = vmatpush1.bf16.msra.mxu0 %v7418_v52  ;;  %6795 = vmatpush3.bf16.msra.mxu1 %v7421_v53 }
 0xbaf   :  { %4830 = vmatprep.subr.bf16.mxu0 %v7424_v56  ;;  %6796 = vmatprep.subr.bf16.mxu1 %v7912_v8 }
 0xbb2   :  { %4831 = vmatpush1.bf16.msra.mxu0 %v7422_v57  ;;  %6797 = vmatpush3.bf16.msra.mxu1 %v7425_v58 }
 0xbb3   :  { %4832 = vmatprep.subr.bf16.mxu0 %v7428_v59  ;;  %6798 = vmatprep.subr.bf16.mxu1 %v7912_v8 }
 0xbb6   :  { %4833 = vmatpush1.bf16.msra.mxu0 %v7426_v62  ;;  %6799 = vmatpush3.bf16.msra.mxu1 %v7429_v42  ;;  %v4686_v62 = vrot.slane %v4673_v36, %v8340_v61  ;;  %v4425_v42 = vrot.slane %v6133_v38, %v8340_v61  ;;  %v7489_v36 = vld [vmem:[#allocation21 + $0x5d8] ss:$12 sps:$4 sm:$0xff]  }
 0xbb7   :  { %6804 = vmatprep.subr.bf16.mxu1 %v7912_v8  ;;  %5106 = vmatprep.subr.bf16.mxu0 %v7432_v1  ;;  %v7492_v38 = vld [vmem:[#allocation21 + $0x5ec] ss:$12 sps:$4 sm:$0xff]  }
 0xbb9   :  { %4851 = vmatmul.mubr.bf16.vlgmr.msra.gmra.mrb[32].mxu0 %v4671_v14  ;;  %6801 = vmatmul.mubr.bf16.vlgmr.msra.gmra.mrb[60].mxu1 %v4671_v14 }
 0xbba   :  { %5138 = vmatprep.mubr.bf16.mxu0 %v7914_v15  ;;  %6820 = vmatprep.mubr.msk.bf16.mxu1 %vm7913_vm0, %v7912_v8 }
 0xbbb   :  { %5107 = vmatpush1.bf16.msra.mxu0 %v7430_v3  ;;  %6805 = vmatpush3.bf16.msra.mxu1 %v7433_v5 }
 0xbbc   :  { %6806 = vmatprep.subr.bf16.mxu1 %v7912_v8  ;;  %5108 = vmatprep.subr.bf16.mxu0 %v7436_v6 }
 0xbbf   :  { %5109 = vmatpush1.bf16.msra.mxu0 %v7434_v7  ;;  %6807 = vmatpush3.bf16.msra.mxu1 %v7437_v9 }
 0xbc0   :  { %6808 = vmatprep.subr.bf16.mxu1 %v7912_v8  ;;  %5110 = vmatprep.subr.bf16.mxu0 %v7440_v10 }
 0xbc3   :  { %5111 = vmatpush1.bf16.msra.mxu0 %v7438_v11  ;;  %6809 = vmatpush3.bf16.msra.mxu1 %v7441_v12 }
 0xbc4   :  { %6810 = vmatprep.subr.bf16.mxu1 %v7912_v8  ;;  %5112 = vmatprep.subr.bf16.mxu0 %v7444_v13 }
 0xbc7   :  { %5113 = vmatpush1.bf16.msra.mxu0 %v7442_v16  ;;  %6811 = vmatpush3.bf16.msra.mxu1 %v7445_v17 }
 0xbc8   :  { %6812 = vmatprep.subr.bf16.mxu1 %v7912_v8  ;;  %5114 = vmatprep.subr.bf16.mxu0 %v7448_v19  ;;  %v7465_v19 = vld [vmem:[#allocation21 + $0x548] ss:$12 sps:$4 sm:$0xff]  }
 0xbcb   :  { %5115 = vmatpush1.bf16.msra.mxu0 %v7446_v18  ;;  %6813 = vmatpush3.bf16.msra.mxu1 %v7449_v20  ;;  %v7462_v18 = vld [vmem:[#allocation21 + $0x540] ss:$12 sps:$4 sm:$0xff]  }
 0xbcc   :  { %5116 = vmatprep.subr.bf16.mxu0 %v7452_v21  ;;  %6814 = vmatprep.subr.bf16.mxu1 %v7912_v8  ;;  %v7468_v21 = vld [vmem:[#allocation21 + $0x55c] ss:$12 sps:$4 sm:$0xff]  }
 0xbcf   :  { %5117 = vmatpush1.bf16.msra.mxu0 %v7450_v44  ;;  %6815 = vmatpush3.bf16.msra.mxu1 %v7453_v32  ;;  %v7466_v44 = vld [vmem:[#allocation21 + $0x558] ss:$12 sps:$4 sm:$0xff]   ;;  %v7469_v32 = vld [vmem:[#allocation21 + $0x560] ss:$12 sps:$4 sm:$0xff]  }
 0xbd0   :  { %5118 = vmatprep.subr.bf16.mxu0 %v7456_v23  ;;  %6816 = vmatprep.subr.bf16.mxu1 %v7912_v8  ;;  %v7473_v23 = vld [vmem:[#allocation21 + $0x578] ss:$12 sps:$4 sm:$0xff]  }
 0xbd3   :  { %5119 = vmatpush1.bf16.msra.mxu0 %v7454_v2  ;;  %6817 = vmatpush3.bf16.msra.mxu1 %v7457_v24  ;;  %v7476_v2 = vld [vmem:[#allocation21 + $0x58c] ss:$12 sps:$4 sm:$0xff]   ;;  %v7474_v24 = vld [vmem:[#allocation21 + $0x588] ss:$12 sps:$4 sm:$0xff]  }
 0xbd4   :  { %5120 = vmatprep.subr.bf16.mxu0 %v7460_v25  ;;  %6818 = vmatprep.subr.bf16.mxu1 %v7912_v8  ;;  %v7477_v25 = vld [vmem:[#allocation21 + $0x590] ss:$12 sps:$4 sm:$0xff]  }
 0xbd7   :  { %5121 = vmatpush1.bf16.msra.mxu0 %v7458_v26  ;;  %6819 = vmatpush3.bf16.msra.mxu1 %v7461_v27  ;;  %v7480_v26 = vld [vmem:[#allocation21 + $0x5a4] ss:$12 sps:$4 sm:$0xff]   ;;  %v7481_v27 = vld [vmem:[#allocation21 + $0x5a8] ss:$12 sps:$4 sm:$0xff]  }
 0xbd8   :  { %5367 = vmatprep.subr.bf16.mxu0 %v7464_v28  ;;  %6824 = vmatprep.subr.bf16.mxu1 %v7912_v8  ;;  %v7484_v28 = vld [vmem:[#allocation21 + $0x5bc] ss:$12 sps:$4 sm:$0xff]  }
 0xc6c   :  { %v4632_v29 = vpop.f32.mrb[56].mxu1 }
 0xc6d   :  { %v6782_v30 = vpop.f32.mrb[57].mxu1  ;;  %v4633_v5 = vadd.f32 %v4632_v29, %v4425_v42  ;;  %v7482_v29 = vld [vmem:[#allocation21 + $0x5b8] ss:$12 sps:$4 sm:$0xff]  }
 0xc6e   :  { %v4635_v31 = vpop.f32.mrb[58].mxu1  ;;  %v7485_v30 = vld [vmem:[#allocation21 + $0x5c0] ss:$12 sps:$4 sm:$0xff]  }
 0xc6f   :  { %v6783_v34 = vpop.f32.mrb[59].mxu1  ;;  %v7488_v31 = vld [vmem:[#allocation21 + $0x5d4] ss:$12 sps:$4 sm:$0xff]  }
 0xc70   :  { %v7486_v34 = vld [vmem:[#allocation21 + $0x5d0] ss:$12 sps:$4 sm:$0xff]  }
 0xc8c   :  { %v4852_v54 = vpop.f32.mrb[32].mxu0  ;;  %v4893_v43 = vpop.f32.mrb[60].mxu1 }
 0xc8d   :  { %v6889_v46 = vadd.f32 %v6888_v55, %v4852_v54  ;;  %v4854_v47 = vpop.f32.mrb[33].mxu0  ;;  %v6802_v48 = vpop.f32.mrb[61].mxu1  ;;  %v4894_v1 = vadd.f32 %v4893_v43, %v4686_v62  ;;  %v7494_v54 = vld [vmem:[#allocation17] sm:$0xff]   ;;  %v7495_v43 = vld [vmem:[#allocation17 + $0x8] sm:$0xff]  }
 0xc8e   :  { %v4856_v49 = vpop.f32.mrb[34].mxu0  ;;  %v4896_v50 = vpop.f32.mrb[62].mxu1  ;;  %v6891_v56 = vadd.f32 %v6890_v45, %v4854_v47  ;;  %v7497_v45 = vld [vmem:[#allocation17 + $0x18] sm:$0xff]   ;;  %v7499_v47 = vld [vmem:[#allocation17 + $0x28] sm:$0xff]   ;;  %v7500_v48 = vld [vmem:[#allocation17 + $0x30] sm:$0xff]  }
 0xc8f   :  { %v6182_v51 = vmul.f32 -1.442695, %v6889_v46  ;;  %v4857_v52 = vpop.f32.mrb[35].mxu0  ;;  %v6803_v53 = vpop.f32.mrb[63].mxu1  ;;  %v7498_v46 = vld [vmem:[#allocation17 + $0x20] sm:$0xff]   ;;  %v7501_v49 = vld [vmem:[#allocation17 + $0x38] sm:$0xff]  }
 0xc90   :  { %v6183_v57 = vmul.f32 -1.442695, %v6891_v56  ;;  %v5222_v56 = vld [vmem:[#allocation23 + $0x15] sm:$0x7] }
 0xc91   :  { %7562 = vpow2.f32 %v6182_v51  ;;  %v5231_v62 = vrot.slane %v5222_v56, %v8334_v40 }
 0xc92   :  { %7564 = vpow2.f32 %v6183_v57  ;;  %v6186_v57 = vld [vmem:[%s8708_s18 + $0x15] sm:$0x7] }
 0xc9b   :  { %v7563_v58 = vpop.eup %7562 }
 0xc9c   :  { %v4903_v59 = vadd.f32 1.0, %v7563_v58  ;;  %v7565_v60 = vpop.eup %7564  ;;  %v4966_v58 = vrot.slane %v6186_v57, %v8329_v37 }
 0xc9d   :  { %v4910_v14 = vadd.f32 1.0, %v7565_v60  ;;  %v4970_v60 = vrot.slane %v6186_v57, %v8334_v40 }
 0xc9e   :  { %7566 = vrcp.f32 %v4903_v59  ;;  %v5227_v59 = vrot.slane %v5222_v56, %v8329_v37 }
 0xc9f   :  { %7568 = vrcp.f32 %v4910_v14 }
 0xca0   :  { %v6892_v42 = vadd.f32 %v5227_v59, %v4966_v58 }
 0xca8   :  { %v7567_v3 = vpop.eup %7566 }
 0xca9   :  { %v4913_v6 = vmul.f32 %v7567_v3, %v4894_v1  ;;  %v7569_v9 = vpop.eup %7568  ;;  %v6894_v1 = vadd.f32 %v5231_v62, %v4970_v60 }
 0xcaa   :  { %v4916_v10 = vsub.f32 1.0, %v7569_v9  ;;  %v4918_v13 = vmul.f32 %v7569_v9, %v8603_v63  ;;  %v7472_v63 = vld [vmem:[#allocation21 + $0x574] ss:$12 sps:$4 sm:$0xff]  }
 0xcab   :  { %v4914_v7 = vadd.f32 %v4913_v6, %v4633_v5 }
 0xcad   :  { %7570 = vtanh.f32 %v4914_v7 }
 0xcb7   :  { %v7571_v11 = vpop.eup %7570 }
 0xcb8   :  { %v4917_v12 = vmul.f32 %v7571_v11, %v4916_v10 }
 0xcba   :  { %v4919_v16 = vadd.f32 %v4918_v13, %v4917_v12 }
 0xcbc   :  { %6184 = vst [vmem:[%s8711_s21 + $0x30] sm:$0xff] %v4919_v16  ;;  %v4922_v17 = vadd.f32 %v4919_v16, %v8581_v33  ;;  %v7470_v33 = vld [vmem:[#allocation21 + $0x570] ss:$12 sps:$4 sm:$0xff]  }
 0xcbe   :  { %v4959_v20 = vpack.c.bf16 %v4922_v17, %v4922_v17 }
 0xcc0   :  { %5139 = vmatmul.mubr.bf16.vlgmr.msra.gmra.mrb[36].mxu0 %v4959_v20  ;;  %6821 = vmatmul.mubr.bf16.vlgmr.msra.gmra.mrb[64].mxu1 %v4959_v20 }
 0xcc1   :  { %5368 = vmatpush1.bf16.msra.mxu0 %v7462_v18  ;;  %6825 = vmatpush3.bf16.msra.mxu1 %v7465_v19  ;;  %v5235_v18 = vrot.slane %v5222_v56, %v8340_v61  ;;  %v4974_v19 = vrot.slane %v6186_v57, %v8340_v61 }
 0xcc2   :  { %5369 = vmatprep.subr.bf16.mxu0 %v7468_v21  ;;  %6826 = vmatprep.subr.bf16.mxu1 %v7912_v8 }
 0xcc3   :  { %5399 = vmatprep.mubr.bf16.mxu0 %v7914_v15  ;;  %6840 = vmatprep.mubr.msk.bf16.mxu1 %vm7913_vm0, %v7912_v8  ;;  %v7478_v15 = vld [vmem:[#allocation21 + $0x5a0] ss:$12 sps:$4 sm:$0xff]  }
 0xcc4   :  { %v6185_v39 = vld [vmem:[%s8736_s9 + $0x38] sm:$0xff] }
 0xcc5   :  { %5370 = vmatpush1.bf16.msra.mxu0 %v7466_v44  ;;  %6827 = vmatpush3.bf16.msra.mxu1 %v7469_v32  ;;  %v8647_v22 = vadd.f32 %v6185_v39, %v8308_v0  ;;  %v7496_v0 = vld [vmem:[#allocation17 + $0x10] sm:$0xff]  }
 0xcc6   :  { %5371 = vmatprep.subr.bf16.mxu0 %v7472_v63  ;;  %6828 = vmatprep.subr.bf16.mxu1 %v7912_v8 }
 0xcc7   :  { %v5220_v55 = vpack.c.bf16 %v8647_v22, %v8647_v22 }
 0xcc9   :  { %5372 = vmatpush1.bf16.msra.mxu0 %v7470_v33  ;;  %6829 = vmatpush3.bf16.msra.mxu1 %v7473_v23 }
 0xcca   :  { %5373 = vmatprep.subr.bf16.mxu0 %v7476_v2  ;;  %6830 = vmatprep.subr.bf16.mxu1 %v7912_v8 }
 0xccd   :  { %5374 = vmatpush1.bf16.msra.mxu0 %v7474_v24  ;;  %6831 = vmatpush3.bf16.msra.mxu1 %v7477_v25 }
 0xcce   :  { %5375 = vmatprep.subr.bf16.mxu0 %v7480_v26  ;;  %6832 = vmatprep.subr.bf16.mxu1 %v7912_v8 }
 0xcd1   :  { %5376 = vmatpush1.bf16.msra.mxu0 %v7478_v15  ;;  %6833 = vmatpush3.bf16.msra.mxu1 %v7481_v27  ;;  %v5584_v27 = vand.u32 127, %v1126_v35 }
 0xcd2   :  { %5377 = vmatprep.subr.bf16.mxu0 %v7484_v28  ;;  %6834 = vmatprep.subr.bf16.mxu1 %v7912_v8  ;;  %v6238_v28 = vld [vmem:[%s8704_s14] ss:$0 sm:$0xff] }
 0xcd3   :  { %vm5585_vm1 = vcmp.lt.s32.totalorder %v5584_v27, 64 }
 0xcd5   :  { %5378 = vmatpush1.bf16.msra.mxu0 %v7482_v29  ;;  %6835 = vmatpush3.bf16.msra.mxu1 %v7485_v30 }
 0xcd6   :  { %5379 = vmatprep.subr.bf16.mxu0 %v7488_v31  ;;  %6836 = vmatprep.subr.bf16.mxu1 %v7912_v8 }
 0xcd9   :  { %5380 = vmatpush1.bf16.msra.mxu0 %v7486_v34  ;;  %6837 = vmatpush3.bf16.msra.mxu1 %v7489_v36 }
 0xcda   :  { %5381 = vmatprep.subr.bf16.mxu0 %v7492_v38  ;;  %6838 = vmatprep.subr.bf16.mxu1 %v7912_v8 }
 0xcdd   :  { %5382 = vmatpush1.bf16.msra.mxu0 %v7490_v41  ;;  %6839 = vmatpush3.bf16.msra.mxu1 %v7493_v4 }
 0xcde   :  { %6844 = vmatprep.subr.bf16.mxu0 %v7912_v8 }
 0xce0   :  { %5400 = vmatmul.mubr.bf16.vlgmr.msra.gmra.mrb[36].mxu0 %v5220_v55  ;;  %6841 = vmatmul.mubr.bf16.vlgmr.msra.gmra.mrb[68].mxu1 %v5220_v55 }
 0xce1   :  { %6860 = vmatprep.mubr.msk.bf16.mxu0 %vm7913_vm0, %v7912_v8  ;;  %6845 = vmatpush3.bf16.msra.mxu0 %v7494_v54 }
 0xce2   :  { %6846 = vmatprep.subr.bf16.mxu0 %v7912_v8 }
 0xce5   :  { %6847 = vmatpush3.bf16.msra.mxu0 %v7495_v43 }
 0xce6   :  { %6848 = vmatprep.subr.bf16.mxu0 %v7912_v8 }
 0xce9   :  { %6849 = vmatpush3.bf16.msra.mxu0 %v7496_v0 }
 0xcea   :  { %6850 = vmatprep.subr.bf16.mxu0 %v7912_v8 }
 0xced   :  { %6851 = vmatpush3.bf16.msra.mxu0 %v7497_v45 }
 0xcee   :  { %6852 = vmatprep.subr.bf16.mxu0 %v7912_v8 }
 0xcf1   :  { %6853 = vmatpush3.bf16.msra.mxu0 %v7498_v46 }
 0xcf2   :  { %6854 = vmatprep.subr.bf16.mxu0 %v7912_v8 }
 0xcf5   :  { %6855 = vmatpush3.bf16.msra.mxu0 %v7499_v47 }
 0xcf6   :  { %6856 = vmatprep.subr.bf16.mxu0 %v7912_v8 }
 0xcf9   :  { %6857 = vmatpush3.bf16.msra.mxu0 %v7500_v48 }
 0xcfa   :  { %6858 = vmatprep.subr.bf16.mxu0 %v7912_v8 }
 0xcfd   :  { %6859 = vmatpush3.bf16.msra.mxu0 %v7501_v49 }
 0xd93   :  { %v5181_v50 = vpop.f32.mrb[64].mxu1 }
 0xd94   :  { %v6822_v51 = vpop.f32.mrb[65].mxu1  ;;  %v5182_v32 = vadd.f32 %v5181_v50, %v4974_v19 }
 0xd95   :  { %v5184_v52 = vpop.f32.mrb[66].mxu1 }
 0xd96   :  { %v6823_v53 = vpop.f32.mrb[67].mxu1 }
 0xdb3   :  { %v5401_v8 = vpop.f32.mrb[36].mxu0  ;;  %v5442_v14 = vpop.f32.mrb[68].mxu1 }
 0xdb4   :  { %v6893_v3 = vadd.f32 %v6892_v42, %v5401_v8  ;;  %v5403_v5 = vpop.f32.mrb[37].mxu0  ;;  %v6842_v6 = vpop.f32.mrb[69].mxu1  ;;  %v5443_v21 = vadd.f32 %v5442_v14, %v5235_v18 }
 0xdb5   :  { %v5405_v7 = vpop.f32.mrb[38].mxu0  ;;  %v5445_v9 = vpop.f32.mrb[70].mxu1  ;;  %v6895_v13 = vadd.f32 %v6894_v1, %v5403_v5 }
 0xdb6   :  { %v6235_v10 = vmul.f32 -1.442695, %v6893_v3  ;;  %v5406_v11 = vpop.f32.mrb[39].mxu0  ;;  %v6843_v12 = vpop.f32.mrb[71].mxu1 }
 0xdb7   :  { %v6236_v16 = vmul.f32 -1.442695, %v6895_v13 }
 0xdb8   :  { %7572 = vpow2.f32 %v6235_v10 }
 0xdb9   :  { %7574 = vpow2.f32 %v6236_v16 }
 0xdc2   :  { %v7573_v37 = vpop.eup %7572 }
 0xdc3   :  { %v5452_v17 = vadd.f32 1.0, %v7573_v37  ;;  %v7575_v40 = vpop.eup %7574 }
 0xdc4   :  { %v5459_v20 = vadd.f32 1.0, %v7575_v40 }
 0xdc5   :  { %7576 = vrcp.f32 %v5452_v17 }
 0xdc6   :  { %7578 = vrcp.f32 %v5459_v20 }
 0xdcf   :  { %v7577_v44 = vpop.eup %7576 }
 0xdd0   :  { %v5462_v63 = vmul.f32 %v7577_v44, %v5443_v21  ;;  %v7579_v23 = vpop.eup %7578 }
 0xdd1   :  { %v5465_v2 = vsub.f32 1.0, %v7579_v23  ;;  %v5467_v26 = vmul.f32 %v7579_v23, %v8647_v22 }
 0xdd2   :  { %v5463_v33 = vadd.f32 %v5462_v63, %v5182_v32 }
 0xdd4   :  { %7580 = vtanh.f32 %v5463_v33 }
 0xdde   :  { %v7581_v24 = vpop.eup %7580 }
 0xddf   :  { %v5466_v25 = vmul.f32 %v7581_v24, %v5465_v2 }
 0xde1   :  { %v5468_v15 = vadd.f32 %v5467_v26, %v5466_v25 }
 0xde3   :  { %6237 = vst [vmem:[%s8711_s21 + $0x38] sm:$0xff] %v5468_v15  ;;  %v5487_v61 = vpack.c.bf16 %v5468_v15, %v5468_v15  ;;  %s7915_s21 = smov [#allocation24]  }
 0xde4   :  { %s5605_s14 = sshll.u32 %s7915_s21, 4  ;;  %s5606_s14 = int_to_ptr.vmem [resolvable:$true] %s5605_s14 }
 0xde5   :  { %6861 = vmatmul.mubr.bf16.vlgmr.msra.gmra.mrb[40].mxu0 %v5487_v61  ;;  %s7840_s6 = scalar_lea.vmem %s5606_s14, 128  ;;  %p7845_p10 = scmp.lt.s32.totalorder %s5606_s14, %s5606_s14 }
 0xde6   :  { %p7841_p9 = scmp.ne.s32.totalorder %s5606_s14, %s7840_s6  ;;  %p7846_p11 = scmp.lt.s32.totalorder %s7840_s6, %s7840_s6 }
 0xde8   :  { %p7847_p12 = por %p7846_p11, %p7845_p10 }
 0xdea   :  { %p7848_p13 = pnand %p7847_p12, %p7841_p9 }
 0xeb8   :  { %v5577_v29 = vpop.f32.mrb[40].mxu0 }
 0xeb9   :  { %v5578_v30 = vadd.f32 %v6238_v28, %v5577_v29  ;;  %v6862_v31 = vpop.f32.mrb[41].mxu0 }
 0xeba   :  { %v5580_v34 = vpop.f32.mrb[42].mxu0 }
 0xebb   :  { %v6863_v36 = vpop.f32.mrb[43].mxu0  ;;  %v5586_v38 = vsel %vm5585_vm1, %v5578_v30, -1e+30 }
 0xebc   :  { %5587 = vmax.xlane.f32.xlu0 %v5586_v38 }
 0xf49   :  { %v5588_v39 = vpop.xlane.xlu0 %5587 }
 0xf4a   :  { %v5589_v41 = vsub.f32 %v5586_v38, %v5588_v39 }
 0xf4c   :  { %v5590_v4 = vmul.f32 1.442695, %v5589_v41 }
 0xf4e   :  { %7582 = vpow2.f32 %v5590_v4 }
 0xf58   :  { %v7583_v22 = vpop.eup %7582 }
 0xf59   :  { %5592 = vadd.xlane.f32.xlu0 %v7583_v22 }
 0xfe6   :  { %v5593_v55 = vpop.xlane.xlu0 %5592 }
 0xfe7   :  { %7584 = vlog2.f32 %v5593_v55 }
 0xff1   :  { %v7585_v35 = vpop.eup %7584 }
 0xff2   :  { %v5595_v54 = vmul.f32 0.6931472, %v7585_v35 }
 0xff4   :  { %v5596_v43 = vadd.f32 %v5595_v54, %v5588_v39 }
 0xff6   :  { %v5597_v0 = vsub.f32 %v5586_v38, %v5596_v43 }
 0xff8   :  { %5598 = vst [vmem:[#allocation24] sm:$0xff] %v5597_v0 }
 0xff9   :  { %7851 = shalt.err (!%p7848_p13)
}
 0xffa   :  { %s8737_s23 = sld [smem:[#allocation55_spill]] }
0x1000   :  { %s7852_s10 = scalar_lea.hbm %s8737_s23, 128 }
0x1001   :  { %p7853_p0 = scmp.ne.s32.totalorder %s8737_s23, %s7852_s10  ;;  %p7856_p1 = scmp.lt.u32.totalorder %s7852_s10, %s8737_s23 }
0x1003   :  { %p7858_p2 = pnand %p7856_p1, %p7853_p0 }
0x1005   :  { %7861 = shalt.err (!%p7858_p2)
}
0x1006   :  { %5608 = dma.vmem_to_hbm [thread:$0]  %s5606_s14, 128, %s8737_s23, [#allocation6]  }
0x1007   :  { %7892 = dma.done.wait [#allocation6], 128  }
0x1008   :  { %7893 = vsyncadd [#allocation6], 4294967168 }
0x1009   :  { %5616 = vsyncpa [#allocation5], 1 }
0x100a   :  { %5617 = vsyncpa [#allocation10], 1 }
0x100b   :  { %5618 = vsyncpa [#allocation13], 1 }
0x100c   :  { %5619 = vsyncpa [#allocation16], 1 }
0x100d   :  { %5620 = vsyncpa [#allocation19], 1 }
0x100e   :  { %5621 = vsyncpa [#allocation22], 1 }
0x100f   :  { %5622 = vsyncpa [#allocation6], 1 }
0x1010   :  { %5623 = vsyncpa [#allocation7], 1 }
0x1011   :  { %5624 = vsyncmov [#allocation3] }
0x1014   :  { %s5625_s17 = vpop.sfrf %5624 }
0x1015   :  { %p6247_p3 = scmp.ne.s32.totalorder %s5625_s17, 0 }
0x1017   :  { %5629 = shalt.err (%p6247_p3)  }
0x1018   :  { %5631 = vsyncmov [#allocation3 + $0x1] }
0x101b   :  { %s5632_s16 = vpop.sfrf %5631 }
0x101c   :  { %p6248_p4 = scmp.ne.s32.totalorder %s5632_s16, 0 }
0x101e   :  { %5636 = shalt.err (%p6248_p4)  }
0x101f   :  { %5638 = vsyncmov [#allocation3 + $0x2] }
0x1022   :  { %s5639_s11 = vpop.sfrf %5638 }
0x1023   :  { %p6249_p5 = scmp.ne.s32.totalorder %s5639_s11, 0 }
0x1025   :  { %5643 = shalt.err (%p6249_p5)  }
0x1026   :  { %5645 = vsyncmov [#allocation3 + $0x3] }
0x1029   :  { %s5646_s26 = vpop.sfrf %5645 }
0x102a   :  { %p6250_p6 = scmp.ne.s32.totalorder %s5646_s26, 0 }
0x102c   :  { %5650 = shalt.err (%p6250_p6)  }
0x102d   :  { %5652 = vsyncmov [#allocation3 + $0x4] }
0x1030   :  { %s5653_s27 = vpop.sfrf %5652 }
0x1031   :  { %p6251_p7 = scmp.ne.s32.totalorder %s5653_s27, 0 }
0x1033   :  { %5657 = shalt.err (%p6251_p7)  }
0x1034   :  { %5659 = vsyncmov [#allocation3 + $0x5] }
0x1037   :  { %s5660_s20 = vpop.sfrf %5659 }
0x1038   :  { %p6252_p8 = scmp.ne.s32.totalorder %s5660_s20, 0 }
0x103a   :  { %5664 = shalt.err (%p6252_p8)  }
0x103b   :  { %5666 = vsyncmov [#allocation3 + $0x6] }
0x103e   :  { %s5667_s28 = vpop.sfrf %5666 }
0x103f   :  { %p6253_p9 = scmp.ne.s32.totalorder %s5667_s28, 0 }
0x1041   :  { %5671 = shalt.err (%p6253_p9)  }
0x1042   :  { %5673 = vsyncmov [#allocation3 + $0x7] }
0x1045   :  { %s5674_s0 = vpop.sfrf %5673 }
0x1046   :  { %p6254_p10 = scmp.ne.s32.totalorder %s5674_s0, 0 }
0x1048   :  { %5678 = shalt.err (%p6254_p10)  }

</bundles_post_ra>
